<compile_context>
chip_gen: v7x
topology: tpu7x:2x2x1
jax: 0.10.0
libtpu: 0.0.40
codegen_flags: <defaults>
</compile_context>

<pallas_src>
import functools

import jax
import jax.numpy as jnp
import numpy as np
from jax.experimental import pallas as pl
from jax.experimental.pallas import tpu as pltpu


# ----------------------------------------------------------------------------
# The fused Pallas kernel (one grid step == one tile of B images)
# ----------------------------------------------------------------------------
def _mycnn_kernel(xw_ref, w1b_ref, b1_ref, w2b_ref, b2_ref,
                  wf1_ref, bf1_ref, wf2_ref, bf2_ref, wf3_ref, bf3_ref,
                  o_ref):
    f32 = jnp.float32
    bf16 = jnp.bfloat16
    B = o_ref.shape[0]                      # images per grid step (batch tile)

    # ---- conv1 (1->16, 5x5, valid) as ONE matmul ----------------------------
    # LHS rows = (conv output row, image); K folds the 5 kernel rows (5*28);
    # N folds (col parity, pooled col, out channel) = 2*12*16 = 384.
    lhs1 = xw_ref[...].reshape(24 * B, 140).astype(bf16)            # free merge
    v1 = jnp.dot(lhs1, w1b_ref[...], preferred_element_type=f32)    # (24B, 384)

    # fused 2x2 max-pool + bias + ReLU
    v1 = jnp.maximum(v1[:, :192], v1[:, 192:])                      # col parity
    v1 = v1.reshape(12, 2 * B, 192)
    m1 = jnp.maximum(v1[:, :B, :], v1[:, B:, :])                    # row parity
    a1 = jnp.maximum(m1 + b1_ref[...], 0.0)                         # (12, B, 192)
    a1 = a1.reshape(12 * B, 192).astype(bf16)

    # ---- conv2 (16->16, 5x5, valid): 5 banded matmuls (one per kernel row) --
    acc2 = jnp.dot(a1[0:8 * B, :], w2b_ref[0], preferred_element_type=f32)
    for ki in range(1, 5):
        acc2 = acc2 + jnp.dot(a1[ki * B:(ki + 8) * B, :], w2b_ref[ki],
                              preferred_element_type=f32)           # (8B, 128)

    v2 = jnp.maximum(acc2[:, :64], acc2[:, 64:])                    # col parity
    v2 = v2.reshape(4, 2 * B, 64)
    m2 = jnp.maximum(v2[:, :B, :], v2[:, B:, :])                    # row parity
    act2 = jnp.maximum(m2 + b2_ref[...], 0.0)                       # (4, B, 64)

    # ---- fc1 / fc2 / fc3 on the whole tile ----------------------------------
    # flatten (h, w, co) -> columns h*64 + w*16 + co; PyTorch's NCHW flatten
    # permutation is folded into wf1's row order at setup time.
    xfc = jnp.concatenate([act2[0], act2[1], act2[2], act2[3]], axis=-1)
    h = jnp.dot(xfc.astype(bf16), wf1_ref[...], preferred_element_type=f32)
    h = jnp.maximum(h + bf1_ref[...], 0.0)                          # (B, 128)
    h = jnp.dot(h.astype(bf16), wf2_ref[...], preferred_element_type=f32)
    h = jnp.maximum(h + bf2_ref[...], 0.0)                          # (B, 64)
    o_ref[...] = (jnp.dot(h.astype(bf16), wf3_ref[...],
                          preferred_element_type=f32)
                  + bf3_ref[...]).astype(o_ref.dtype)               # (B, 10)


# ----------------------------------------------------------------------------
# One-time (setup) weight re-layout: conv -> band matrices, fc permutations
# ----------------------------------------------------------------------------
def prepare_params(params):
    w1 = np.asarray(params["conv1_w"], np.float32)      # (16, 1, 5, 5)
    b1 = np.asarray(params["conv1_b"], np.float32)      # (16,)
    w2 = np.asarray(params["conv2_w"], np.float32)      # (16, 16, 5, 5)
    b2 = np.asarray(params["conv2_b"], np.float32)      # (16,)
    fc1w = np.asarray(params["fc1_w"], np.float32)      # (128, 256)
    fc2w = np.asarray(params["fc2_w"], np.float32)      # (64, 128)
    fc3w = np.asarray(params["fc3_w"], np.float32)      # (10, 64)

    # conv1 band: K = ki*28 + w_in, N = pc*192 + pw*16 + co   (ow = 2*pw + pc)
    W1b = np.zeros((140, 384), np.float32)
    for pc in range(2):
        for pw in range(12):
            ow = 2 * pw + pc
            for ki in range(5):
                for kj in range(5):
                    W1b[ki * 28 + ow + kj,
                        pc * 192 + pw * 16: pc * 192 + (pw + 1) * 16] = \
                        w1[:, 0, ki, kj]

    # conv2 bands (one per kernel row ki):
    #   K = w_in*16 + ci, N = pc*64 + pw*16 + co   (ow = 2*pw + pc)
    W2b = np.zeros((5, 192, 128), np.float32)
    for ki in range(5):
        for pc in range(2):
            for pw in range(4):
                ow = 2 * pw + pc
                for kj in range(5):
                    win = ow + kj
                    W2b[ki, win * 16:(win + 1) * 16,
                        pc * 64 + pw * 16: pc * 64 + (pw + 1) * 16] = \
                        w2[:, :, ki, kj].T

    # fc1: fold the PyTorch NCHW flatten (f = co*16 + h*4 + w) into the row
    # order matching the kernel's (h*64 + w*16 + co) activation concat.
    W1f = np.zeros((256, 128), np.float32)
    for h in range(4):
        for w in range(4):
            for co in range(16):
                W1f[h * 64 + w * 16 + co, :] = fc1w[:, co * 16 + h * 4 + w]

    bf16 = jnp.bfloat16
    return {
        "W1b": jnp.asarray(W1b, bf16),
        "b1": jnp.asarray(np.tile(b1, 12)[None, :], jnp.float32),   # (1, 192)
        "W2b": jnp.asarray(W2b, bf16),
        "b2": jnp.asarray(np.tile(b2, 4)[None, :], jnp.float32),    # (1, 64)
        "W1f": jnp.asarray(W1f, bf16),
        "bf1": jnp.asarray(np.asarray(params["fc1_b"], np.float32)[None, :]),
        "W2f": jnp.asarray(fc2w.T, bf16),
        "bf2": jnp.asarray(np.asarray(params["fc2_b"], np.float32)[None, :]),
        "W3f": jnp.asarray(fc3w.T, bf16),
        "bf3": jnp.asarray(np.asarray(params["fc3_b"], np.float32)[None, :]),
    }


# ----------------------------------------------------------------------------
# Forward pass: one pallas_call for the whole network, batched by tiles
# ----------------------------------------------------------------------------
@functools.partial(jax.jit, static_argnames=("b_tile",))
def my_cnn_forward(x_nchw, prep, b_tile=128):
    assert b_tile % 8 == 0, "b_tile must be a multiple of 8 (sublane tiling)"
    n = x_nchw.shape[0]
    nb = pl.cdiv(n, b_tile)
    n_pad = nb * b_tile

    x = x_nchw.astype(jnp.float32).reshape(n, 28, 28)
    if n_pad != n:
        x = jnp.pad(x, ((0, n_pad - n), (0, 0), (0, 0)))

    # Window-expand the 5 conv1 kernel rows into the K (lane) dimension:
    #   xw[oh, j, ki*28 + w] = x[j, oh + ki, w]   (oh = conv1 output row 0..23)
    # ~13 KB/image of one-off XLA relayout so conv1 is a single K=140 matmul.
    xw = jnp.stack(
        [x[:, oh:oh + 5, :].reshape(n_pad, 140) for oh in range(24)], axis=0)

    out = pl.pallas_call(
        _mycnn_kernel,
        out_shape=jax.ShapeDtypeStruct((n_pad, 10), jnp.float32),
        grid=(nb,),
        in_specs=[
            pl.BlockSpec((24, b_tile, 140), lambda i: (0, i, 0)),   # input windows
            pl.BlockSpec((140, 384), lambda i: (0, 0)),             # conv1 band
            pl.BlockSpec((1, 192), lambda i: (0, 0)),               # conv1 bias (tiled)
            pl.BlockSpec((5, 192, 128), lambda i: (0, 0, 0)),       # conv2 bands
            pl.BlockSpec((1, 64), lambda i: (0, 0)),                # conv2 bias (tiled)
            pl.BlockSpec((256, 128), lambda i: (0, 0)),             # fc1 (permuted)
            pl.BlockSpec((1, 128), lambda i: (0, 0)),               # fc1 bias
            pl.BlockSpec((128, 64), lambda i: (0, 0)),              # fc2
            pl.BlockSpec((1, 64), lambda i: (0, 0)),                # fc2 bias
            pl.BlockSpec((64, 10), lambda i: (0, 0)),               # fc3
            pl.BlockSpec((1, 10), lambda i: (0, 0)),                # fc3 bias
        ],
        out_specs=pl.BlockSpec((b_tile, 10), lambda i: (i, 0)),
        compiler_params=pltpu.CompilerParams(
            dimension_semantics=("parallel",),
            vmem_limit_bytes=32 * 1024 * 1024),
    )(xw, prep["W1b"], prep["b1"], prep["W2b"], prep["b2"],
      prep["W1f"], prep["bf1"], prep["W2f"], prep["bf2"],
      prep["W3f"], prep["bf3"])
    return out[:n]


# ----------------------------------------------------------------------------
# Parameter init (PyTorch layouts) + pure-JAX reference for verification
# ----------------------------------------------------------------------------
def init_params(key):
    ks = jax.random.split(key, 10)

    def nrm(k, shape, scale=0.1):
        return scale * jax.random.normal(k, shape, jnp.float32)

    return {
        "conv1_w": nrm(ks[0], (16, 1, 5, 5)),
        "conv1_b": nrm(ks[1], (16,)),
        "conv2_w": nrm(ks[2], (16, 16, 5, 5)),
        "conv2_b": nrm(ks[3], (16,)),
        "fc1_w": nrm(ks[4], (128, 256)),
        "fc1_b": nrm(ks[5], (128,)),
        "fc2_w": nrm(ks[6], (64, 128)),
        "fc2_b": nrm(ks[7], (64,)),
        "fc3_w": nrm(ks[8], (10, 64)),
        "fc3_b": nrm(ks[9], (10,)),
    }


def reference_forward(x_nchw, params):
    def conv(x, w, b):
        y = jax.lax.conv_general_dilated(
            x, w, (1, 1), "VALID", dimension_numbers=("NCHW", "OIHW", "NCHW"))
        return y + b[None, :, None, None]

    def pool(x):
        return jax.lax.reduce_window(
            x, -jnp.inf, jax.lax.max, (1, 1, 2, 2), (1, 1, 2, 2), "VALID")

    y = pool(jax.nn.relu(conv(x_nchw, params["conv1_w"], params["conv1_b"])))
    y = pool(jax.nn.relu(conv(y, params["conv2_w"], params["conv2_b"])))
    y = y.reshape(y.shape[0], -1)
    y = jax.nn.relu(y @ params["fc1_w"].T + params["fc1_b"])
    y = jax.nn.relu(y @ params["fc2_w"].T + params["fc2_b"])
    y = y @ params["fc3_w"].T + params["fc3_b"]
    return y


if __name__ == "__main__":
    key = jax.random.PRNGKey(0)
    pkey, xkey = jax.random.split(key)
    params = init_params(pkey)
    prep = prepare_params(params)          # one-time weight re-layout (setup)

    # MNIST-sized input (28x28 so the flatten is 16*4*4 = 256).  Batch 64 with
    # b_tile=32 gives a 2-step "parallel" grid (exercises the v7x dual-TC split).
    x = jax.random.normal(xkey, (64, 1, 28, 28), jnp.float32)

    out = jax.block_until_ready(my_cnn_forward(x, prep, b_tile=32))
    assert out.shape == (64, 10), out.shape

    ref = jax.block_until_ready(reference_forward(x, params))
    # MXU operands are bf16 (f32 accumulation), so compare at a bf16-appropriate
    # tolerance against the f32 reference.
    np.testing.assert_allclose(np.asarray(out), np.asarray(ref),
                               rtol=3e-2, atol=3e-2)
    print("KERNEL_OK")
</pallas_src>

<mosaic_0001>
module attributes {stable_mosaic.version = 11 : i64} {
  func.func @_mycnn_kernel(%arg0: i32, %arg1: memref<24x32x140xf32, #tpu.memory_space<vmem>>, %arg2: memref<140x384xbf16, #tpu.memory_space<vmem>>, %arg3: memref<1x192xf32, #tpu.memory_space<vmem>>, %arg4: memref<5x192x128xbf16, #tpu.memory_space<vmem>>, %arg5: memref<1x64xf32, #tpu.memory_space<vmem>>, %arg6: memref<256x128xbf16, #tpu.memory_space<vmem>>, %arg7: memref<1x128xf32, #tpu.memory_space<vmem>>, %arg8: memref<128x64xbf16, #tpu.memory_space<vmem>>, %arg9: memref<1x64xf32, #tpu.memory_space<vmem>>, %arg10: memref<64x10xbf16, #tpu.memory_space<vmem>>, %arg11: memref<1x10xf32, #tpu.memory_space<vmem>>, %arg12: memref<32x10xf32, #tpu.memory_space<vmem>>) attributes {dimension_semantics = [#tpu.dimension_semantics<parallel>], iteration_bounds = array<i64: 2>, scalar_prefetch = 0 : i64, scratch_operands = 0 : i64, tpu.core_type = #tpu.core_type<tc>, window_params = [{transform_indices = @transform_0, window_bounds = array<i64: 24, 32, 140>}, {pipeline_mode = #tpu.pipeline_mode<synchronous>, transform_indices = @transform_1, window_bounds = array<i64: 140, 384>}, {pipeline_mode = #tpu.pipeline_mode<synchronous>, transform_indices = @transform_2, window_bounds = array<i64: 1, 192>}, {pipeline_mode = #tpu.pipeline_mode<synchronous>, transform_indices = @transform_3, window_bounds = array<i64: 5, 192, 128>}, {pipeline_mode = #tpu.pipeline_mode<synchronous>, transform_indices = @transform_4, window_bounds = array<i64: 1, 64>}, {pipeline_mode = #tpu.pipeline_mode<synchronous>, transform_indices = @transform_5, window_bounds = array<i64: 256, 128>}, {pipeline_mode = #tpu.pipeline_mode<synchronous>, transform_indices = @transform_6, window_bounds = array<i64: 1, 128>}, {pipeline_mode = #tpu.pipeline_mode<synchronous>, transform_indices = @transform_7, window_bounds = array<i64: 128, 64>}, {pipeline_mode = #tpu.pipeline_mode<synchronous>, transform_indices = @transform_8, window_bounds = array<i64: 1, 64>}, {pipeline_mode = #tpu.pipeline_mode<synchronous>, transform_indices = @transform_9, window_bounds = array<i64: 64, 10>}, {pipeline_mode = #tpu.pipeline_mode<synchronous>, transform_indices = @transform_10, window_bounds = array<i64: 1, 10>}, {transform_indices = @transform_11, window_bounds = array<i64: 32, 10>}]} {
    %c0 = arith.constant 0 : index
    %c0_0 = arith.constant 0 : index
    %c0_1 = arith.constant 0 : index
    %0 = vector.load %arg1[%c0, %c0_0, %c0_1] : memref<24x32x140xf32, #tpu.memory_space<vmem>>, vector<24x32x140xf32>
    %1 = vector.shape_cast %0 : vector<24x32x140xf32> to vector<768x140xf32>
    %2 = arith.truncf %1 : vector<768x140xf32> to vector<768x140xbf16>
    %c0_2 = arith.constant 0 : index
    %c0_3 = arith.constant 0 : index
    %3 = vector.load %arg2[%c0_2, %c0_3] : memref<140x384xbf16, #tpu.memory_space<vmem>>, vector<140x384xbf16>
    %cst = arith.constant dense<0.000000e+00> : vector<768x384xf32>
    %4 = tpu.matmul %2, %3, %cst {dimension_numbers = #tpu.dot_dimension_numbers<[1], [0], [0], [1], [0, 0, 1, 1], [], []>} : vector<768x140xbf16>, vector<140x384xbf16>, vector<768x384xf32> -> vector<768x384xf32>
    %5 = vector.extract_strided_slice %4 {offsets = [0, 0], sizes = [768, 192], strides = [1, 1]} : vector<768x384xf32> to vector<768x192xf32>
    %6 = vector.extract_strided_slice %4 {offsets = [0, 192], sizes = [768, 192], strides = [1, 1]} : vector<768x384xf32> to vector<768x192xf32>
    %7 = arith.maximumf %5, %6 : vector<768x192xf32>
    %8 = vector.shape_cast %7 : vector<768x192xf32> to vector<12x64x192xf32>
    %9 = vector.extract_strided_slice %8 {offsets = [0, 0, 0], sizes = [12, 32, 192], strides = [1, 1, 1]} : vector<12x64x192xf32> to vector<12x32x192xf32>
    %10 = vector.extract_strided_slice %8 {offsets = [0, 32, 0], sizes = [12, 32, 192], strides = [1, 1, 1]} : vector<12x64x192xf32> to vector<12x32x192xf32>
    %11 = arith.maximumf %9, %10 : vector<12x32x192xf32>
    %c0_4 = arith.constant 0 : index
    %c0_5 = arith.constant 0 : index
    %12 = vector.load %arg3[%c0_4, %c0_5] : memref<1x192xf32, #tpu.memory_space<vmem>>, vector<1x192xf32>
    %13 = vector.shape_cast %12 : vector<1x192xf32> to vector<1x1x192xf32>
    %14 = vector.broadcast %13 : vector<1x1x192xf32> to vector<12x32x192xf32>
    %15 = arith.addf %11, %14 : vector<12x32x192xf32>
    %cst_6 = arith.constant 0.000000e+00 : f32
    %16 = vector.broadcast %cst_6 : f32 to vector<12x32x192xf32>
    %17 = arith.maximumf %15, %16 : vector<12x32x192xf32>
    %18 = vector.shape_cast %17 : vector<12x32x192xf32> to vector<384x192xf32>
    %19 = arith.truncf %18 : vector<384x192xf32> to vector<384x192xbf16>
    %20 = vector.extract_strided_slice %19 {offsets = [0, 0], sizes = [256, 192], strides = [1, 1]} : vector<384x192xbf16> to vector<256x192xbf16>
    %c0_7 = arith.constant 0 : index
    %c0_8 = arith.constant 0 : index
    %c0_9 = arith.constant 0 : index
    %21 = vector.load %arg4[%c0_7, %c0_8, %c0_9] : memref<5x192x128xbf16, #tpu.memory_space<vmem>>, vector<1x192x128xbf16>
    %22 = vector.shape_cast %21 : vector<1x192x128xbf16> to vector<192x128xbf16>
    %cst_10 = arith.constant dense<0.000000e+00> : vector<256x128xf32>
    %23 = tpu.matmul %20, %22, %cst_10 {dimension_numbers = #tpu.dot_dimension_numbers<[1], [0], [0], [1], [0, 0, 1, 1], [], []>} : vector<256x192xbf16>, vector<192x128xbf16>, vector<256x128xf32> -> vector<256x128xf32>
    %24 = vector.extract_strided_slice %19 {offsets = [32, 0], sizes = [256, 192], strides = [1, 1]} : vector<384x192xbf16> to vector<256x192xbf16>
    %c1 = arith.constant 1 : index
    %c0_11 = arith.constant 0 : index
    %c0_12 = arith.constant 0 : index
    %25 = vector.load %arg4[%c1, %c0_11, %c0_12] : memref<5x192x128xbf16, #tpu.memory_space<vmem>>, vector<1x192x128xbf16>
    %26 = vector.shape_cast %25 : vector<1x192x128xbf16> to vector<192x128xbf16>
    %cst_13 = arith.constant dense<0.000000e+00> : vector<256x128xf32>
    %27 = tpu.matmul %24, %26, %cst_13 {dimension_numbers = #tpu.dot_dimension_numbers<[1], [0], [0], [1], [0, 0, 1, 1], [], []>} : vector<256x192xbf16>, vector<192x128xbf16>, vector<256x128xf32> -> vector<256x128xf32>
    %28 = arith.addf %23, %27 : vector<256x128xf32>
    %29 = vector.extract_strided_slice %19 {offsets = [64, 0], sizes = [256, 192], strides = [1, 1]} : vector<384x192xbf16> to vector<256x192xbf16>
    %c2 = arith.constant 2 : index
    %c0_14 = arith.constant 0 : index
    %c0_15 = arith.constant 0 : index
    %30 = vector.load %arg4[%c2, %c0_14, %c0_15] : memref<5x192x128xbf16, #tpu.memory_space<vmem>>, vector<1x192x128xbf16>
    %31 = vector.shape_cast %30 : vector<1x192x128xbf16> to vector<192x128xbf16>
    %cst_16 = arith.constant dense<0.000000e+00> : vector<256x128xf32>
    %32 = tpu.matmul %29, %31, %cst_16 {dimension_numbers = #tpu.dot_dimension_numbers<[1], [0], [0], [1], [0, 0, 1, 1], [], []>} : vector<256x192xbf16>, vector<192x128xbf16>, vector<256x128xf32> -> vector<256x128xf32>
    %33 = arith.addf %28, %32 : vector<256x128xf32>
    %34 = vector.extract_strided_slice %19 {offsets = [96, 0], sizes = [256, 192], strides = [1, 1]} : vector<384x192xbf16> to vector<256x192xbf16>
    %c3 = arith.constant 3 : index
    %c0_17 = arith.constant 0 : index
    %c0_18 = arith.constant 0 : index
    %35 = vector.load %arg4[%c3, %c0_17, %c0_18] : memref<5x192x128xbf16, #tpu.memory_space<vmem>>, vector<1x192x128xbf16>
    %36 = vector.shape_cast %35 : vector<1x192x128xbf16> to vector<192x128xbf16>
    %cst_19 = arith.constant dense<0.000000e+00> : vector<256x128xf32>
    %37 = tpu.matmul %34, %36, %cst_19 {dimension_numbers = #tpu.dot_dimension_numbers<[1], [0], [0], [1], [0, 0, 1, 1], [], []>} : vector<256x192xbf16>, vector<192x128xbf16>, vector<256x128xf32> -> vector<256x128xf32>
    %38 = arith.addf %33, %37 : vector<256x128xf32>
    %39 = vector.extract_strided_slice %19 {offsets = [128, 0], sizes = [256, 192], strides = [1, 1]} : vector<384x192xbf16> to vector<256x192xbf16>
    %c4 = arith.constant 4 : index
    %c0_20 = arith.constant 0 : index
    %c0_21 = arith.constant 0 : index
    %40 = vector.load %arg4[%c4, %c0_20, %c0_21] : memref<5x192x128xbf16, #tpu.memory_space<vmem>>, vector<1x192x128xbf16>
    %41 = vector.shape_cast %40 : vector<1x192x128xbf16> to vector<192x128xbf16>
    %cst_22 = arith.constant dense<0.000000e+00> : vector<256x128xf32>
    %42 = tpu.matmul %39, %41, %cst_22 {dimension_numbers = #tpu.dot_dimension_numbers<[1], [0], [0], [1], [0, 0, 1, 1], [], []>} : vector<256x192xbf16>, vector<192x128xbf16>, vector<256x128xf32> -> vector<256x128xf32>
    %43 = arith.addf %38, %42 : vector<256x128xf32>
    %44 = vector.extract_strided_slice %43 {offsets = [0, 0], sizes = [256, 64], strides = [1, 1]} : vector<256x128xf32> to vector<256x64xf32>
    %45 = vector.extract_strided_slice %43 {offsets = [0, 64], sizes = [256, 64], strides = [1, 1]} : vector<256x128xf32> to vector<256x64xf32>
    %46 = arith.maximumf %44, %45 : vector<256x64xf32>
    %47 = vector.shape_cast %46 : vector<256x64xf32> to vector<4x64x64xf32>
    %48 = vector.extract_strided_slice %47 {offsets = [0, 0, 0], sizes = [4, 32, 64], strides = [1, 1, 1]} : vector<4x64x64xf32> to vector<4x32x64xf32>
    %49 = vector.extract_strided_slice %47 {offsets = [0, 32, 0], sizes = [4, 32, 64], strides = [1, 1, 1]} : vector<4x64x64xf32> to vector<4x32x64xf32>
    %50 = arith.maximumf %48, %49 : vector<4x32x64xf32>
    %c0_23 = arith.constant 0 : index
    %c0_24 = arith.constant 0 : index
    %51 = vector.load %arg5[%c0_23, %c0_24] : memref<1x64xf32, #tpu.memory_space<vmem>>, vector<1x64xf32>
    %52 = vector.shape_cast %51 : vector<1x64xf32> to vector<1x1x64xf32>
    %53 = vector.broadcast %52 : vector<1x1x64xf32> to vector<4x32x64xf32>
    %54 = arith.addf %50, %53 : vector<4x32x64xf32>
    %cst_25 = arith.constant 0.000000e+00 : f32
    %55 = vector.broadcast %cst_25 : f32 to vector<4x32x64xf32>
    %56 = arith.maximumf %54, %55 : vector<4x32x64xf32>
    %57 = vector.extract_strided_slice %56 {offsets = [0, 0, 0], sizes = [1, 32, 64], strides = [1, 1, 1]} : vector<4x32x64xf32> to vector<1x32x64xf32>
    %58 = vector.shape_cast %57 : vector<1x32x64xf32> to vector<32x64xf32>
    %59 = vector.extract_strided_slice %56 {offsets = [1, 0, 0], sizes = [1, 32, 64], strides = [1, 1, 1]} : vector<4x32x64xf32> to vector<1x32x64xf32>
    %60 = vector.shape_cast %59 : vector<1x32x64xf32> to vector<32x64xf32>
    %61 = vector.extract_strided_slice %56 {offsets = [2, 0, 0], sizes = [1, 32, 64], strides = [1, 1, 1]} : vector<4x32x64xf32> to vector<1x32x64xf32>
    %62 = vector.shape_cast %61 : vector<1x32x64xf32> to vector<32x64xf32>
    %63 = vector.extract_strided_slice %56 {offsets = [3, 0, 0], sizes = [1, 32, 64], strides = [1, 1, 1]} : vector<4x32x64xf32> to vector<1x32x64xf32>
    %64 = vector.shape_cast %63 : vector<1x32x64xf32> to vector<32x64xf32>
    %65 = tpu.concatenate %58, %60, %62, %64 in 1 : vector<32x64xf32>, vector<32x64xf32>, vector<32x64xf32>, vector<32x64xf32> -> vector<32x256xf32>
    %66 = arith.truncf %65 : vector<32x256xf32> to vector<32x256xbf16>
    %c0_26 = arith.constant 0 : index
    %c0_27 = arith.constant 0 : index
    %67 = vector.load %arg6[%c0_26, %c0_27] : memref<256x128xbf16, #tpu.memory_space<vmem>>, vector<256x128xbf16>
    %cst_28 = arith.constant dense<0.000000e+00> : vector<32x128xf32>
    %68 = tpu.matmul %66, %67, %cst_28 {dimension_numbers = #tpu.dot_dimension_numbers<[1], [0], [0], [1], [0, 0, 1, 1], [], []>} : vector<32x256xbf16>, vector<256x128xbf16>, vector<32x128xf32> -> vector<32x128xf32>
    %c0_29 = arith.constant 0 : index
    %c0_30 = arith.constant 0 : index
    %69 = vector.load %arg7[%c0_29, %c0_30] : memref<1x128xf32, #tpu.memory_space<vmem>>, vector<1x128xf32>
    %70 = vector.broadcast %69 : vector<1x128xf32> to vector<32x128xf32>
    %71 = arith.addf %68, %70 : vector<32x128xf32>
    %cst_31 = arith.constant 0.000000e+00 : f32
    %72 = vector.broadcast %cst_31 : f32 to vector<32x128xf32>
    %73 = arith.maximumf %71, %72 : vector<32x128xf32>
    %74 = arith.truncf %73 : vector<32x128xf32> to vector<32x128xbf16>
    %c0_32 = arith.constant 0 : index
    %c0_33 = arith.constant 0 : index
    %75 = vector.load %arg8[%c0_32, %c0_33] : memref<128x64xbf16, #tpu.memory_space<vmem>>, vector<128x64xbf16>
    %cst_34 = arith.constant dense<0.000000e+00> : vector<32x64xf32>
    %76 = tpu.matmul %74, %75, %cst_34 {dimension_numbers = #tpu.dot_dimension_numbers<[1], [0], [0], [1], [0, 0, 1, 1], [], []>} : vector<32x128xbf16>, vector<128x64xbf16>, vector<32x64xf32> -> vector<32x64xf32>
    %c0_35 = arith.constant 0 : index
    %c0_36 = arith.constant 0 : index
    %77 = vector.load %arg9[%c0_35, %c0_36] : memref<1x64xf32, #tpu.memory_space<vmem>>, vector<1x64xf32>
    %78 = vector.broadcast %77 : vector<1x64xf32> to vector<32x64xf32>
    %79 = arith.addf %76, %78 : vector<32x64xf32>
    %cst_37 = arith.constant 0.000000e+00 : f32
    %80 = vector.broadcast %cst_37 : f32 to vector<32x64xf32>
    %81 = arith.maximumf %79, %80 : vector<32x64xf32>
    %82 = arith.truncf %81 : vector<32x64xf32> to vector<32x64xbf16>
    %c0_38 = arith.constant 0 : index
    %c0_39 = arith.constant 0 : index
    %83 = vector.load %arg10[%c0_38, %c0_39] : memref<64x10xbf16, #tpu.memory_space<vmem>>, vector<64x10xbf16>
    %cst_40 = arith.constant dense<0.000000e+00> : vector<32x10xf32>
    %84 = tpu.matmul %82, %83, %cst_40 {dimension_numbers = #tpu.dot_dimension_numbers<[1], [0], [0], [1], [0, 0, 1, 1], [], []>} : vector<32x64xbf16>, vector<64x10xbf16>, vector<32x10xf32> -> vector<32x10xf32>
    %c0_41 = arith.constant 0 : index
    %c0_42 = arith.constant 0 : index
    %85 = vector.load %arg11[%c0_41, %c0_42] : memref<1x10xf32, #tpu.memory_space<vmem>>, vector<1x10xf32>
    %86 = vector.broadcast %85 : vector<1x10xf32> to vector<32x10xf32>
    %87 = arith.addf %84, %86 : vector<32x10xf32>
    %c0_43 = arith.constant 0 : index
    %c0_44 = arith.constant 0 : index
    %88 = vector.load %arg12[%c0_43, %c0_44] : memref<32x10xf32, #tpu.memory_space<vmem>>, vector<32x10xf32>
    tpu.vector_store %arg12[%c0_43, %c0_44], %87 {strides = array<i32>} : memref<32x10xf32, #tpu.memory_space<vmem>>, vector<32x10xf32>,
    return
  }
  func.func @transform_0(%arg0: i32) -> (i32, i32, i32) {
    %c0_i32 = arith.constant 0 : i32
    %c0_i32_0 = arith.constant 0 : i32
    %c0_i32_1 = arith.constant 0 : i32
    return %c0_i32, %arg0, %c0_i32_0 : i32, i32, i32
  }
  func.func @transform_1(%arg0: i32) -> (i32, i32) {
    %c0_i32 = arith.constant 0 : i32
    %c0_i32_0 = arith.constant 0 : i32
    %c0_i32_1 = arith.constant 0 : i32
    return %c0_i32, %c0_i32_0 : i32, i32
  }
  func.func @transform_2(%arg0: i32) -> (i32, i32) {
    %c0_i32 = arith.constant 0 : i32
    %c0_i32_0 = arith.constant 0 : i32
    %c0_i32_1 = arith.constant 0 : i32
    return %c0_i32, %c0_i32_0 : i32, i32
  }
  func.func @transform_3(%arg0: i32) -> (i32, i32, i32) {
    %c0_i32 = arith.constant 0 : i32
    %c0_i32_0 = arith.constant 0 : i32
    %c0_i32_1 = arith.constant 0 : i32
    %c0_i32_2 = arith.constant 0 : i32
    return %c0_i32, %c0_i32_0, %c0_i32_1 : i32, i32, i32
  }
  func.func @transform_4(%arg0: i32) -> (i32, i32) {
    %c0_i32 = arith.constant 0 : i32
    %c0_i32_0 = arith.constant 0 : i32
    %c0_i32_1 = arith.constant 0 : i32
    return %c0_i32, %c0_i32_0 : i32, i32
  }
  func.func @transform_5(%arg0: i32) -> (i32, i32) {
    %c0_i32 = arith.constant 0 : i32
    %c0_i32_0 = arith.constant 0 : i32
    %c0_i32_1 = arith.constant 0 : i32
    return %c0_i32, %c0_i32_0 : i32, i32
  }
  func.func @transform_6(%arg0: i32) -> (i32, i32) {
    %c0_i32 = arith.constant 0 : i32
    %c0_i32_0 = arith.constant 0 : i32
    %c0_i32_1 = arith.constant 0 : i32
    return %c0_i32, %c0_i32_0 : i32, i32
  }
  func.func @transform_7(%arg0: i32) -> (i32, i32) {
    %c0_i32 = arith.constant 0 : i32
    %c0_i32_0 = arith.constant 0 : i32
    %c0_i32_1 = arith.constant 0 : i32
    return %c0_i32, %c0_i32_0 : i32, i32
  }
  func.func @transform_8(%arg0: i32) -> (i32, i32) {
    %c0_i32 = arith.constant 0 : i32
    %c0_i32_0 = arith.constant 0 : i32
    %c0_i32_1 = arith.constant 0 : i32
    return %c0_i32, %c0_i32_0 : i32, i32
  }
  func.func @transform_9(%arg0: i32) -> (i32, i32) {
    %c0_i32 = arith.constant 0 : i32
    %c0_i32_0 = arith.constant 0 : i32
    %c0_i32_1 = arith.constant 0 : i32
    return %c0_i32, %c0_i32_0 : i32, i32
  }
  func.func @transform_10(%arg0: i32) -> (i32, i32) {
    %c0_i32 = arith.constant 0 : i32
    %c0_i32_0 = arith.constant 0 : i32
    %c0_i32_1 = arith.constant 0 : i32
    return %c0_i32, %c0_i32_0 : i32, i32
  }
  func.func @transform_11(%arg0: i32) -> (i32, i32) {
    %c0_i32 = arith.constant 0 : i32
    %c0_i32_0 = arith.constant 0 : i32
    return %arg0, %c0_i32 : i32, i32
  }
}

</mosaic_0001>

<bundles_post_ra>
// kernel: my_cnn_forward.1
= control target key start
LH: loop header
LB: loop body
LE: loop exit
PB: predicated region body
PF: predicated region fallthrough
CT: control target
= control target key end

     0   :  { %s6957_s17 = smov 0   ;;  %s6959_s18 = smov 0   ;;  %s10424_s0 = inlined_call_operand.vmem [shape: f32[24,64,140], index: 0, kind: input, shape index: {}]   ;;  %s10425_s1 = inlined_call_operand.vmem [shape: bf16[140,384], index: 1, kind: input, shape index: {}]   ;;  %s10426_s2 = inlined_call_operand.vmem [shape: f32[1,192], index: 2, kind: input, shape index: {}]   ;;  %s10427_s3 = inlined_call_operand.vmem [shape: bf16[5,192,128], index: 3, kind: input, shape index: {}]   ;;  %s10428_s4 = inlined_call_operand.vmem [shape: f32[1,64], index: 4, kind: input, shape index: {}]   ;;  %s10429_s5 = inlined_call_operand.vmem [shape: bf16[256,128], index: 5, kind: input, shape index: {}]   ;;  %s10430_s6 = inlined_call_operand.vmem [shape: f32[1,128], index: 6, kind: input, shape index: {}]   ;;  %s10431_s7 = inlined_call_operand.vmem [shape: bf16[128,64], index: 7, kind: input, shape index: {}]   ;;  %s10432_s8 = inlined_call_operand.vmem [shape: f32[1,64], index: 8, kind: input, shape index: {}]   ;;  %s10433_s9 = inlined_call_operand.vmem [shape: bf16[64,10], index: 9, kind: input, shape index: {}]   ;;  %s10434_s10 = inlined_call_operand.vmem [shape: f32[1,10], index: 10, kind: input, shape index: {}]   ;;  %s10435_s11 = inlined_call_operand.vmem [shape: f32[64,10], index: 11, kind: output, shape index: {}]  }
   0x1   :  { %s6961_s19 = smov 0  }
   0x2 LB: > { %s5941_s20 = sadd.s32 4294967295, %s6893_s19   ;;  %s6974_s21 = sadd.s32 1, %s6893_s19   ;;  %s6893_s19 = sphi %s6961_s19, %s11177_s19   ;;  %s6889_s18 = sphi %s6959_s18, %s11176_s18   ;;  %s6885_s17 = sphi %s6957_s17, %s11175_s17  }
   0x3   : > { %s25_s22 = ssub.s32 %s6893_s19, %s6974_s21  ;;  %s28_s23 = sadd.s32 1, %s6889_s18 }
   0x4   : > { %p26_p0 = scmp.eq.s32.totalorder %s25_s22, 0  ;;  %p35_p1 = scmp.ne.s32.totalorder %s6889_s18, %s6885_s17 }
   0x5   : > { %p36_p2 = scmp.eq.s32.totalorder %s6893_s19, 0  ;;  %p5944_p4 = scmp.ge.s32.totalorder %s6893_s19, 2 }
   0x6   : > { %s6983_s24 = scalar_select %p26_p0, %s6889_s18, %s28_s23  }
   0x7   : > { %p37_p3 = por %p36_p2, %p35_p1  ;;  %327 = sbr.rel (%p5944_p4) target bundleno = 115 (0x73), region = 56 }
   0xe   : > { %330 = sbr.rel (!%p37_p3) target bundleno = 115 (0x73), region = 60  ;;  %s332_s25 = sand.u32 (%p37_p3), 1, %s6889_s18  }
   0xf   : > { %s6348_s26 = sshll.u32 (%p37_p3), %s6893_s19, 6  ;;  %s6699_s27 = smul.u32 (%p37_p3), 1536, %s332_s25 }
  0x10   : > { %s6991_s30 = scalar_lea.vmem (%p37_p3), %s10424_s0, %s6348_s26 }
  0x11   : > { %v351_v0 = vld [vmem:[%s6991_s30] sm:$0xff] (%p37_p3)  ;;  %v353_v1 = vld [vmem:[%s6991_s30 + $0x8] sm:$0xff] (%p37_p3)  ;;  %v355_v2 = vld [vmem:[%s6991_s30 + $0x10] sm:$0xff] (%p37_p3)  ;;  %s6999_s12 = scalar_lea.vmem (%p37_p3), [#allocation2], %s6699_s27 }
  0x12   : > { %v357_v3 = vld [vmem:[%s6991_s30 + $0x18] sm:$0xff] (%p37_p3)  ;;  %v359_v4 = vld [vmem:[%s6991_s30 + $0x20] sm:$0xff] (%p37_p3)  ;;  %v361_v5 = vld [vmem:[%s6991_s30 + $0x28] sm:$0xff] (%p37_p3)  ;;  %352 = vst [vmem:[%s6999_s12] sm:$0xff] (%p37_p3), %v351_v0 }
  0x13   : > { %354 = vst [vmem:[%s6999_s12 + $0x8] sm:$0xff] (%p37_p3), %v353_v1  ;;  %356 = vst [vmem:[%s6999_s12 + $0x10] sm:$0xff] (%p37_p3), %v355_v2  ;;  %v363_v6 = vld [vmem:[%s6991_s30 + $0x30] sm:$0xff] (%p37_p3)  ;;  %v365_v7 = vld [vmem:[%s6991_s30 + $0x38] sm:$0xff] (%p37_p3) }
  0x14   : > { %358 = vst [vmem:[%s6999_s12 + $0x18] sm:$0xff] (%p37_p3), %v357_v3  ;;  %360 = vst [vmem:[%s6999_s12 + $0x20] sm:$0xff] (%p37_p3), %v359_v4  ;;  %v367_v8 = vld [vmem:[%s6991_s30 + $0x80] sm:$0xff] (%p37_p3)  ;;  %v369_v9 = vld [vmem:[%s6991_s30 + $0x88] sm:$0xff] (%p37_p3) }
  0x15   : > { %362 = vst [vmem:[%s6999_s12 + $0x28] sm:$0xff] %v361_v5  ;;  %364 = vst [vmem:[%s6999_s12 + $0x30] sm:$0xff] %v363_v6  ;;  %v371_v10 = vld [vmem:[%s6991_s30 + $0x90] sm:$0xff]  ;;  %v373_v11 = vld [vmem:[%s6991_s30 + $0x98] sm:$0xff] }
  0x16   : > { %366 = vst [vmem:[%s6999_s12 + $0x38] sm:$0xff] %v365_v7  ;;  %368 = vst [vmem:[%s6999_s12 + $0x40] sm:$0xff] %v367_v8  ;;  %v375_v12 = vld [vmem:[%s6991_s30 + $0xa0] sm:$0xff]  ;;  %v377_v13 = vld [vmem:[%s6991_s30 + $0xa8] sm:$0xff] }
  0x17   : > { %370 = vst [vmem:[%s6999_s12 + $0x48] sm:$0xff] %v369_v9  ;;  %372 = vst [vmem:[%s6999_s12 + $0x50] sm:$0xff] %v371_v10  ;;  %v379_v14 = vld [vmem:[%s6991_s30 + $0xb0] sm:$0xff]  ;;  %v381_v15 = vld [vmem:[%s6991_s30 + $0xb8] sm:$0xff] }
  0x18   : > { %374 = vst [vmem:[%s6999_s12 + $0x58] sm:$0xff] %v373_v11  ;;  %376 = vst [vmem:[%s6999_s12 + $0x60] sm:$0xff] %v375_v12  ;;  %v383_v16 = vld [vmem:[%s6991_s30 + $0x100] sm:$0xff]  ;;  %v385_v17 = vld [vmem:[%s6991_s30 + $0x108] sm:$0xff] }
  0x19   : > { %378 = vst [vmem:[%s6999_s12 + $0x68] sm:$0xff] %v377_v13  ;;  %380 = vst [vmem:[%s6999_s12 + $0x70] sm:$0xff] %v379_v14  ;;  %v387_v18 = vld [vmem:[%s6991_s30 + $0x110] sm:$0xff]  ;;  %v389_v19 = vld [vmem:[%s6991_s30 + $0x118] sm:$0xff] }
  0x1a   : > { %382 = vst [vmem:[%s6999_s12 + $0x78] sm:$0xff] %v381_v15  ;;  %384 = vst [vmem:[%s6999_s12 + $0x80] sm:$0xff] %v383_v16  ;;  %v391_v20 = vld [vmem:[%s6991_s30 + $0x120] sm:$0xff]  ;;  %v393_v21 = vld [vmem:[%s6991_s30 + $0x128] sm:$0xff] }
  0x1b   : > { %386 = vst [vmem:[%s6999_s12 + $0x88] sm:$0xff] %v385_v17  ;;  %388 = vst [vmem:[%s6999_s12 + $0x90] sm:$0xff] %v387_v18  ;;  %v395_v22 = vld [vmem:[%s6991_s30 + $0x130] sm:$0xff]  ;;  %v397_v23 = vld [vmem:[%s6991_s30 + $0x138] sm:$0xff] }
  0x1c   : > { %390 = vst [vmem:[%s6999_s12 + $0x98] sm:$0xff] %v389_v19  ;;  %392 = vst [vmem:[%s6999_s12 + $0xa0] sm:$0xff] %v391_v20  ;;  %v399_v24 = vld [vmem:[%s6991_s30 + $0x180] sm:$0xff]  ;;  %v401_v25 = vld [vmem:[%s6991_s30 + $0x188] sm:$0xff] }
  0x1d   : > { %394 = vst [vmem:[%s6999_s12 + $0xa8] sm:$0xff] %v393_v21  ;;  %396 = vst [vmem:[%s6999_s12 + $0xb0] sm:$0xff] %v395_v22  ;;  %v403_v26 = vld [vmem:[%s6991_s30 + $0x190] sm:$0xff]  ;;  %v405_v27 = vld [vmem:[%s6991_s30 + $0x198] sm:$0xff] }
  0x1e   : > { %398 = vst [vmem:[%s6999_s12 + $0xb8] sm:$0xff] %v397_v23  ;;  %400 = vst [vmem:[%s6999_s12 + $0xc0] sm:$0xff] %v399_v24  ;;  %v407_v28 = vld [vmem:[%s6991_s30 + $0x1a0] sm:$0xff]  ;;  %v409_v29 = vld [vmem:[%s6991_s30 + $0x1a8] sm:$0xff] }
  0x1f   : > { %402 = vst [vmem:[%s6999_s12 + $0xc8] sm:$0xff] %v401_v25  ;;  %404 = vst [vmem:[%s6999_s12 + $0xd0] sm:$0xff] %v403_v26  ;;  %v411_v30 = vld [vmem:[%s6991_s30 + $0x1b0] sm:$0xff]  ;;  %v413_v31 = vld [vmem:[%s6991_s30 + $0x1b8] sm:$0xff] }
  0x20   : > { %406 = vst [vmem:[%s6999_s12 + $0xd8] sm:$0xff] %v405_v27  ;;  %408 = vst [vmem:[%s6999_s12 + $0xe0] sm:$0xff] %v407_v28  ;;  %v415_v32 = vld [vmem:[%s6991_s30 + $0x200] sm:$0xff]  ;;  %v417_v33 = vld [vmem:[%s6991_s30 + $0x208] sm:$0xff] }
  0x21   : > { %410 = vst [vmem:[%s6999_s12 + $0xe8] sm:$0xff] %v409_v29  ;;  %412 = vst [vmem:[%s6999_s12 + $0xf0] sm:$0xff] %v411_v30  ;;  %v419_v34 = vld [vmem:[%s6991_s30 + $0x210] sm:$0xff]  ;;  %v421_v35 = vld [vmem:[%s6991_s30 + $0x218] sm:$0xff] }
  0x22   : > { %414 = vst [vmem:[%s6999_s12 + $0xf8] sm:$0xff] %v413_v31  ;;  %416 = vst [vmem:[%s6999_s12 + $0x100] sm:$0xff] %v415_v32  ;;  %v423_v36 = vld [vmem:[%s6991_s30 + $0x220] sm:$0xff]  ;;  %v425_v37 = vld [vmem:[%s6991_s30 + $0x228] sm:$0xff] }
  0x23   : > { %418 = vst [vmem:[%s6999_s12 + $0x108] sm:$0xff] %v417_v33  ;;  %420 = vst [vmem:[%s6999_s12 + $0x110] sm:$0xff] %v419_v34  ;;  %v427_v38 = vld [vmem:[%s6991_s30 + $0x230] sm:$0xff]  ;;  %v429_v39 = vld [vmem:[%s6991_s30 + $0x238] sm:$0xff] }
  0x24   : > { %422 = vst [vmem:[%s6999_s12 + $0x118] sm:$0xff] %v421_v35  ;;  %424 = vst [vmem:[%s6999_s12 + $0x120] sm:$0xff] %v423_v36  ;;  %v431_v40 = vld [vmem:[%s6991_s30 + $0x280] sm:$0xff]  ;;  %v433_v41 = vld [vmem:[%s6991_s30 + $0x288] sm:$0xff] }
  0x25   : > { %426 = vst [vmem:[%s6999_s12 + $0x128] sm:$0xff] %v425_v37  ;;  %428 = vst [vmem:[%s6999_s12 + $0x130] sm:$0xff] %v427_v38  ;;  %v435_v42 = vld [vmem:[%s6991_s30 + $0x290] sm:$0xff]  ;;  %v437_v43 = vld [vmem:[%s6991_s30 + $0x298] sm:$0xff] }
  0x26   : > { %430 = vst [vmem:[%s6999_s12 + $0x138] sm:$0xff] %v429_v39  ;;  %432 = vst [vmem:[%s6999_s12 + $0x140] sm:$0xff] %v431_v40  ;;  %v439_v44 = vld [vmem:[%s6991_s30 + $0x2a0] sm:$0xff]  ;;  %v441_v45 = vld [vmem:[%s6991_s30 + $0x2a8] sm:$0xff] }
  0x27   : > { %434 = vst [vmem:[%s6999_s12 + $0x148] sm:$0xff] %v433_v41  ;;  %436 = vst [vmem:[%s6999_s12 + $0x150] sm:$0xff] %v435_v42  ;;  %v443_v46 = vld [vmem:[%s6991_s30 + $0x2b0] sm:$0xff]  ;;  %v445_v47 = vld [vmem:[%s6991_s30 + $0x2b8] sm:$0xff] }
  0x28   : > { %438 = vst [vmem:[%s6999_s12 + $0x158] sm:$0xff] %v437_v43  ;;  %440 = vst [vmem:[%s6999_s12 + $0x160] sm:$0xff] %v439_v44  ;;  %v447_v48 = vld [vmem:[%s6991_s30 + $0x300] sm:$0xff]  ;;  %v449_v49 = vld [vmem:[%s6991_s30 + $0x308] sm:$0xff] }
  0x29   : > { %442 = vst [vmem:[%s6999_s12 + $0x168] sm:$0xff] %v441_v45  ;;  %444 = vst [vmem:[%s6999_s12 + $0x170] sm:$0xff] %v443_v46  ;;  %v451_v50 = vld [vmem:[%s6991_s30 + $0x310] sm:$0xff]  ;;  %v453_v51 = vld [vmem:[%s6991_s30 + $0x318] sm:$0xff] }
  0x2a   : > { %446 = vst [vmem:[%s6999_s12 + $0x178] sm:$0xff] %v445_v47  ;;  %448 = vst [vmem:[%s6999_s12 + $0x180] sm:$0xff] %v447_v48  ;;  %v455_v52 = vld [vmem:[%s6991_s30 + $0x320] sm:$0xff]  ;;  %v457_v53 = vld [vmem:[%s6991_s30 + $0x328] sm:$0xff] }
  0x2b   : > { %450 = vst [vmem:[%s6999_s12 + $0x188] sm:$0xff] %v449_v49  ;;  %452 = vst [vmem:[%s6999_s12 + $0x190] sm:$0xff] %v451_v50  ;;  %v459_v54 = vld [vmem:[%s6991_s30 + $0x330] sm:$0xff]  ;;  %v461_v55 = vld [vmem:[%s6991_s30 + $0x338] sm:$0xff] }
  0x2c   : > { %454 = vst [vmem:[%s6999_s12 + $0x198] sm:$0xff] %v453_v51  ;;  %456 = vst [vmem:[%s6999_s12 + $0x1a0] sm:$0xff] %v455_v52  ;;  %v463_v56 = vld [vmem:[%s6991_s30 + $0x380] sm:$0xff]  ;;  %v465_v57 = vld [vmem:[%s6991_s30 + $0x388] sm:$0xff] }
  0x2d   : > { %458 = vst [vmem:[%s6999_s12 + $0x1a8] sm:$0xff] %v457_v53  ;;  %460 = vst [vmem:[%s6999_s12 + $0x1b0] sm:$0xff] %v459_v54  ;;  %v467_v58 = vld [vmem:[%s6991_s30 + $0x390] sm:$0xff]  ;;  %v469_v59 = vld [vmem:[%s6991_s30 + $0x398] sm:$0xff] }
  0x2e   : > { %462 = vst [vmem:[%s6999_s12 + $0x1b8] sm:$0xff] %v461_v55  ;;  %464 = vst [vmem:[%s6999_s12 + $0x1c0] sm:$0xff] %v463_v56  ;;  %v471_v60 = vld [vmem:[%s6991_s30 + $0x3a0] sm:$0xff]  ;;  %v473_v61 = vld [vmem:[%s6991_s30 + $0x3a8] sm:$0xff] }
  0x2f   : > { %466 = vst [vmem:[%s6999_s12 + $0x1c8] sm:$0xff] %v465_v57  ;;  %468 = vst [vmem:[%s6999_s12 + $0x1d0] sm:$0xff] %v467_v58  ;;  %v475_v62 = vld [vmem:[%s6991_s30 + $0x3b0] sm:$0xff]  ;;  %v477_v63 = vld [vmem:[%s6991_s30 + $0x3b8] sm:$0xff] }
  0x30   : > { %470 = vst [vmem:[%s6999_s12 + $0x1d8] sm:$0xff] %v469_v59  ;;  %472 = vst [vmem:[%s6999_s12 + $0x1e0] sm:$0xff] %v471_v60  ;;  %v479_v0 = vld [vmem:[%s6991_s30 + $0x400] sm:$0xff]  ;;  %v481_v1 = vld [vmem:[%s6991_s30 + $0x408] sm:$0xff] }
  0x31   : > { %474 = vst [vmem:[%s6999_s12 + $0x1e8] sm:$0xff] %v473_v61  ;;  %476 = vst [vmem:[%s6999_s12 + $0x1f0] sm:$0xff] %v475_v62  ;;  %v483_v2 = vld [vmem:[%s6991_s30 + $0x410] sm:$0xff]  ;;  %v485_v3 = vld [vmem:[%s6991_s30 + $0x418] sm:$0xff] }
  0x32   : > { %478 = vst [vmem:[%s6999_s12 + $0x1f8] sm:$0xff] %v477_v63  ;;  %480 = vst [vmem:[%s6999_s12 + $0x200] sm:$0xff] %v479_v0  ;;  %v487_v4 = vld [vmem:[%s6991_s30 + $0x420] sm:$0xff]  ;;  %v489_v5 = vld [vmem:[%s6991_s30 + $0x428] sm:$0xff] }
  0x33   : > { %482 = vst [vmem:[%s6999_s12 + $0x208] sm:$0xff] %v481_v1  ;;  %484 = vst [vmem:[%s6999_s12 + $0x210] sm:$0xff] %v483_v2  ;;  %v491_v6 = vld [vmem:[%s6991_s30 + $0x430] sm:$0xff]  ;;  %v493_v7 = vld [vmem:[%s6991_s30 + $0x438] sm:$0xff] }
  0x34   : > { %486 = vst [vmem:[%s6999_s12 + $0x218] sm:$0xff] %v485_v3  ;;  %488 = vst [vmem:[%s6999_s12 + $0x220] sm:$0xff] %v487_v4  ;;  %v495_v8 = vld [vmem:[%s6991_s30 + $0x480] sm:$0xff]  ;;  %v497_v9 = vld [vmem:[%s6991_s30 + $0x488] sm:$0xff] }
  0x35   : > { %490 = vst [vmem:[%s6999_s12 + $0x228] sm:$0xff] %v489_v5  ;;  %492 = vst [vmem:[%s6999_s12 + $0x230] sm:$0xff] %v491_v6  ;;  %v499_v10 = vld [vmem:[%s6991_s30 + $0x490] sm:$0xff]  ;;  %v501_v11 = vld [vmem:[%s6991_s30 + $0x498] sm:$0xff] }
  0x36   : > { %494 = vst [vmem:[%s6999_s12 + $0x238] sm:$0xff] %v493_v7  ;;  %496 = vst [vmem:[%s6999_s12 + $0x240] sm:$0xff] %v495_v8  ;;  %v503_v12 = vld [vmem:[%s6991_s30 + $0x4a0] sm:$0xff]  ;;  %v505_v13 = vld [vmem:[%s6991_s30 + $0x4a8] sm:$0xff] }
  0x37   : > { %498 = vst [vmem:[%s6999_s12 + $0x248] sm:$0xff] %v497_v9  ;;  %500 = vst [vmem:[%s6999_s12 + $0x250] sm:$0xff] %v499_v10  ;;  %v507_v14 = vld [vmem:[%s6991_s30 + $0x4b0] sm:$0xff]  ;;  %v509_v15 = vld [vmem:[%s6991_s30 + $0x4b8] sm:$0xff] }
  0x38   : > { %502 = vst [vmem:[%s6999_s12 + $0x258] sm:$0xff] %v501_v11  ;;  %504 = vst [vmem:[%s6999_s12 + $0x260] sm:$0xff] %v503_v12  ;;  %v511_v16 = vld [vmem:[%s6991_s30 + $0x500] sm:$0xff]  ;;  %v513_v17 = vld [vmem:[%s6991_s30 + $0x508] sm:$0xff] }
  0x39   : > { %506 = vst [vmem:[%s6999_s12 + $0x268] sm:$0xff] %v505_v13  ;;  %508 = vst [vmem:[%s6999_s12 + $0x270] sm:$0xff] %v507_v14  ;;  %v515_v18 = vld [vmem:[%s6991_s30 + $0x510] sm:$0xff]  ;;  %v517_v19 = vld [vmem:[%s6991_s30 + $0x518] sm:$0xff] }
  0x3a   : > { %510 = vst [vmem:[%s6999_s12 + $0x278] sm:$0xff] %v509_v15  ;;  %512 = vst [vmem:[%s6999_s12 + $0x280] sm:$0xff] %v511_v16  ;;  %v519_v20 = vld [vmem:[%s6991_s30 + $0x520] sm:$0xff]  ;;  %v521_v21 = vld [vmem:[%s6991_s30 + $0x528] sm:$0xff] }
  0x3b   : > { %514 = vst [vmem:[%s6999_s12 + $0x288] sm:$0xff] %v513_v17  ;;  %516 = vst [vmem:[%s6999_s12 + $0x290] sm:$0xff] %v515_v18  ;;  %v523_v22 = vld [vmem:[%s6991_s30 + $0x530] sm:$0xff]  ;;  %v525_v23 = vld [vmem:[%s6991_s30 + $0x538] sm:$0xff] }
  0x3c   : > { %518 = vst [vmem:[%s6999_s12 + $0x298] sm:$0xff] %v517_v19  ;;  %520 = vst [vmem:[%s6999_s12 + $0x2a0] sm:$0xff] %v519_v20  ;;  %v527_v24 = vld [vmem:[%s6991_s30 + $0x580] sm:$0xff]  ;;  %v529_v25 = vld [vmem:[%s6991_s30 + $0x588] sm:$0xff] }
  0x3d   : > { %522 = vst [vmem:[%s6999_s12 + $0x2a8] sm:$0xff] %v521_v21  ;;  %524 = vst [vmem:[%s6999_s12 + $0x2b0] sm:$0xff] %v523_v22  ;;  %v531_v26 = vld [vmem:[%s6991_s30 + $0x590] sm:$0xff]  ;;  %v533_v27 = vld [vmem:[%s6991_s30 + $0x598] sm:$0xff] }
  0x3e   : > { %526 = vst [vmem:[%s6999_s12 + $0x2b8] sm:$0xff] %v525_v23  ;;  %528 = vst [vmem:[%s6999_s12 + $0x2c0] sm:$0xff] %v527_v24  ;;  %v535_v28 = vld [vmem:[%s6991_s30 + $0x5a0] sm:$0xff]  ;;  %v537_v29 = vld [vmem:[%s6991_s30 + $0x5a8] sm:$0xff] }
  0x3f   : > { %530 = vst [vmem:[%s6999_s12 + $0x2c8] sm:$0xff] %v529_v25  ;;  %532 = vst [vmem:[%s6999_s12 + $0x2d0] sm:$0xff] %v531_v26  ;;  %v539_v30 = vld [vmem:[%s6991_s30 + $0x5b0] sm:$0xff]  ;;  %v541_v31 = vld [vmem:[%s6991_s30 + $0x5b8] sm:$0xff] }
  0x40   : > { %534 = vst [vmem:[%s6999_s12 + $0x2d8] sm:$0xff] %v533_v27  ;;  %536 = vst [vmem:[%s6999_s12 + $0x2e0] sm:$0xff] %v535_v28  ;;  %v543_v32 = vld [vmem:[%s6991_s30 + $0x600] sm:$0xff]  ;;  %v545_v33 = vld [vmem:[%s6991_s30 + $0x608] sm:$0xff] }
  0x41   : > { %538 = vst [vmem:[%s6999_s12 + $0x2e8] sm:$0xff] %v537_v29  ;;  %540 = vst [vmem:[%s6999_s12 + $0x2f0] sm:$0xff] %v539_v30  ;;  %v547_v34 = vld [vmem:[%s6991_s30 + $0x610] sm:$0xff]  ;;  %v549_v35 = vld [vmem:[%s6991_s30 + $0x618] sm:$0xff] }
  0x42   : > { %542 = vst [vmem:[%s6999_s12 + $0x2f8] sm:$0xff] %v541_v31  ;;  %544 = vst [vmem:[%s6999_s12 + $0x300] sm:$0xff] %v543_v32  ;;  %v551_v36 = vld [vmem:[%s6991_s30 + $0x620] sm:$0xff]  ;;  %v553_v37 = vld [vmem:[%s6991_s30 + $0x628] sm:$0xff] }
  0x43   : > { %546 = vst [vmem:[%s6999_s12 + $0x308] sm:$0xff] %v545_v33  ;;  %548 = vst [vmem:[%s6999_s12 + $0x310] sm:$0xff] %v547_v34  ;;  %v555_v38 = vld [vmem:[%s6991_s30 + $0x630] sm:$0xff]  ;;  %v557_v39 = vld [vmem:[%s6991_s30 + $0x638] sm:$0xff] }
  0x44   : > { %550 = vst [vmem:[%s6999_s12 + $0x318] sm:$0xff] %v549_v35  ;;  %552 = vst [vmem:[%s6999_s12 + $0x320] sm:$0xff] %v551_v36  ;;  %v559_v40 = vld [vmem:[%s6991_s30 + $0x680] sm:$0xff]  ;;  %v561_v41 = vld [vmem:[%s6991_s30 + $0x688] sm:$0xff] }
  0x45   : > { %554 = vst [vmem:[%s6999_s12 + $0x328] sm:$0xff] %v553_v37  ;;  %556 = vst [vmem:[%s6999_s12 + $0x330] sm:$0xff] %v555_v38  ;;  %v563_v42 = vld [vmem:[%s6991_s30 + $0x690] sm:$0xff]  ;;  %v565_v43 = vld [vmem:[%s6991_s30 + $0x698] sm:$0xff] }
  0x46   : > { %558 = vst [vmem:[%s6999_s12 + $0x338] sm:$0xff] %v557_v39  ;;  %560 = vst [vmem:[%s6999_s12 + $0x340] sm:$0xff] %v559_v40  ;;  %v567_v44 = vld [vmem:[%s6991_s30 + $0x6a0] sm:$0xff]  ;;  %v569_v45 = vld [vmem:[%s6991_s30 + $0x6a8] sm:$0xff] }
  0x47   : > { %562 = vst [vmem:[%s6999_s12 + $0x348] sm:$0xff] %v561_v41  ;;  %564 = vst [vmem:[%s6999_s12 + $0x350] sm:$0xff] %v563_v42  ;;  %v571_v46 = vld [vmem:[%s6991_s30 + $0x6b0] sm:$0xff]  ;;  %v573_v47 = vld [vmem:[%s6991_s30 + $0x6b8] sm:$0xff] }
  0x48   : > { %566 = vst [vmem:[%s6999_s12 + $0x358] sm:$0xff] %v565_v43  ;;  %568 = vst [vmem:[%s6999_s12 + $0x360] sm:$0xff] %v567_v44  ;;  %v575_v48 = vld [vmem:[%s6991_s30 + $0x700] sm:$0xff]  ;;  %v577_v49 = vld [vmem:[%s6991_s30 + $0x708] sm:$0xff] }
  0x49   : > { %570 = vst [vmem:[%s6999_s12 + $0x368] sm:$0xff] %v569_v45  ;;  %572 = vst [vmem:[%s6999_s12 + $0x370] sm:$0xff] %v571_v46  ;;  %v579_v50 = vld [vmem:[%s6991_s30 + $0x710] sm:$0xff]  ;;  %v581_v51 = vld [vmem:[%s6991_s30 + $0x718] sm:$0xff] }
  0x4a   : > { %574 = vst [vmem:[%s6999_s12 + $0x378] sm:$0xff] %v573_v47  ;;  %576 = vst [vmem:[%s6999_s12 + $0x380] sm:$0xff] %v575_v48  ;;  %v583_v52 = vld [vmem:[%s6991_s30 + $0x720] sm:$0xff]  ;;  %v585_v53 = vld [vmem:[%s6991_s30 + $0x728] sm:$0xff] }
  0x4b   : > { %578 = vst [vmem:[%s6999_s12 + $0x388] sm:$0xff] %v577_v49  ;;  %580 = vst [vmem:[%s6999_s12 + $0x390] sm:$0xff] %v579_v50  ;;  %v587_v54 = vld [vmem:[%s6991_s30 + $0x730] sm:$0xff]  ;;  %v589_v55 = vld [vmem:[%s6991_s30 + $0x738] sm:$0xff] }
  0x4c   : > { %582 = vst [vmem:[%s6999_s12 + $0x398] sm:$0xff] %v581_v51  ;;  %584 = vst [vmem:[%s6999_s12 + $0x3a0] sm:$0xff] %v583_v52  ;;  %v591_v56 = vld [vmem:[%s6991_s30 + $0x780] sm:$0xff]  ;;  %v593_v57 = vld [vmem:[%s6991_s30 + $0x788] sm:$0xff] }
  0x4d   : > { %586 = vst [vmem:[%s6999_s12 + $0x3a8] sm:$0xff] %v585_v53  ;;  %588 = vst [vmem:[%s6999_s12 + $0x3b0] sm:$0xff] %v587_v54  ;;  %v595_v58 = vld [vmem:[%s6991_s30 + $0x790] sm:$0xff]  ;;  %v597_v59 = vld [vmem:[%s6991_s30 + $0x798] sm:$0xff] }
  0x4e   : > { %590 = vst [vmem:[%s6999_s12 + $0x3b8] sm:$0xff] %v589_v55  ;;  %592 = vst [vmem:[%s6999_s12 + $0x3c0] sm:$0xff] %v591_v56  ;;  %v599_v60 = vld [vmem:[%s6991_s30 + $0x7a0] sm:$0xff]  ;;  %v601_v61 = vld [vmem:[%s6991_s30 + $0x7a8] sm:$0xff] }
  0x4f   : > { %594 = vst [vmem:[%s6999_s12 + $0x3c8] sm:$0xff] %v593_v57  ;;  %596 = vst [vmem:[%s6999_s12 + $0x3d0] sm:$0xff] %v595_v58  ;;  %v603_v62 = vld [vmem:[%s6991_s30 + $0x7b0] sm:$0xff]  ;;  %v605_v63 = vld [vmem:[%s6991_s30 + $0x7b8] sm:$0xff] }
  0x50   : > { %598 = vst [vmem:[%s6999_s12 + $0x3d8] sm:$0xff] %v597_v59  ;;  %600 = vst [vmem:[%s6999_s12 + $0x3e0] sm:$0xff] %v599_v60  ;;  %v607_v0 = vld [vmem:[%s6991_s30 + $0x800] sm:$0xff]  ;;  %v609_v1 = vld [vmem:[%s6991_s30 + $0x808] sm:$0xff] }
  0x51   : > { %602 = vst [vmem:[%s6999_s12 + $0x3e8] sm:$0xff] %v601_v61  ;;  %604 = vst [vmem:[%s6999_s12 + $0x3f0] sm:$0xff] %v603_v62  ;;  %v611_v2 = vld [vmem:[%s6991_s30 + $0x810] sm:$0xff]  ;;  %v613_v3 = vld [vmem:[%s6991_s30 + $0x818] sm:$0xff] }
  0x52   : > { %606 = vst [vmem:[%s6999_s12 + $0x3f8] sm:$0xff] %v605_v63  ;;  %608 = vst [vmem:[%s6999_s12 + $0x400] sm:$0xff] %v607_v0  ;;  %v615_v4 = vld [vmem:[%s6991_s30 + $0x820] sm:$0xff]  ;;  %v617_v5 = vld [vmem:[%s6991_s30 + $0x828] sm:$0xff] }
  0x53   : > { %610 = vst [vmem:[%s6999_s12 + $0x408] sm:$0xff] %v609_v1  ;;  %612 = vst [vmem:[%s6999_s12 + $0x410] sm:$0xff] %v611_v2  ;;  %v619_v6 = vld [vmem:[%s6991_s30 + $0x830] sm:$0xff]  ;;  %v621_v7 = vld [vmem:[%s6991_s30 + $0x838] sm:$0xff] }
  0x54   : > { %614 = vst [vmem:[%s6999_s12 + $0x418] sm:$0xff] %v613_v3  ;;  %616 = vst [vmem:[%s6999_s12 + $0x420] sm:$0xff] %v615_v4  ;;  %v623_v8 = vld [vmem:[%s6991_s30 + $0x880] sm:$0xff]  ;;  %v625_v9 = vld [vmem:[%s6991_s30 + $0x888] sm:$0xff] }
  0x55   : > { %618 = vst [vmem:[%s6999_s12 + $0x428] sm:$0xff] %v617_v5  ;;  %620 = vst [vmem:[%s6999_s12 + $0x430] sm:$0xff] %v619_v6  ;;  %v627_v10 = vld [vmem:[%s6991_s30 + $0x890] sm:$0xff]  ;;  %v629_v11 = vld [vmem:[%s6991_s30 + $0x898] sm:$0xff] }
  0x56   : > { %622 = vst [vmem:[%s6999_s12 + $0x438] sm:$0xff] %v621_v7  ;;  %624 = vst [vmem:[%s6999_s12 + $0x440] sm:$0xff] %v623_v8  ;;  %v631_v12 = vld [vmem:[%s6991_s30 + $0x8a0] sm:$0xff]  ;;  %v633_v13 = vld [vmem:[%s6991_s30 + $0x8a8] sm:$0xff] }
  0x57   : > { %626 = vst [vmem:[%s6999_s12 + $0x448] sm:$0xff] %v625_v9  ;;  %628 = vst [vmem:[%s6999_s12 + $0x450] sm:$0xff] %v627_v10  ;;  %v635_v14 = vld [vmem:[%s6991_s30 + $0x8b0] sm:$0xff]  ;;  %v637_v15 = vld [vmem:[%s6991_s30 + $0x8b8] sm:$0xff] }
  0x58   : > { %630 = vst [vmem:[%s6999_s12 + $0x458] sm:$0xff] %v629_v11  ;;  %632 = vst [vmem:[%s6999_s12 + $0x460] sm:$0xff] %v631_v12  ;;  %v639_v16 = vld [vmem:[%s6991_s30 + $0x900] sm:$0xff]  ;;  %v641_v17 = vld [vmem:[%s6991_s30 + $0x908] sm:$0xff] }
  0x59   : > { %634 = vst [vmem:[%s6999_s12 + $0x468] sm:$0xff] %v633_v13  ;;  %636 = vst [vmem:[%s6999_s12 + $0x470] sm:$0xff] %v635_v14  ;;  %v643_v18 = vld [vmem:[%s6991_s30 + $0x910] sm:$0xff]  ;;  %v645_v19 = vld [vmem:[%s6991_s30 + $0x918] sm:$0xff] }
  0x5a   : > { %638 = vst [vmem:[%s6999_s12 + $0x478] sm:$0xff] %v637_v15  ;;  %640 = vst [vmem:[%s6999_s12 + $0x480] sm:$0xff] %v639_v16  ;;  %v647_v20 = vld [vmem:[%s6991_s30 + $0x920] sm:$0xff]  ;;  %v649_v21 = vld [vmem:[%s6991_s30 + $0x928] sm:$0xff] }
  0x5b   : > { %642 = vst [vmem:[%s6999_s12 + $0x488] sm:$0xff] %v641_v17  ;;  %644 = vst [vmem:[%s6999_s12 + $0x490] sm:$0xff] %v643_v18  ;;  %v651_v22 = vld [vmem:[%s6991_s30 + $0x930] sm:$0xff]  ;;  %v653_v23 = vld [vmem:[%s6991_s30 + $0x938] sm:$0xff] }
  0x5c   : > { %646 = vst [vmem:[%s6999_s12 + $0x498] sm:$0xff] %v645_v19  ;;  %648 = vst [vmem:[%s6999_s12 + $0x4a0] sm:$0xff] %v647_v20  ;;  %v655_v24 = vld [vmem:[%s6991_s30 + $0x980] sm:$0xff]  ;;  %v657_v25 = vld [vmem:[%s6991_s30 + $0x988] sm:$0xff] }
  0x5d   : > { %650 = vst [vmem:[%s6999_s12 + $0x4a8] sm:$0xff] %v649_v21  ;;  %652 = vst [vmem:[%s6999_s12 + $0x4b0] sm:$0xff] %v651_v22  ;;  %v659_v26 = vld [vmem:[%s6991_s30 + $0x990] sm:$0xff]  ;;  %v661_v27 = vld [vmem:[%s6991_s30 + $0x998] sm:$0xff] }
  0x5e   : > { %654 = vst [vmem:[%s6999_s12 + $0x4b8] sm:$0xff] %v653_v23  ;;  %656 = vst [vmem:[%s6999_s12 + $0x4c0] sm:$0xff] %v655_v24  ;;  %v663_v28 = vld [vmem:[%s6991_s30 + $0x9a0] sm:$0xff]  ;;  %v665_v29 = vld [vmem:[%s6991_s30 + $0x9a8] sm:$0xff] }
  0x5f   : > { %658 = vst [vmem:[%s6999_s12 + $0x4c8] sm:$0xff] %v657_v25  ;;  %660 = vst [vmem:[%s6999_s12 + $0x4d0] sm:$0xff] %v659_v26  ;;  %v667_v30 = vld [vmem:[%s6991_s30 + $0x9b0] sm:$0xff]  ;;  %v669_v31 = vld [vmem:[%s6991_s30 + $0x9b8] sm:$0xff] }
  0x60   : > { %662 = vst [vmem:[%s6999_s12 + $0x4d8] sm:$0xff] %v661_v27  ;;  %664 = vst [vmem:[%s6999_s12 + $0x4e0] sm:$0xff] %v663_v28  ;;  %v671_v32 = vld [vmem:[%s6991_s30 + $0xa00] sm:$0xff]  ;;  %v673_v33 = vld [vmem:[%s6991_s30 + $0xa08] sm:$0xff] }
  0x61   : > { %666 = vst [vmem:[%s6999_s12 + $0x4e8] sm:$0xff] %v665_v29  ;;  %668 = vst [vmem:[%s6999_s12 + $0x4f0] sm:$0xff] %v667_v30  ;;  %v675_v34 = vld [vmem:[%s6991_s30 + $0xa10] sm:$0xff]  ;;  %v677_v35 = vld [vmem:[%s6991_s30 + $0xa18] sm:$0xff] }
  0x62   : > { %670 = vst [vmem:[%s6999_s12 + $0x4f8] sm:$0xff] %v669_v31  ;;  %672 = vst [vmem:[%s6999_s12 + $0x500] sm:$0xff] %v671_v32  ;;  %v679_v36 = vld [vmem:[%s6991_s30 + $0xa20] sm:$0xff]  ;;  %v681_v37 = vld [vmem:[%s6991_s30 + $0xa28] sm:$0xff] }
  0x63   : > { %674 = vst [vmem:[%s6999_s12 + $0x508] sm:$0xff] %v673_v33  ;;  %676 = vst [vmem:[%s6999_s12 + $0x510] sm:$0xff] %v675_v34  ;;  %v683_v38 = vld [vmem:[%s6991_s30 + $0xa30] sm:$0xff]  ;;  %v685_v39 = vld [vmem:[%s6991_s30 + $0xa38] sm:$0xff] }
  0x64   : > { %678 = vst [vmem:[%s6999_s12 + $0x518] sm:$0xff] %v677_v35  ;;  %680 = vst [vmem:[%s6999_s12 + $0x520] sm:$0xff] %v679_v36  ;;  %v687_v40 = vld [vmem:[%s6991_s30 + $0xa80] sm:$0xff]  ;;  %v689_v41 = vld [vmem:[%s6991_s30 + $0xa88] sm:$0xff] }
  0x65   : > { %682 = vst [vmem:[%s6999_s12 + $0x528] sm:$0xff] %v681_v37  ;;  %684 = vst [vmem:[%s6999_s12 + $0x530] sm:$0xff] %v683_v38  ;;  %v691_v42 = vld [vmem:[%s6991_s30 + $0xa90] sm:$0xff]  ;;  %v693_v43 = vld [vmem:[%s6991_s30 + $0xa98] sm:$0xff] }
  0x66   : > { %686 = vst [vmem:[%s6999_s12 + $0x538] sm:$0xff] %v685_v39  ;;  %688 = vst [vmem:[%s6999_s12 + $0x540] sm:$0xff] %v687_v40  ;;  %v695_v44 = vld [vmem:[%s6991_s30 + $0xaa0] sm:$0xff]  ;;  %v697_v45 = vld [vmem:[%s6991_s30 + $0xaa8] sm:$0xff] }
  0x67   : > { %690 = vst [vmem:[%s6999_s12 + $0x548] sm:$0xff] %v689_v41  ;;  %692 = vst [vmem:[%s6999_s12 + $0x550] sm:$0xff] %v691_v42  ;;  %v699_v46 = vld [vmem:[%s6991_s30 + $0xab0] sm:$0xff]  ;;  %v701_v47 = vld [vmem:[%s6991_s30 + $0xab8] sm:$0xff] }
  0x68   : > { %694 = vst [vmem:[%s6999_s12 + $0x558] sm:$0xff] %v693_v43  ;;  %696 = vst [vmem:[%s6999_s12 + $0x560] sm:$0xff] %v695_v44  ;;  %v703_v48 = vld [vmem:[%s6991_s30 + $0xb00] sm:$0xff]  ;;  %v705_v49 = vld [vmem:[%s6991_s30 + $0xb08] sm:$0xff] }
  0x69   : > { %698 = vst [vmem:[%s6999_s12 + $0x568] sm:$0xff] %v697_v45  ;;  %700 = vst [vmem:[%s6999_s12 + $0x570] sm:$0xff] %v699_v46  ;;  %v707_v50 = vld [vmem:[%s6991_s30 + $0xb10] sm:$0xff]  ;;  %v709_v51 = vld [vmem:[%s6991_s30 + $0xb18] sm:$0xff] }
  0x6a   : > { %702 = vst [vmem:[%s6999_s12 + $0x578] sm:$0xff] %v701_v47  ;;  %704 = vst [vmem:[%s6999_s12 + $0x580] sm:$0xff] %v703_v48  ;;  %v711_v52 = vld [vmem:[%s6991_s30 + $0xb20] sm:$0xff]  ;;  %v713_v53 = vld [vmem:[%s6991_s30 + $0xb28] sm:$0xff] }
  0x6b   : > { %706 = vst [vmem:[%s6999_s12 + $0x588] sm:$0xff] %v705_v49  ;;  %708 = vst [vmem:[%s6999_s12 + $0x590] sm:$0xff] %v707_v50  ;;  %v715_v54 = vld [vmem:[%s6991_s30 + $0xb30] sm:$0xff]  ;;  %v717_v55 = vld [vmem:[%s6991_s30 + $0xb38] sm:$0xff] }
  0x6c   : > { %710 = vst [vmem:[%s6999_s12 + $0x598] sm:$0xff] %v709_v51  ;;  %712 = vst [vmem:[%s6999_s12 + $0x5a0] sm:$0xff] %v711_v52  ;;  %v719_v56 = vld [vmem:[%s6991_s30 + $0xb80] sm:$0xff]  ;;  %v721_v57 = vld [vmem:[%s6991_s30 + $0xb88] sm:$0xff] }
  0x6d   : > { %714 = vst [vmem:[%s6999_s12 + $0x5a8] sm:$0xff] %v713_v53  ;;  %716 = vst [vmem:[%s6999_s12 + $0x5b0] sm:$0xff] %v715_v54  ;;  %v723_v58 = vld [vmem:[%s6991_s30 + $0xb90] sm:$0xff]  ;;  %v725_v59 = vld [vmem:[%s6991_s30 + $0xb98] sm:$0xff] }
  0x6e   : > { %718 = vst [vmem:[%s6999_s12 + $0x5b8] sm:$0xff] %v717_v55  ;;  %720 = vst [vmem:[%s6999_s12 + $0x5c0] sm:$0xff] %v719_v56  ;;  %v727_v60 = vld [vmem:[%s6991_s30 + $0xba0] sm:$0xff]  ;;  %v729_v61 = vld [vmem:[%s6991_s30 + $0xba8] sm:$0xff] }
  0x6f   : > { %722 = vst [vmem:[%s6999_s12 + $0x5c8] sm:$0xff] %v721_v57  ;;  %724 = vst [vmem:[%s6999_s12 + $0x5d0] sm:$0xff] %v723_v58  ;;  %v731_v62 = vld [vmem:[%s6991_s30 + $0xbb0] sm:$0xff]  ;;  %v733_v63 = vld [vmem:[%s6991_s30 + $0xbb8] sm:$0xff] }
  0x70   : > { %726 = vst [vmem:[%s6999_s12 + $0x5d8] sm:$0xff] %v725_v59  ;;  %728 = vst [vmem:[%s6999_s12 + $0x5e0] sm:$0xff] %v727_v60 }
  0x71   : > { %730 = vst [vmem:[%s6999_s12 + $0x5e8] sm:$0xff] %v729_v61  ;;  %732 = vst [vmem:[%s6999_s12 + $0x5f0] sm:$0xff] %v731_v62 }
  0x72   : > { %734 = vst [vmem:[%s6999_s12 + $0x5f8] sm:$0xff] %v733_v63 }
  0x73 PF: > { %p5948_p5 = scmp.ge.s32.totalorder %s6893_s19, 1  ;;  %p739_p6 = scmp.lt.s32.totalorder %s6893_s19, 3 }
  0x75   : > { %p740_p7 = pnand %p5948_p5, %p739_p6 }
  0x77   : > { %743 = sbr.rel (%p740_p7) target bundleno = 2711 (0xa97), region = 83 }
  0x7e   : > { %v6747_v0 = vld [vmem:[%s10425_s1 + $0x4] ss:$12 sps:$4 sm:$0xff]   ;;  %v6749_v1 = vld [vmem:[%s10425_s1] ss:$12 sps:$4 sm:$0xff]   ;;  %s746_s22 = sand.u32 1, %s6885_s17   ;;  %vm1258_vm0 = vcmask 97280  }
  0x7f   : > { %1413 = vmatprep.subr.bf16.mxu0 %v6747_v0  ;;  %6425 = vmatprep.subr.bf16.mxu1 %v6747_v0  ;;  %v6750_v2 = vld [vmem:[%s10425_s1 + $0x1c] ss:$12 sps:$4 sm:$0xff]   ;;  %v6752_v3 = vld [vmem:[%s10425_s1 + $0x18] ss:$12 sps:$4 sm:$0xff]   ;;  %v6753_v4 = vld [vmem:[%s10425_s1 + $0x34] ss:$12 sps:$4 sm:$0xff]  }
  0x80   : > { %1414 = vmatpush1.bf16.msra.mxu0 %v6749_v1  ;;  %6434 = vmatpush1.bf16.msra.mxu1 %v6749_v1  ;;  %s6700_s30 = smul.u32 1536, %s746_s22  ;;  %v6755_v5 = vld [vmem:[%s10425_s1 + $0x30] ss:$12 sps:$4 sm:$0xff]   ;;  %v6756_v6 = vld [vmem:[%s10425_s1 + $0x4c] ss:$12 sps:$4 sm:$0xff]   ;;  %vm1403_vm1 = vcmask 1045504  }
  0x81   : > { %1415 = vmatprep.subr.bf16.mxu0 %v6750_v2  ;;  %6426 = vmatprep.subr.bf16.mxu1 %v6750_v2  ;;  %v6758_v7 = vld [vmem:[%s10425_s1 + $0x48] ss:$12 sps:$4 sm:$0xff]   ;;  %v6759_v9 = vld [vmem:[%s10425_s1 + $0x64] ss:$12 sps:$4 sm:$0xff]   ;;  %v6761_v15 = vld [vmem:[%s10425_s1 + $0x60] ss:$12 sps:$4 sm:$0xff]  }
  0x82   : > { %s7406_s23 = scalar_lea.vmem [#allocation2], %s6700_s30  ;;  %v6762_v16 = vld [vmem:[%s10425_s1 + $0x7c] ss:$12 sps:$4 sm:$0xff]   ;;  %v6764_v17 = vld [vmem:[%s10425_s1 + $0x78] ss:$12 sps:$4 sm:$0xff]   ;;  %v10436_v37 = vmov 0  }
  0x83   : > { %v794_v8 = vld [vmem:[%s7406_s23 + $0x8] sm:$0xff]  ;;  %v796_v10 = vld [vmem:[%s7406_s23 + $0x18] sm:$0xff]  ;;  %v6765_v18 = vld [vmem:[%s10425_s1 + $0x94] ss:$12 sps:$4 sm:$0xff]   ;;  %s6896_s16 = smov 64   ;;  %vm2919_vm2 = vcmask 523264  }
  0x84   : > { %1416 = vmatpush1.bf16.msra.mxu0 %v6752_v3  ;;  %6435 = vmatpush1.bf16.msra.mxu1 %v6752_v3  ;;  %v842_v11 = vld [vmem:[%s7406_s23 + $0x188] sm:$0xff]  ;;  %v7414_v12 = vpack.c.bf16 %v796_v10, %v794_v8  ;;  %v844_v13 = vld [vmem:[%s7406_s23 + $0x198] sm:$0xff]  ;;  %v6771_v22 = vld [vmem:[%s10425_s1 + $0xc4] ss:$12 sps:$4 sm:$0x3f]   ;;  %vm5874_vm3 = vcmask 80896  }
  0x85   : > { %1417 = vmatprep.subr.bf16.mxu0 %v6753_v4  ;;  %6427 = vmatprep.subr.bf16.mxu1 %v6753_v4  ;;  %v7417_v14 = vpack.c.bf16 %v844_v13, %v842_v11  ;;  %v6767_v19 = vld [vmem:[%s10425_s1 + $0x90] ss:$12 sps:$4 sm:$0xff]   ;;  %v6768_v20 = vld [vmem:[%s10425_s1 + $0xac] ss:$12 sps:$4 sm:$0xff]   ;;  %v6770_v21 = vld [vmem:[%s10425_s1 + $0xa8] ss:$12 sps:$4 sm:$0xff]  }
  0x86   : > { %5979 = vmatprep.mubr.msk.bf16.mxu0 %vm1258_vm0, %v7414_v12  ;;  %v6773_v23 = vld [vmem:[%s10425_s1 + $0xc0] ss:$12 sps:$4 sm:$0x3f]   ;;  %v795_v25 = vld [vmem:[%s7406_s23 + $0x10] sm:$0xff]  ;;  %v800_v30 = vld [vmem:[%s7406_s23 + $0x38] sm:$0xff] }
  0x87   : > { %5991 = vmatprep.mubr.msk.bf16.mxu1 %vm1258_vm0, %v7417_v14  ;;  %v793_v24 = vld [vmem:[%s7406_s23] sm:$0xff]  ;;  %v843_v27 = vld [vmem:[%s7406_s23 + $0x190] sm:$0xff]  ;;  %v1405_v28 = vsel %vm1403_vm1, %v6773_v23, 0  ;;  %v798_v29 = vld [vmem:[%s7406_s23 + $0x28] sm:$0xff] }
  0x88   : > { %1418 = vmatpush1.bf16.msra.mxu0 %v6755_v5  ;;  %6436 = vmatpush1.bf16.msra.mxu1 %v6755_v5  ;;  %v841_v26 = vld [vmem:[%s7406_s23 + $0x180] sm:$0xff]  ;;  %v846_v31 = vld [vmem:[%s7406_s23 + $0x1a8] sm:$0xff]  ;;  %v848_v32 = vld [vmem:[%s7406_s23 + $0x1b8] sm:$0xff]  ;;  %v7461_v33 = vpack.c.bf16 %v795_v25, %v793_v24  ;;  %v7468_v36 = vpack.c.bf16 %v800_v30, %v798_v29 }
  0x89   : > { %1419 = vmatprep.subr.bf16.mxu0 %v6756_v6  ;;  %6428 = vmatprep.subr.bf16.mxu1 %v6756_v6  ;;  %v7463_v34 = vpack.c.bf16 %v843_v27, %v841_v26  ;;  %v6774_v35 = vld [vmem:[%s10425_s1 + $0x8] ss:$12 sps:$4 sm:$0xff]   ;;  %v7471_v38 = vpack.c.bf16 %v848_v32, %v846_v31  ;;  %v797_v39 = vld [vmem:[%s7406_s23 + $0x20] sm:$0xff]  ;;  %v804_v45 = vld [vmem:[%s7406_s23 + $0x58] sm:$0xff] }
  0x8a   : > { %v799_v40 = vld [vmem:[%s7406_s23 + $0x30] sm:$0xff]  ;;  %v845_v41 = vld [vmem:[%s7406_s23 + $0x1a0] sm:$0xff]  ;;  %v802_v43 = vld [vmem:[%s7406_s23 + $0x48] sm:$0xff] }
  0x8b   : > { %v847_v42 = vld [vmem:[%s7406_s23 + $0x1b0] sm:$0xff]  ;;  %v6775_v44 = vld [vmem:[%s10425_s1 + $0x20] ss:$12 sps:$4 sm:$0xff]   ;;  %v852_v47 = vld [vmem:[%s7406_s23 + $0x1d8] sm:$0xff]  ;;  %v7492_v48 = vpack.c.bf16 %v799_v40, %v797_v39  ;;  %v7496_v50 = vpack.c.bf16 %v804_v45, %v802_v43 }
  0x8c   : > { %1420 = vmatpush1.bf16.msra.mxu0 %v6758_v7  ;;  %6437 = vmatpush1.bf16.msra.mxu1 %v6758_v7  ;;  %v850_v46 = vld [vmem:[%s7406_s23 + $0x1c8] sm:$0xff]  ;;  %v7494_v49 = vpack.c.bf16 %v847_v42, %v845_v41  ;;  %v6776_v52 = vld [vmem:[%s10425_s1 + $0x38] ss:$12 sps:$4 sm:$0xff]   ;;  %v803_v54 = vld [vmem:[%s7406_s23 + $0x50] sm:$0xff] }
  0x8d   : > { %1421 = vmatprep.subr.bf16.mxu0 %v6759_v9  ;;  %6429 = vmatprep.subr.bf16.mxu1 %v6759_v9  ;;  %v7498_v51 = vpack.c.bf16 %v852_v47, %v850_v46  ;;  %v801_v53 = vld [vmem:[%s7406_s23 + $0x40] sm:$0xff]  ;;  %v851_v56 = vld [vmem:[%s7406_s23 + $0x1d0] sm:$0xff]  ;;  %v806_v57 = vld [vmem:[%s7406_s23 + $0x68] sm:$0xff] }
  0x8e   : > { %v849_v55 = vld [vmem:[%s7406_s23 + $0x1c0] sm:$0xff]  ;;  %v808_v58 = vld [vmem:[%s7406_s23 + $0x78] sm:$0xff]  ;;  %v854_v59 = vld [vmem:[%s7406_s23 + $0x1e8] sm:$0xff]  ;;  %v7522_v62 = vpack.c.bf16 %v803_v54, %v801_v53 }
  0x8f   : > { %v856_v60 = vld [vmem:[%s7406_s23 + $0x1f8] sm:$0xff]  ;;  %v7524_v63 = vpack.c.bf16 %v851_v56, %v849_v55  ;;  %v7526_v0 = vpack.c.bf16 %v808_v58, %v806_v57  ;;  %v805_v2 = vld [vmem:[%s7406_s23 + $0x60] sm:$0xff]  ;;  %v807_v3 = vld [vmem:[%s7406_s23 + $0x70] sm:$0xff] }
  0x90   : > { %1422 = vmatpush1.bf16.msra.mxu0 %v6761_v15  ;;  %6438 = vmatpush1.bf16.msra.mxu1 %v6761_v15  ;;  %v6777_v61 = vld [vmem:[%s10425_s1 + $0x50] ss:$12 sps:$4 sm:$0xff]   ;;  %v7528_v1 = vpack.c.bf16 %v856_v60, %v854_v59  ;;  %v6778_v4 = vld [vmem:[%s10425_s1 + $0x68] ss:$12 sps:$4 sm:$0xff]   ;;  %v853_v5 = vld [vmem:[%s7406_s23 + $0x1e0] sm:$0xff]  ;;  %v7549_v11 = vpack.c.bf16 %v807_v3, %v805_v2 }
  0x91   : > { %1423 = vmatprep.subr.bf16.mxu0 %v6762_v16  ;;  %6430 = vmatprep.subr.bf16.mxu1 %v6762_v16  ;;  %v855_v6 = vld [vmem:[%s7406_s23 + $0x1f0] sm:$0xff]  ;;  %v810_v7 = vld [vmem:[%s7406_s23 + $0x88] sm:$0xff]  ;;  %v812_v8 = vld [vmem:[%s7406_s23 + $0x98] sm:$0xff] }
  0x92   : > { %v858_v9 = vld [vmem:[%s7406_s23 + $0x208] sm:$0xff]  ;;  %v860_v10 = vld [vmem:[%s7406_s23 + $0x218] sm:$0xff]  ;;  %v7551_v13 = vpack.c.bf16 %v855_v6, %v853_v5  ;;  %v7553_v15 = vpack.c.bf16 %v812_v8, %v810_v7  ;;  %v861_v29 = vld [vmem:[%s7406_s23 + $0x220] sm:$0xff] }
  0x93   : > { %v7555_v16 = vpack.c.bf16 %v860_v10, %v858_v9  ;;  %v814_v23 = vld [vmem:[%s7406_s23 + $0xa8] sm:$0xff]  ;;  %v816_v24 = vld [vmem:[%s7406_s23 + $0xb8] sm:$0xff]  ;;  %v863_v30 = vld [vmem:[%s7406_s23 + $0x230] sm:$0xff] }
  0x94   : > { %1424 = vmatpush1.bf16.msra.mxu0 %v6764_v17  ;;  %6439 = vmatpush1.bf16.msra.mxu1 %v6764_v17  ;;  %v809_v17 = vld [vmem:[%s7406_s23 + $0x80] sm:$0xff]  ;;  %v815_v32 = vld [vmem:[%s7406_s23 + $0xb0] sm:$0xff]  ;;  %v868_v39 = vld [vmem:[%s7406_s23 + $0x258] sm:$0xff]  ;;  %v7597_v43 = vpack.c.bf16 %v863_v30, %v861_v29 }
  0x95   : > { %1425 = vmatprep.subr.bf16.mxu0 %v6765_v18  ;;  %6431 = vmatprep.subr.bf16.mxu1 %v6765_v18  ;;  %v811_v18 = vld [vmem:[%s7406_s23 + $0x90] sm:$0xff]  ;;  %v813_v31 = vld [vmem:[%s7406_s23 + $0xa0] sm:$0xff]  ;;  %v818_v41 = vld [vmem:[%s7406_s23 + $0xc8] sm:$0xff] }
  0x96   : > { %v7571_v25 = vpack.c.bf16 %v811_v18, %v809_v17  ;;  %v6779_v40 = vld [vmem:[%s10425_s1 + $0x80] ss:$12 sps:$4 sm:$0xff]   ;;  %v820_v42 = vld [vmem:[%s7406_s23 + $0xd8] sm:$0xff]  ;;  %v819_v56 = vld [vmem:[%s7406_s23 + $0xd0] sm:$0xff] }
  0x97   : > { %v7603_v46 = vpack.c.bf16 %v820_v42, %v818_v41  ;;  %v865_v47 = vld [vmem:[%s7406_s23 + $0x240] sm:$0xff]  ;;  %v870_v53 = vld [vmem:[%s7406_s23 + $0x268] sm:$0xff]  ;;  %v872_v54 = vld [vmem:[%s7406_s23 + $0x278] sm:$0xff] }
  0x98   : > { %1426 = vmatpush1.bf16.msra.mxu0 %v6767_v19  ;;  %6440 = vmatpush1.bf16.msra.mxu1 %v6767_v19  ;;  %v857_v19 = vld [vmem:[%s7406_s23 + $0x200] sm:$0xff]  ;;  %v822_v57 = vld [vmem:[%s7406_s23 + $0xe8] sm:$0xff]  ;;  %v824_v58 = vld [vmem:[%s7406_s23 + $0xf8] sm:$0xff] }
  0x99   : > { %1427 = vmatprep.subr.bf16.mxu0 %v6768_v20  ;;  %6432 = vmatprep.subr.bf16.mxu1 %v6768_v20  ;;  %v859_v20 = vld [vmem:[%s7406_s23 + $0x210] sm:$0xff]  ;;  %v817_v55 = vld [vmem:[%s7406_s23 + $0xc0] sm:$0xff]  ;;  %v7625_v2 = vpack.c.bf16 %v824_v58, %v822_v57  ;;  %v874_v5 = vld [vmem:[%s7406_s23 + $0x288] sm:$0xff] }
  0x9a   : > { %v7573_v26 = vpack.c.bf16 %v859_v20, %v857_v19  ;;  %v7621_v60 = vpack.c.bf16 %v819_v56, %v817_v55  ;;  %v869_v3 = vld [vmem:[%s7406_s23 + $0x260] sm:$0xff]  ;;  %v876_v6 = vld [vmem:[%s7406_s23 + $0x298] sm:$0xff]  ;;  %v823_v8 = vld [vmem:[%s7406_s23 + $0xf0] sm:$0xff] }
  0x9b   : > { %v821_v7 = vld [vmem:[%s7406_s23 + $0xe0] sm:$0xff]  ;;  %v826_v9 = vld [vmem:[%s7406_s23 + $0x108] sm:$0xff]  ;;  %v828_v10 = vld [vmem:[%s7406_s23 + $0x118] sm:$0xff]  ;;  %v7645_v19 = vpack.c.bf16 %v876_v6, %v874_v5 }
  0x9c   : > { %1428 = vmatpush1.bf16.msra.mxu0 %v6770_v21  ;;  %6441 = vmatpush1.bf16.msra.mxu1 %v6770_v21  ;;  %v862_v21 = vld [vmem:[%s7406_s23 + $0x228] sm:$0xff]  ;;  %v7643_v18 = vpack.c.bf16 %v823_v8, %v821_v7  ;;  %v7647_v20 = vpack.c.bf16 %v828_v10, %v826_v9  ;;  %v825_v29 = vld [vmem:[%s7406_s23 + $0x100] sm:$0xff]  ;;  %v827_v30 = vld [vmem:[%s7406_s23 + $0x110] sm:$0xff] }
  0x9d   : > { %5978 = vmatprep.subr.msk.bf16.mxu0 %vm1403_vm1, %v6771_v22  ;;  %6433 = vmatprep.subr.msk.bf16.mxu1 %vm1403_vm1, %v6771_v22  ;;  %v864_v22 = vld [vmem:[%s7406_s23 + $0x238] sm:$0xff]  ;;  %v877_v42 = vld [vmem:[%s7406_s23 + $0x2a0] sm:$0xff]  ;;  %v831_v55 = vld [vmem:[%s7406_s23 + $0x130] sm:$0xff] }
  0x9e   : > { %v7575_v27 = vpack.c.bf16 %v864_v22, %v862_v21  ;;  %v873_v21 = vld [vmem:[%s7406_s23 + $0x280] sm:$0xff]  ;;  %v875_v22 = vld [vmem:[%s7406_s23 + $0x290] sm:$0xff]  ;;  %v834_v57 = vld [vmem:[%s7406_s23 + $0x148] sm:$0xff] }
  0x9f   : > { %v6780_v56 = vld [vmem:[%s10425_s1 + $0x98] ss:$12 sps:$4 sm:$0xff]   ;;  %v883_v8 = vld [vmem:[%s7406_s23 + $0x2d0] sm:$0xff]  ;;  %v886_v9 = vld [vmem:[%s7406_s23 + $0x2e8] sm:$0xff] }
  0xa0   : > { %1430 = vmatpush1.bf16.msra.mxu0 %v1405_v28  ;;  %6442 = vmatpush1.bf16.msra.mxu1 %v1405_v28  ;;  %v7577_v28 = vpack.c.bf16 %v816_v24, %v814_v23  ;;  %v878_v23 = vld [vmem:[%s7406_s23 + $0x2a8] sm:$0xff]  ;;  %v880_v24 = vld [vmem:[%s7406_s23 + $0x2b8] sm:$0xff]  ;;  %v881_v7 = vld [vmem:[%s7406_s23 + $0x2c0] sm:$0xff] }
  0xa1   : > { %1926 = vmatprep.subr.bf16.mxu1 %v10436_v37  ;;  %3917 = vmatprep.subr.bf16.mxu0 %v10436_v37  ;;  %v836_v58 = vld [vmem:[%s7406_s23 + $0x158] sm:$0xff] }
  0xa2   : > { %v7695_v6 = vpack.c.bf16 %v836_v58, %v834_v57  ;;  %v888_v10 = vld [vmem:[%s7406_s23 + $0x2f8] sm:$0xff] }
  0xa3   : > { %1446 = vmatmul.mubr.bf16.vlgmr.msra.gmra.mrb[0].mxu0 %v7461_v33  ;;  %1566 = vmatmul.mubr.bf16.vlgmr.msra.gmra.mrb[0].mxu1 %v7463_v34 }
  0xa4   : > { %1927 = vmatpush1.bf16.msra.mxu1 %v6774_v35  ;;  %5980 = vmatprep.mubr.msk.bf16.mxu0 %vm1258_vm0, %v7468_v36  ;;  %v866_v35 = vld [vmem:[%s7406_s23 + $0x248] sm:$0xff] }
  0xa5   : > { %5992 = vmatprep.mubr.msk.bf16.mxu1 %vm1258_vm0, %v7471_v38  ;;  %1928 = vmatprep.subr.bf16.mxu1 %v10436_v37  ;;  %v7601_v45 = vpack.c.bf16 %v868_v39, %v866_v35  ;;  %v7663_v35 = vpack.c.bf16 %v875_v22, %v873_v21  ;;  %v7665_v39 = vpack.c.bf16 %v827_v30, %v825_v29  ;;  %v833_v21 = vld [vmem:[%s7406_s23 + $0x140] sm:$0xff]  ;;  %v835_v22 = vld [vmem:[%s7406_s23 + $0x150] sm:$0xff] }
  0xa6   : > { %v7713_v29 = vpack.c.bf16 %v888_v10, %v886_v9  ;;  %v885_v30 = vld [vmem:[%s7406_s23 + $0x2e0] sm:$0xff]  ;;  %v895_v9 = vld [vmem:[%s7406_s23 + $0x330] sm:$0xff]  ;;  %v898_v10 = vld [vmem:[%s7406_s23 + $0x348] sm:$0xff] }
  0xa8   : > { %1929 = vmatpush1.bf16.msra.mxu1 %v6775_v44  ;;  %v7599_v44 = vpack.c.bf16 %v815_v32, %v813_v31  ;;  %v830_v31 = vld [vmem:[%s7406_s23 + $0x128] sm:$0xff]  ;;  %v832_v32 = vld [vmem:[%s7406_s23 + $0x138] sm:$0xff]  ;;  %10604 = vst [vmem:[#allocation3_spill] sm:$0xff] %v7713_v29 }
  0xa9   : > { %1930 = vmatprep.subr.bf16.mxu1 %v10436_v37  ;;  %v7669_v41 = vpack.c.bf16 %v832_v32, %v830_v31  ;;  %v887_v31 = vld [vmem:[%s7406_s23 + $0x2f0] sm:$0xff]  ;;  %v890_v32 = vld [vmem:[%s7406_s23 + $0x308] sm:$0xff] }
  0xab   : > { %1456 = vmatmul.mubr.bf16.gmra.mrb[4].mxu0 %v7492_v48  ;;  %1576 = vmatmul.mubr.bf16.gmra.mrb[4].mxu1 %v7494_v49 }
  0xac   : > { %5981 = vmatprep.mubr.msk.bf16.mxu0 %vm1258_vm0, %v7496_v50  ;;  %5993 = vmatprep.mubr.msk.bf16.mxu1 %vm1258_vm0, %v7498_v51 }
  0xad   : > { %1931 = vmatpush1.bf16.msra.mxu1 %v6776_v52  ;;  %v867_v52 = vld [vmem:[%s7406_s23 + $0x250] sm:$0xff] }
  0xae   : > { %1932 = vmatprep.subr.bf16.mxu1 %v10436_v37  ;;  %v7619_v59 = vpack.c.bf16 %v867_v52, %v865_v47  ;;  %v879_v47 = vld [vmem:[%s7406_s23 + $0x2b0] sm:$0xff]  ;;  %v882_v52 = vld [vmem:[%s7406_s23 + $0x2c8] sm:$0xff] }
  0xb1   : > { %1933 = vmatpush1.bf16.msra.mxu1 %v6777_v61  ;;  %v7623_v61 = vpack.c.bf16 %v872_v54, %v870_v53  ;;  %v884_v53 = vld [vmem:[%s7406_s23 + $0x2d8] sm:$0xff]  ;;  %v829_v54 = vld [vmem:[%s7406_s23 + $0x120] sm:$0xff] }
  0xb2   : > { %1934 = vmatprep.subr.bf16.mxu1 %v10436_v37  ;;  %v7693_v5 = vpack.c.bf16 %v884_v53, %v882_v52  ;;  %v889_v53 = vld [vmem:[%s7406_s23 + $0x300] sm:$0xff] }
  0xb3   : > { %1466 = vmatmul.mubr.bf16.gmra.mrb[8].mxu0 %v7522_v62  ;;  %1586 = vmatmul.mubr.bf16.gmra.mrb[8].mxu1 %v7524_v63 }
  0xb4   : > { %5982 = vmatprep.mubr.msk.bf16.mxu0 %vm1258_vm0, %v7526_v0  ;;  %5994 = vmatprep.mubr.msk.bf16.mxu1 %vm1258_vm0, %v7528_v1 }
  0xb5   : > { %1935 = vmatpush1.bf16.msra.mxu1 %v6778_v4  ;;  %v871_v4 = vld [vmem:[%s7406_s23 + $0x270] sm:$0xff] }
  0xb6   : > { %1936 = vmatprep.subr.bf16.mxu1 %v10436_v37  ;;  %v7641_v17 = vpack.c.bf16 %v871_v4, %v869_v3  ;;  %v7689_v3 = vpack.c.bf16 %v879_v47, %v877_v42  ;;  %v7691_v4 = vpack.c.bf16 %v831_v55, %v829_v54  ;;  %v892_v42 = vld [vmem:[%s7406_s23 + $0x318] sm:$0xff]  ;;  %v7723_v47 = vpack.c.bf16 %v887_v31, %v885_v30  ;;  %v891_v54 = vld [vmem:[%s7406_s23 + $0x310] sm:$0xff]  ;;  %v894_v55 = vld [vmem:[%s7406_s23 + $0x328] sm:$0xff] }
  0xb7   : > { %v7725_v52 = vpack.c.bf16 %v892_v42, %v890_v32  ;;  %v7734_v57 = vpack.c.bf16 %v891_v54, %v889_v53  ;;  %v897_v31 = vld [vmem:[%s7406_s23 + $0x340] sm:$0xff]  ;;  %v899_v32 = vld [vmem:[%s7406_s23 + $0x350] sm:$0xff]  ;;  %v902_v42 = vld [vmem:[%s7406_s23 + $0x368] sm:$0xff] }
  0xb8   : > { %10605 = vst [vmem:[#allocation4_spill] sm:$0xff] %v7723_v47  ;;  %v904_v53 = vld [vmem:[%s7406_s23 + $0x378] sm:$0xff]  ;;  %v7760_v54 = vpack.c.bf16 %v899_v32, %v897_v31  ;;  %v905_v31 = vld [vmem:[%s7406_s23 + $0x380] sm:$0xff]  ;;  %v907_v32 = vld [vmem:[%s7406_s23 + $0x390] sm:$0xff] }
  0xb9   : > { %1937 = vmatpush1.bf16.msra.mxu1 %v6779_v40  ;;  %v7667_v40 = vpack.c.bf16 %v880_v24, %v878_v23  ;;  %v7709_v23 = vpack.c.bf16 %v883_v8, %v881_v7  ;;  %v7711_v24 = vpack.c.bf16 %v835_v22, %v833_v21  ;;  %10606 = vst [vmem:[#allocation5_spill] sm:$0xff] %v7725_v52  ;;  %10607 = vst [vmem:[#allocation6_spill] sm:$0xff] %v7734_v57  ;;  %v6781_v7 = vld [vmem:[%s10425_s1 + $0xb0] ss:$12 sps:$4 sm:$0xff]   ;;  %v893_v8 = vld [vmem:[%s7406_s23 + $0x320] sm:$0xff] }
  0xba   : > { %1938 = vmatprep.subr.bf16.mxu1 %v10436_v37  ;;  %v900_v21 = vld [vmem:[%s7406_s23 + $0x358] sm:$0xff]  ;;  %v7749_v22 = vpack.c.bf16 %v895_v9, %v893_v8  ;;  %10611 = vst [vmem:[#allocation10_spill] sm:$0xff] %v7760_v54  ;;  %v906_v8 = vld [vmem:[%s7406_s23 + $0x388] sm:$0xff] }
  0xbb   : > { %1476 = vmatmul.mubr.bf16.gmra.mrb[12].mxu0 %v7549_v11  ;;  %1596 = vmatmul.mubr.bf16.gmra.mrb[12].mxu1 %v7551_v13  ;;  %v7751_v30 = vpack.c.bf16 %v900_v21, %v898_v10  ;;  %v908_v9 = vld [vmem:[%s7406_s23 + $0x398] sm:$0xff] }
  0xbc   : > { %5983 = vmatprep.mubr.msk.bf16.mxu0 %vm1258_vm0, %v7553_v15  ;;  %5995 = vmatprep.mubr.msk.bf16.mxu1 %vm1258_vm0, %v7555_v16  ;;  %10609 = vst [vmem:[#allocation8_spill] sm:$0xff] %v7749_v22  ;;  %v7773_v21 = vpack.c.bf16 %v908_v9, %v906_v8  ;;  %v911_v8 = vld [vmem:[%s7406_s23 + $0x3b0] sm:$0xff]  ;;  %v914_v9 = vld [vmem:[%s7406_s23 + $0x3c8] sm:$0xff] }
  0xbd   : > { %1939 = vmatpush1.bf16.msra.mxu1 %v6780_v56  ;;  %v896_v56 = vld [vmem:[%s7406_s23 + $0x338] sm:$0xff]  ;;  %10610 = vst [vmem:[#allocation9_spill] sm:$0xff] %v7751_v30 }
  0xbe   : > { %1940 = vmatprep.subr.bf16.mxu1 %v10436_v37  ;;  %v7736_v58 = vpack.c.bf16 %v896_v56, %v894_v55  ;;  %v7762_v55 = vpack.c.bf16 %v904_v53, %v902_v42  ;;  %v901_v56 = vld [vmem:[%s7406_s23 + $0x360] sm:$0xff]  ;;  %10614 = vst [vmem:[#allocation13_spill] sm:$0xff] %v7773_v21  ;;  %v910_v42 = vld [vmem:[%s7406_s23 + $0x3a8] sm:$0xff]  ;;  %v912_v53 = vld [vmem:[%s7406_s23 + $0x3b8] sm:$0xff] }
  0xc0   : > { %10608 = vst [vmem:[#allocation7_spill] sm:$0xff] %v7736_v58  ;;  %10612 = vst [vmem:[#allocation11_spill] sm:$0xff] %v7762_v55 }
  0xc1   : > { %1941 = vmatpush1.bf16.msra.mxu1 %v6781_v7  ;;  %v903_v7 = vld [vmem:[%s7406_s23 + $0x370] sm:$0xff] }
  0xc2   : > { %1942 = vmatprep.subr.bf16.mxu1 %v10436_v37  ;;  %v7771_v10 = vpack.c.bf16 %v903_v7, %v901_v56  ;;  %v7782_v37 = vpack.c.bf16 %v907_v32, %v905_v31  ;;  %v6782_v56 = vld [vmem:[%s10425_s1 + $0xc8] ss:$12 sps:$4 sm:$0x3f]   ;;  %v909_v7 = vld [vmem:[%s7406_s23 + $0x3a0] sm:$0xff]  ;;  %v916_v31 = vld [vmem:[%s7406_s23 + $0x3d8] sm:$0xff] }
  0xc3   : > { %1486 = vmatmul.mubr.bf16.gmra.mrb[16].mxu0 %v7571_v25  ;;  %1606 = vmatmul.mubr.bf16.gmra.mrb[16].mxu1 %v7573_v26  ;;  %v1411_v32 = vsel %vm1403_vm1, %v6782_v56, 0 }
  0xc4   : > { %5996 = vmatprep.mubr.msk.bf16.mxu1 %vm1258_vm0, %v7575_v27  ;;  %5984 = vmatprep.mubr.msk.bf16.mxu0 %vm1258_vm0, %v7577_v28  ;;  %10613 = vst [vmem:[#allocation12_spill] sm:$0xff] %v7771_v10  ;;  %10615 = vst [vmem:[#allocation14_spill] sm:$0xff] %v7782_v37 }
  0xc5   : > { %1943 = vmatpush1.bf16.msra.mxu1 %v1411_v32 }
  0xcb   : > { %1616 = vmatmul.mubr.bf16.gmra.mrb[20].mxu1 %v7597_v43  ;;  %1496 = vmatmul.mubr.bf16.gmra.mrb[20].mxu0 %v7599_v44 }
  0xcc   : > { %5997 = vmatprep.mubr.msk.bf16.mxu1 %vm1258_vm0, %v7601_v45  ;;  %5985 = vmatprep.mubr.msk.bf16.mxu0 %vm1258_vm0, %v7603_v46 }
  0xd3   : > { %1626 = vmatmul.mubr.bf16.gmra.mrb[24].mxu1 %v7619_v59  ;;  %1506 = vmatmul.mubr.bf16.gmra.mrb[24].mxu0 %v7621_v60 }
  0xd4   : > { %5998 = vmatprep.mubr.msk.bf16.mxu1 %vm1258_vm0, %v7623_v61  ;;  %5986 = vmatprep.mubr.msk.bf16.mxu0 %vm1258_vm0, %v7625_v2 }
  0xdb   : > { %1636 = vmatmul.mubr.bf16.gmra.mrb[28].mxu1 %v7641_v17  ;;  %1516 = vmatmul.mubr.bf16.gmra.mrb[28].mxu0 %v7643_v18 }
  0xdc   : > { %5999 = vmatprep.mubr.msk.bf16.mxu1 %vm1258_vm0, %v7645_v19  ;;  %5987 = vmatprep.mubr.msk.bf16.mxu0 %vm1258_vm0, %v7647_v20 }
  0xe3   : > { %1646 = vmatmul.mubr.bf16.gmra.mrb[32].mxu1 %v7663_v35  ;;  %1526 = vmatmul.mubr.bf16.gmra.mrb[32].mxu0 %v7665_v39 }
  0xe4   : > { %6000 = vmatprep.mubr.msk.bf16.mxu1 %vm1258_vm0, %v7667_v40  ;;  %5988 = vmatprep.mubr.msk.bf16.mxu0 %vm1258_vm0, %v7669_v41 }
  0xeb   : > { %1656 = vmatmul.mubr.bf16.gmra.mrb[36].mxu1 %v7689_v3  ;;  %1536 = vmatmul.mubr.bf16.gmra.mrb[36].mxu0 %v7691_v4 }
  0xec   : > { %6001 = vmatprep.mubr.msk.bf16.mxu1 %vm1258_vm0, %v7693_v5  ;;  %5989 = vmatprep.mubr.msk.bf16.mxu0 %vm1258_vm0, %v7695_v6 }
  0xf3   : > { %1666 = vmatmul.mubr.bf16.gmra.mrb[40].mxu1 %v7709_v23  ;;  %1546 = vmatmul.mubr.bf16.gmra.mrb[40].mxu0 %v7711_v24 }
  0xf4   : > { %6002 = vmatprep.mubr.msk.bf16.mxu1 %vm1258_vm0, %v7713_v29 }
  0xfb   : > { %1676 = vmatmul.mubr.bf16.gmra.mrb[44].mxu1 %v7723_v47 }
  0xfc   : > { %6003 = vmatprep.mubr.msk.bf16.mxu1 %vm1258_vm0, %v7725_v52 }
 0x103   : > { %1686 = vmatmul.mubr.bf16.gmra.mrb[48].mxu1 %v7734_v57 }
 0x104   : > { %6004 = vmatprep.mubr.msk.bf16.mxu1 %vm1258_vm0, %v7736_v58 }
 0x10b   : > { %1696 = vmatmul.mubr.bf16.gmra.mrb[52].mxu1 %v7749_v22 }
 0x10c   : > { %6005 = vmatprep.mubr.msk.bf16.mxu1 %vm1258_vm0, %v7751_v30 }
 0x113   : > { %1706 = vmatmul.mubr.bf16.gmra.mrb[56].mxu1 %v7760_v54 }
 0x114   : > { %6006 = vmatprep.mubr.msk.bf16.mxu1 %vm1258_vm0, %v7762_v55  ;;  %v7784_v55 = vpack.c.bf16 %v912_v53, %v910_v42  ;;  %v7797_v42 = vpack.c.bf16 %v911_v8, %v909_v7  ;;  %v7799_v53 = vpack.c.bf16 %v916_v31, %v914_v9  ;;  %v917_v7 = vld [vmem:[%s7406_s23 + $0x3e0] sm:$0xff]  ;;  %v919_v8 = vld [vmem:[%s7406_s23 + $0x3f0] sm:$0xff]  ;;  %v922_v9 = vld [vmem:[%s7406_s23 + $0x408] sm:$0xff] }
 0x115   : > { %v924_v31 = vld [vmem:[%s7406_s23 + $0x418] sm:$0xff] }
 0x116   : > { %10616 = vst [vmem:[#allocation15_spill] sm:$0xff] %v7784_v55  ;;  %10617 = vst [vmem:[#allocation16_spill] sm:$0xff] %v7797_v42 }
 0x117   : > { %10618 = vst [vmem:[#allocation17_spill] sm:$0xff] %v7799_v53 }
 0x11b   : > { %1716 = vmatmul.mubr.bf16.gmra.mrb[60].mxu1 %v7771_v10  ;;  %v920_v10 = vld [vmem:[%s7406_s23 + $0x3f8] sm:$0xff] }
 0x11c   : > { %6007 = vmatprep.mubr.msk.bf16.mxu1 %vm1258_vm0, %v7773_v21  ;;  %v918_v21 = vld [vmem:[%s7406_s23 + $0x3e8] sm:$0xff] }
 0x11d   : > { %v7810_v32 = vpack.c.bf16 %v920_v10, %v918_v21  ;;  %v926_v10 = vld [vmem:[%s7406_s23 + $0x428] sm:$0xff]  ;;  %v928_v21 = vld [vmem:[%s7406_s23 + $0x438] sm:$0xff] }
 0x11f   : > { %10620 = vst [vmem:[#allocation19_spill] sm:$0xff] %v7810_v32 }
 0x123   : > { %1726 = vmatmul.mubr.bf16.gmra.mrb[64].mxu1 %v7782_v37  ;;  %v915_v37 = vld [vmem:[%s7406_s23 + $0x3d0] sm:$0xff] }
 0x124   : > { %6008 = vmatprep.mubr.msk.bf16.mxu1 %vm1258_vm0, %v7784_v55  ;;  %v913_v55 = vld [vmem:[%s7406_s23 + $0x3c0] sm:$0xff] }
 0x125   : > { %v7808_v56 = vpack.c.bf16 %v915_v37, %v913_v55  ;;  %v921_v37 = vld [vmem:[%s7406_s23 + $0x400] sm:$0xff]  ;;  %v923_v55 = vld [vmem:[%s7406_s23 + $0x410] sm:$0xff] }
 0x127   : > { %10619 = vst [vmem:[#allocation18_spill] sm:$0xff] %v7808_v56 }
 0x12b   : > { %1736 = vmatmul.mubr.bf16.gmra.mrb[68].mxu1 %v7797_v42  ;;  %v7821_v42 = vpack.c.bf16 %v924_v31, %v922_v9  ;;  %v930_v9 = vld [vmem:[%s7406_s23 + $0x448] sm:$0xff]  ;;  %v932_v31 = vld [vmem:[%s7406_s23 + $0x458] sm:$0xff] }
 0x12c   : > { %6009 = vmatprep.mubr.msk.bf16.mxu1 %vm1258_vm0, %v7799_v53  ;;  %v7819_v53 = vpack.c.bf16 %v919_v8, %v917_v7  ;;  %v925_v7 = vld [vmem:[%s7406_s23 + $0x420] sm:$0xff]  ;;  %v927_v8 = vld [vmem:[%s7406_s23 + $0x430] sm:$0xff] }
 0x12d   : > { %10622 = vst [vmem:[#allocation21_spill] sm:$0xff] %v7821_v42 }
 0x12e   : > { %10621 = vst [vmem:[#allocation20_spill] sm:$0xff] %v7819_v53 }
 0x133   : > { %1746 = vmatmul.mubr.bf16.gmra.mrb[72].mxu1 %v7808_v56  ;;  %v7832_v56 = vpack.c.bf16 %v928_v21, %v926_v10  ;;  %v931_v10 = vld [vmem:[%s7406_s23 + $0x450] sm:$0xff]  ;;  %v934_v21 = vld [vmem:[%s7406_s23 + $0x468] sm:$0xff] }
 0x134   : > { %6010 = vmatprep.mubr.msk.bf16.mxu1 %vm1258_vm0, %v7810_v32  ;;  %v7830_v32 = vpack.c.bf16 %v923_v55, %v921_v37  ;;  %v7843_v37 = vpack.c.bf16 %v932_v31, %v930_v9  ;;  %v929_v55 = vld [vmem:[%s7406_s23 + $0x440] sm:$0xff]  ;;  %v938_v9 = vld [vmem:[%s7406_s23 + $0x488] sm:$0xff]  ;;  %v940_v31 = vld [vmem:[%s7406_s23 + $0x498] sm:$0xff] }
 0x135   : > { %10624 = vst [vmem:[#allocation23_spill] sm:$0xff] %v7832_v56 }
 0x136   : > { %10623 = vst [vmem:[#allocation22_spill] sm:$0xff] %v7830_v32  ;;  %10626 = vst [vmem:[#allocation25_spill] sm:$0xff] %v7843_v37 }
 0x13b   : > { %1756 = vmatmul.mubr.bf16.gmra.mrb[76].mxu1 %v7819_v53 }
 0x13c   : > { %6011 = vmatprep.mubr.msk.bf16.mxu1 %vm1258_vm0, %v7821_v42  ;;  %v7841_v42 = vpack.c.bf16 %v927_v8, %v925_v7  ;;  %v933_v7 = vld [vmem:[%s7406_s23 + $0x460] sm:$0xff]  ;;  %v935_v8 = vld [vmem:[%s7406_s23 + $0x470] sm:$0xff] }
 0x13d   : > { %v7865_v54 = vpack.c.bf16 %v935_v8, %v933_v7  ;;  %v942_v7 = vld [vmem:[%s7406_s23 + $0x4a8] sm:$0xff]  ;;  %v944_v8 = vld [vmem:[%s7406_s23 + $0x4b8] sm:$0xff] }
 0x13e   : > { %10625 = vst [vmem:[#allocation24_spill] sm:$0xff] %v7841_v42 }
 0x13f   : > { %10629 = vst [vmem:[#allocation28_spill] sm:$0xff] %v7865_v54 }
 0x143   : > { %1766 = vmatmul.mubr.bf16.gmra.mrb[80].mxu1 %v7830_v32  ;;  %v7852_v32 = vpack.c.bf16 %v931_v10, %v929_v55  ;;  %v839_v10 = vld [vmem:[%s7406_s23 + $0x170] sm:$0xff] }
 0x144   : > { %6012 = vmatprep.mubr.msk.bf16.mxu1 %vm1258_vm0, %v7832_v56  ;;  %v936_v56 = vld [vmem:[%s7406_s23 + $0x478] sm:$0xff] }
 0x145   : > { %10627 = vst [vmem:[#allocation26_spill] sm:$0xff] %v7852_v32  ;;  %v7854_v53 = vpack.c.bf16 %v936_v56, %v934_v21  ;;  %v837_v56 = vld [vmem:[%s7406_s23 + $0x160] sm:$0xff]  ;;  %v7871_v21 = vpack.c.bf16 %v940_v31, %v938_v9  ;;  %v7887_v31 = vpack.c.bf16 %v944_v8, %v942_v7  ;;  %v950_v7 = vld [vmem:[%s7406_s23 + $0x4e8] sm:$0xff]  ;;  %v952_v8 = vld [vmem:[%s7406_s23 + $0x4f8] sm:$0xff] }
 0x147   : > { %10628 = vst [vmem:[#allocation27_spill] sm:$0xff] %v7854_v53  ;;  %10630 = vst [vmem:[#allocation29_spill] sm:$0xff] %v7871_v21 }
 0x148   : > { %10632 = vst [vmem:[#allocation31_spill] sm:$0xff] %v7887_v31 }
 0x14b   : > { %1776 = vmatmul.mubr.bf16.gmra.mrb[84].mxu1 %v7841_v42  ;;  %v840_v42 = vld [vmem:[%s7406_s23 + $0x178] sm:$0xff] }
 0x14c   : > { %6013 = vmatprep.mubr.msk.bf16.mxu1 %vm1258_vm0, %v7843_v37  ;;  %v838_v37 = vld [vmem:[%s7406_s23 + $0x168] sm:$0xff] }
 0x14d   : > { %v7867_v55 = vpack.c.bf16 %v840_v42, %v838_v37  ;;  %v937_v42 = vld [vmem:[%s7406_s23 + $0x480] sm:$0xff]  ;;  %v939_v37 = vld [vmem:[%s7406_s23 + $0x490] sm:$0xff] }
 0x14e   : > { %v7885_v9 = vpack.c.bf16 %v939_v37, %v937_v42  ;;  %v945_v42 = vld [vmem:[%s7406_s23 + $0x4c0] sm:$0xff]  ;;  %v947_v37 = vld [vmem:[%s7406_s23 + $0x4d0] sm:$0xff] }
 0x14f   : > { %5990 = vmatprep.mubr.msk.bf16.mxu0 %vm1258_vm0, %v7867_v55 }
 0x150   : > { %10631 = vst [vmem:[#allocation30_spill] sm:$0xff] %v7885_v9 }
 0x153   : > { %1786 = vmatmul.mubr.bf16.gmra.mrb[88].mxu1 %v7852_v32 }
 0x154   : > { %6014 = vmatprep.mubr.msk.bf16.mxu1 %vm1258_vm0, %v7854_v53  ;;  %v7873_v53 = vpack.c.bf16 %v839_v10, %v837_v56  ;;  %v941_v56 = vld [vmem:[%s7406_s23 + $0x4a0] sm:$0xff]  ;;  %v943_v10 = vld [vmem:[%s7406_s23 + $0x4b0] sm:$0xff] }
 0x155   : > { %v7896_v32 = vpack.c.bf16 %v943_v10, %v941_v56  ;;  %v954_v56 = vld [vmem:[%s7406_s23 + $0x508] sm:$0xff]  ;;  %v956_v10 = vld [vmem:[%s7406_s23 + $0x518] sm:$0xff] }
 0x156   : > { %1556 = vmatmul.mubr.bf16.gmra.mrb[44].mxu0 %v7873_v53 }
 0x157   : > { %10633 = vst [vmem:[#allocation32_spill] sm:$0xff] %v7896_v32 }
 0x15b   : > { %1796 = vmatmul.mubr.bf16.gmra.mrb[92].mxu1 %v7865_v54  ;;  %v948_v54 = vld [vmem:[%s7406_s23 + $0x4d8] sm:$0xff] }
 0x15c   : > { %6015 = vmatprep.mubr.msk.bf16.mxu1 %vm1258_vm0, %v7871_v21  ;;  %v946_v21 = vld [vmem:[%s7406_s23 + $0x4c8] sm:$0xff] }
 0x15d   : > { %v7898_v30 = vpack.c.bf16 %v948_v54, %v946_v21  ;;  %v949_v54 = vld [vmem:[%s7406_s23 + $0x4e0] sm:$0xff]  ;;  %v951_v21 = vld [vmem:[%s7406_s23 + $0x4f0] sm:$0xff] }
 0x15f   : > { %10634 = vst [vmem:[#allocation33_spill] sm:$0xff] %v7898_v30 }
 0x163   : > { %1806 = vmatmul.mubr.bf16.gmra.mrb[96].mxu1 %v7885_v9  ;;  %v7909_v9 = vpack.c.bf16 %v952_v8, %v950_v7 }
 0x164   : > { %6016 = vmatprep.mubr.msk.bf16.mxu1 %vm1258_vm0, %v7887_v31  ;;  %v7907_v31 = vpack.c.bf16 %v947_v37, %v945_v42  ;;  %v7924_v37 = vpack.c.bf16 %v951_v21, %v949_v54  ;;  %v953_v54 = vld [vmem:[%s7406_s23 + $0x500] sm:$0xff]  ;;  %v955_v21 = vld [vmem:[%s7406_s23 + $0x510] sm:$0xff] }
 0x165   : > { %10636 = vst [vmem:[#allocation35_spill] sm:$0xff] %v7909_v9 }
 0x166   : > { %10635 = vst [vmem:[#allocation34_spill] sm:$0xff] %v7907_v31  ;;  %10640 = vst [vmem:[#allocation39_spill] sm:$0xff] %v7924_v37 }
 0x16b   : > { %1816 = vmatmul.mubr.bf16.gmra.mrb[100].mxu1 %v7896_v32 }
 0x16c   : > { %6017 = vmatprep.mubr.msk.bf16.mxu1 %vm1258_vm0, %v7898_v30 }
 0x173   : > { %1826 = vmatmul.mubr.bf16.gmra.mrb[104].mxu1 %v7907_v31 }
 0x174   : > { %6018 = vmatprep.mubr.msk.bf16.mxu1 %vm1258_vm0, %v7909_v9  ;;  %v7932_v9 = vpack.c.bf16 %v956_v10, %v954_v56  ;;  %v960_v56 = vld [vmem:[%s7406_s23 + $0x538] sm:$0xff] }
 0x176   : > { %v7918_v32 = vpop.f32.mrb[0].mxu1  ;;  %v7920_v30 = vpop.f32.mrb[0].mxu0  ;;  %10643 = vst [vmem:[#allocation42_spill] sm:$0xff] %v7932_v9 }
 0x177   : > { %10637 = vst [vmem:[#allocation36_spill] sm:$0xff] %v7918_v32  ;;  %10638 = vst [vmem:[#allocation37_spill] sm:$0xff] %v7920_v30  ;;  %v7922_v42 = vpop.f32.mrb[1].mxu1  ;;  %v7926_v7 = vpop.f32.mrb[1].mxu0 }
 0x178   : > { %10639 = vst [vmem:[#allocation38_spill] sm:$0xff] %v7922_v42  ;;  %10641 = vst [vmem:[#allocation40_spill] sm:$0xff] %v7926_v7  ;;  %2631 = vrot.lane.b32.xlu0 %v7922_v42, %s6896_s16  ;;  %v7930_v8 = vpop.f32.mrb[2].mxu1  ;;  %v7934_v32 = vpop.f32.mrb[2].mxu0  ;;  %v958_v42 = vld [vmem:[%s7406_s23 + $0x528] sm:$0xff] }
 0x179   : > { %10642 = vst [vmem:[#allocation41_spill] sm:$0xff] %v7930_v8  ;;  %10644 = vst [vmem:[#allocation43_spill] sm:$0xff] %v7934_v32  ;;  %v7936_v31 = vpop.f32.mrb[3].mxu1  ;;  %v7938_v30 = vpop.f32.mrb[3].mxu0 }
 0x17a   : > { %10645 = vst [vmem:[#allocation44_spill] sm:$0xff] %v7936_v31  ;;  %10646 = vst [vmem:[#allocation45_spill] sm:$0xff] %v7938_v30  ;;  %v7955_v30 = vpack.c.bf16 %v955_v21, %v953_v54  ;;  %v957_v54 = vld [vmem:[%s7406_s23 + $0x520] sm:$0xff]  ;;  %v959_v21 = vld [vmem:[%s7406_s23 + $0x530] sm:$0xff] }
 0x17b   : > { %1836 = vmatmul.mubr.bf16.gmra.mrb[108].mxu1 %v7924_v37 }
 0x17c   : > { %2635 = vrot.lane.b32.xlu0 %v7936_v31, %s6896_s16  ;;  %6019 = vmatprep.mubr.msk.bf16.mxu1 %vm1258_vm0, %v7932_v9  ;;  %10650 = vst [vmem:[#allocation49_spill] sm:$0xff] %v7955_v30  ;;  %v7963_v9 = vpack.c.bf16 %v960_v56, %v958_v42  ;;  %v964_v42 = vld [vmem:[%s7406_s23 + $0x558] sm:$0xff] }
 0x17e   : > { %v7949_v10 = vpop.f32.mrb[4].mxu1  ;;  %v7951_v32 = vpop.f32.mrb[4].mxu0  ;;  %10653 = vst [vmem:[#allocation52_spill] sm:$0xff] %v7963_v9 }
 0x17f   : > { %10647 = vst [vmem:[#allocation46_spill] sm:$0xff] %v7949_v10  ;;  %10648 = vst [vmem:[#allocation47_spill] sm:$0xff] %v7951_v32  ;;  %v7953_v8 = vpop.f32.mrb[5].mxu1  ;;  %v7957_v31 = vpop.f32.mrb[5].mxu0  ;;  %v962_v32 = vld [vmem:[%s7406_s23 + $0x548] sm:$0xff] }
 0x180   : > { %10649 = vst [vmem:[#allocation48_spill] sm:$0xff] %v7953_v8  ;;  %10651 = vst [vmem:[#allocation50_spill] sm:$0xff] %v7957_v31  ;;  %2639 = vrot.lane.b32.xlu0 %v7953_v8, %s6896_s16  ;;  %v7961_v7 = vpop.f32.mrb[6].mxu1  ;;  %v7965_v37 = vpop.f32.mrb[6].mxu0  ;;  %v7986_v8 = vpack.c.bf16 %v959_v21, %v957_v54  ;;  %v961_v54 = vld [vmem:[%s7406_s23 + $0x540] sm:$0xff]  ;;  %v963_v21 = vld [vmem:[%s7406_s23 + $0x550] sm:$0xff] }
 0x181   : > { %10652 = vst [vmem:[#allocation51_spill] sm:$0xff] %v7961_v7  ;;  %10654 = vst [vmem:[#allocation53_spill] sm:$0xff] %v7965_v37  ;;  %v7967_v10 = vpop.f32.mrb[7].mxu1  ;;  %v7969_v22 = vpop.f32.mrb[7].mxu0 }
 0x182   : > { %10655 = vst [vmem:[#allocation54_spill] sm:$0xff] %v7967_v10  ;;  %10656 = vst [vmem:[#allocation55_spill] sm:$0xff] %v7969_v22 }
 0x183   : > { %1846 = vmatmul.mubr.bf16.gmra.mrb[112].mxu1 %v7955_v30  ;;  %10660 = vst [vmem:[#allocation59_spill] sm:$0xff] %v7986_v8 }
 0x184   : > { %2643 = vrot.lane.b32.xlu0 %v7967_v10, %s6896_s16  ;;  %6020 = vmatprep.mubr.msk.bf16.mxu1 %vm1258_vm0, %v7963_v9  ;;  %v7996_v9 = vpack.c.bf16 %v964_v42, %v962_v32 }
 0x186   : > { %v7980_v56 = vpop.f32.mrb[8].mxu1  ;;  %v7982_v37 = vpop.f32.mrb[8].mxu0  ;;  %10664 = vst [vmem:[#allocation63_spill] sm:$0xff] %v7996_v9 }
 0x187   : > { %10657 = vst [vmem:[#allocation56_spill] sm:$0xff] %v7980_v56  ;;  %10658 = vst [vmem:[#allocation57_spill] sm:$0xff] %v7982_v37  ;;  %v7984_v7 = vpop.f32.mrb[9].mxu1  ;;  %v7988_v10 = vpop.f32.mrb[9].mxu0  ;;  %v966_v37 = vld [vmem:[%s7406_s23 + $0x568] sm:$0xff] }
 0x188   : > { %10659 = vst [vmem:[#allocation58_spill] sm:$0xff] %v7984_v7  ;;  %10661 = vst [vmem:[#allocation60_spill] sm:$0xff] %v7988_v10  ;;  %2647 = vrot.lane.b32.xlu0 %v7984_v7, %s6896_s16  ;;  %v7992_v22 = vpop.f32.mrb[10].mxu1  ;;  %v7994_v31 = vpop.f32.mrb[10].mxu0 }
 0x189   : > { %10662 = vst [vmem:[#allocation61_spill] sm:$0xff] %v7992_v22  ;;  %10663 = vst [vmem:[#allocation62_spill] sm:$0xff] %v7994_v31  ;;  %v7998_v56 = vpop.f32.mrb[11].mxu1  ;;  %v8000_v30 = vpop.f32.mrb[11].mxu0  ;;  %v968_v22 = vld [vmem:[%s7406_s23 + $0x578] sm:$0xff] }
 0x18a   : > { %10665 = vst [vmem:[#allocation64_spill] sm:$0xff] %v7998_v56  ;;  %10666 = vst [vmem:[#allocation65_spill] sm:$0xff] %v8000_v30 }
 0x18b   : > { %1856 = vmatmul.mubr.bf16.gmra.mrb[116].mxu1 %v7986_v8 }
 0x18c   : > { %2651 = vrot.lane.b32.xlu0 %v7998_v56, %s6896_s16  ;;  %6021 = vmatprep.mubr.msk.bf16.mxu1 %vm1258_vm0, %v7996_v9  ;;  %v8019_v56 = vpack.c.bf16 %v963_v21, %v961_v54  ;;  %v8027_v9 = vpack.c.bf16 %v968_v22, %v966_v37  ;;  %v965_v54 = vld [vmem:[%s7406_s23 + $0x560] sm:$0xff]  ;;  %v967_v21 = vld [vmem:[%s7406_s23 + $0x570] sm:$0xff] }
 0x18e   : > { %v8011_v32 = vpop.f32.mrb[12].mxu1  ;;  %v8013_v42 = vpop.f32.mrb[12].mxu0  ;;  %10671 = vst [vmem:[#allocation70_spill] sm:$0xff] %v8019_v56  ;;  %10674 = vst [vmem:[#allocation73_spill] sm:$0xff] %v8027_v9 }
 0x18f   : > { %10667 = vst [vmem:[#allocation66_spill] sm:$0xff] %v8011_v32  ;;  %10668 = vst [vmem:[#allocation67_spill] sm:$0xff] %v8013_v42  ;;  %v8015_v31 = vpop.f32.mrb[13].mxu1  ;;  %v8017_v7 = vpop.f32.mrb[13].mxu0  ;;  %v970_v42 = vld [vmem:[%s7406_s23 + $0x588] sm:$0xff] }
 0x190   : > { %10669 = vst [vmem:[#allocation68_spill] sm:$0xff] %v8015_v31  ;;  %10670 = vst [vmem:[#allocation69_spill] sm:$0xff] %v8017_v7  ;;  %2655 = vrot.lane.b32.xlu0 %v8015_v31, %s6896_s16  ;;  %v8023_v30 = vpop.f32.mrb[14].mxu1  ;;  %v8025_v10 = vpop.f32.mrb[14].mxu0 }
 0x191   : > { %10672 = vst [vmem:[#allocation71_spill] sm:$0xff] %v8023_v30  ;;  %10673 = vst [vmem:[#allocation72_spill] sm:$0xff] %v8025_v10  ;;  %v8029_v32 = vpop.f32.mrb[15].mxu1  ;;  %v8031_v8 = vpop.f32.mrb[15].mxu0  ;;  %v972_v30 = vld [vmem:[%s7406_s23 + $0x598] sm:$0xff] }
 0x192   : > { %10675 = vst [vmem:[#allocation74_spill] sm:$0xff] %v8029_v32  ;;  %10676 = vst [vmem:[#allocation75_spill] sm:$0xff] %v8031_v8 }
 0x193   : > { %1866 = vmatmul.mubr.bf16.gmra.mrb[120].mxu1 %v8019_v56 }
 0x194   : > { %2659 = vrot.lane.b32.xlu0 %v8029_v32, %s6896_s16  ;;  %6022 = vmatprep.mubr.msk.bf16.mxu1 %vm1258_vm0, %v8027_v9  ;;  %v8050_v32 = vpack.c.bf16 %v967_v21, %v965_v54  ;;  %v8058_v9 = vpack.c.bf16 %v972_v30, %v970_v42  ;;  %v969_v54 = vld [vmem:[%s7406_s23 + $0x580] sm:$0xff]  ;;  %v971_v21 = vld [vmem:[%s7406_s23 + $0x590] sm:$0xff]  ;;  %v976_v30 = vld [vmem:[%s7406_s23 + $0x5b8] sm:$0xff] }
 0x196   : > { %v8042_v10 = vpop.f32.mrb[16].mxu0  ;;  %v8044_v22 = vpop.f32.mrb[16].mxu1  ;;  %10681 = vst [vmem:[#allocation80_spill] sm:$0xff] %v8050_v32  ;;  %10684 = vst [vmem:[#allocation83_spill] sm:$0xff] %v8058_v9 }
 0x197   : > { %10677 = vst [vmem:[#allocation76_spill] sm:$0xff] %v8042_v10  ;;  %10678 = vst [vmem:[#allocation77_spill] sm:$0xff] %v8044_v22  ;;  %v8046_v37 = vpop.f32.mrb[17].mxu0  ;;  %v8048_v31 = vpop.f32.mrb[17].mxu1 }
 0x198   : > { %10679 = vst [vmem:[#allocation78_spill] sm:$0xff] %v8046_v37  ;;  %10680 = vst [vmem:[#allocation79_spill] sm:$0xff] %v8048_v31  ;;  %v8052_v8 = vpop.f32.mrb[18].mxu1  ;;  %2567 = vrot.lane.b32.xlu0 %v8046_v37, %s6896_s16  ;;  %v8056_v7 = vpop.f32.mrb[18].mxu0 }
 0x199   : > { %10682 = vst [vmem:[#allocation81_spill] sm:$0xff] %v8052_v8  ;;  %10683 = vst [vmem:[#allocation82_spill] sm:$0xff] %v8056_v7  ;;  %v8060_v10 = vpop.f32.mrb[19].mxu1  ;;  %v8062_v22 = vpop.f32.mrb[19].mxu0  ;;  %v974_v8 = vld [vmem:[%s7406_s23 + $0x5a8] sm:$0xff] }
 0x19a   : > { %10685 = vst [vmem:[#allocation84_spill] sm:$0xff] %v8060_v10  ;;  %10686 = vst [vmem:[#allocation85_spill] sm:$0xff] %v8062_v22  ;;  %2571 = vrot.lane.b32.xlu1 %v8062_v22, %s6896_s16  ;;  %v8091_v56 = vpack.c.bf16 %v976_v30, %v974_v8 }
 0x19b   : > { %1876 = vmatmul.mubr.bf16.gmra.mrb[124].mxu1 %v8050_v32 }
 0x19c   : > { %2663 = vrot.lane.b32.xlu0 %v8048_v31, %s6896_s16  ;;  %6023 = vmatprep.mubr.msk.bf16.mxu1 %vm1258_vm0, %v8058_v9  ;;  %v8083_v31 = vpack.c.bf16 %v971_v21, %v969_v54  ;;  %10694 = vst [vmem:[#allocation93_spill] sm:$0xff] %v8091_v56  ;;  %v973_v54 = vld [vmem:[%s7406_s23 + $0x5a0] sm:$0xff]  ;;  %v975_v21 = vld [vmem:[%s7406_s23 + $0x5b0] sm:$0xff] }
 0x19e   : > { %v8075_v42 = vpop.f32.mrb[20].mxu1  ;;  %v8077_v7 = vpop.f32.mrb[20].mxu0  ;;  %10691 = vst [vmem:[#allocation90_spill] sm:$0xff] %v8083_v31 }
 0x19f   : > { %10687 = vst [vmem:[#allocation86_spill] sm:$0xff] %v8075_v42  ;;  %10688 = vst [vmem:[#allocation87_spill] sm:$0xff] %v8077_v7  ;;  %v8079_v22 = vpop.f32.mrb[21].mxu1  ;;  %v8081_v37 = vpop.f32.mrb[21].mxu0  ;;  %v8112_v7 = vpack.c.bf16 %v975_v21, %v973_v54  ;;  %v977_v54 = vld [vmem:[%s7406_s23 + $0x5c0] sm:$0xff]  ;;  %v979_v21 = vld [vmem:[%s7406_s23 + $0x5d0] sm:$0xff] }
 0x1a0   : > { %10689 = vst [vmem:[#allocation88_spill] sm:$0xff] %v8079_v22  ;;  %10690 = vst [vmem:[#allocation89_spill] sm:$0xff] %v8081_v37  ;;  %v8085_v32 = vpop.f32.mrb[22].mxu1  ;;  %2667 = vrot.lane.b32.xlu0 %v8060_v10, %s6896_s16  ;;  %v8089_v9 = vpop.f32.mrb[22].mxu0  ;;  %v980_v10 = vld [vmem:[%s7406_s23 + $0x5d8] sm:$0xff] }
 0x1a1   : > { %10692 = vst [vmem:[#allocation91_spill] sm:$0xff] %v8085_v32  ;;  %10693 = vst [vmem:[#allocation92_spill] sm:$0xff] %v8089_v9  ;;  %v8093_v42 = vpop.f32.mrb[23].mxu1  ;;  %v8095_v58 = vpop.f32.mrb[23].mxu0  ;;  %v978_v32 = vld [vmem:[%s7406_s23 + $0x5c8] sm:$0xff] }
 0x1a2   : > { %10695 = vst [vmem:[#allocation94_spill] sm:$0xff] %v8093_v42  ;;  %10696 = vst [vmem:[#allocation95_spill] sm:$0xff] %v8095_v58 }
 0x1a3   : > { %1886 = vmatmul.mubr.bf16.gmra.mrb[128].mxu1 %v8083_v31  ;;  %10700 = vst [vmem:[#allocation99_spill] sm:$0xff] %v8112_v7 }
 0x1a4   : > { %2575 = vrot.lane.b32.xlu0 %v8081_v37, %s6896_s16  ;;  %6024 = vmatprep.mubr.msk.bf16.mxu1 %vm1258_vm0, %v8091_v56  ;;  %v8120_v56 = vpack.c.bf16 %v980_v10, %v978_v32  ;;  %v984_v10 = vld [vmem:[%s7406_s23 + $0x5f8] sm:$0xff] }
 0x1a6   : > { %v8106_v8 = vpop.f32.mrb[24].mxu1  ;;  %v8108_v30 = vpop.f32.mrb[24].mxu0  ;;  %10703 = vst [vmem:[#allocation102_spill] sm:$0xff] %v8120_v56 }
 0x1a7   : > { %10697 = vst [vmem:[#allocation96_spill] sm:$0xff] %v8106_v8  ;;  %10698 = vst [vmem:[#allocation97_spill] sm:$0xff] %v8108_v30  ;;  %v8110_v9 = vpop.f32.mrb[25].mxu1  ;;  %v8114_v37 = vpop.f32.mrb[25].mxu0  ;;  %v8143_v30 = vpack.c.bf16 %v979_v21, %v977_v54  ;;  %v981_v54 = vld [vmem:[%s7406_s23 + $0x5e0] sm:$0xff]  ;;  %v983_v21 = vld [vmem:[%s7406_s23 + $0x5f0] sm:$0xff] }
 0x1a8   : > { %10699 = vst [vmem:[#allocation98_spill] sm:$0xff] %v8110_v9  ;;  %10701 = vst [vmem:[#allocation100_spill] sm:$0xff] %v8114_v37  ;;  %v8116_v31 = vpop.f32.mrb[26].mxu1  ;;  %2671 = vrot.lane.b32.xlu0 %v8079_v22, %s6896_s16  ;;  %v8122_v57 = vpop.f32.mrb[26].mxu0 }
 0x1a9   : > { %10702 = vst [vmem:[#allocation101_spill] sm:$0xff] %v8116_v31  ;;  %10704 = vst [vmem:[#allocation103_spill] sm:$0xff] %v8122_v57  ;;  %v8124_v8 = vpop.f32.mrb[27].mxu1  ;;  %v8126_v52 = vpop.f32.mrb[27].mxu0  ;;  %v982_v31 = vld [vmem:[%s7406_s23 + $0x5e8] sm:$0xff]  ;;  %s5949_s23 = sshll.u32 %s5941_s20, 2 }
 0x1aa   : > { %10705 = vst [vmem:[#allocation104_spill] sm:$0xff] %v8124_v8  ;;  %10706 = vst [vmem:[#allocation105_spill] sm:$0xff] %v8126_v52  ;;  %p787_p8 = scmp.lt.s32.totalorder %s5949_s23, 7 }
 0x1ab   : > { %1896 = vmatmul.mubr.bf16.gmra.mrb[132].mxu1 %v8112_v7  ;;  %10710 = vst [vmem:[#allocation109_spill] sm:$0xff] %v8143_v30 }
 0x1ac   : > { %2579 = vrot.lane.b32.xlu0 %v8095_v58, %s6896_s16  ;;  %6025 = vmatprep.mubr.msk.bf16.mxu1 %vm1258_vm0, %v8120_v56  ;;  %v8151_v56 = vpack.c.bf16 %v984_v10, %v982_v31  ;;  %s11179_s23 = smov (!%p787_p8, %s5949_s23), 7 }
 0x1ad   : > { %s5950_s22 = sshll.u32 %s11179_s23, 3 }
 0x1ae   : > { %v8137_v32 = vpop.f32.mrb[28].mxu1  ;;  %v8139_v22 = vpop.f32.mrb[28].mxu0  ;;  %10713 = vst [vmem:[#allocation112_spill] sm:$0xff] %v8151_v56  ;;  %s790_s28 = scalar_lea.vmem %s10435_s11, %s5950_s22 }
 0x1af   : > { %10707 = vst [vmem:[#allocation106_spill] sm:$0xff] %v8137_v32  ;;  %10708 = vst [vmem:[#allocation107_spill] sm:$0xff] %v8139_v22  ;;  %v8141_v57 = vpop.f32.mrb[29].mxu1  ;;  %v8145_v7 = vpop.f32.mrb[29].mxu0 }
 0x1b0   : > { %10709 = vst [vmem:[#allocation108_spill] sm:$0xff] %v8141_v57  ;;  %10711 = vst [vmem:[#allocation110_spill] sm:$0xff] %v8145_v7  ;;  %v8147_v58 = vpop.f32.mrb[30].mxu1  ;;  %2675 = vrot.lane.b32.xlu0 %v8093_v42, %s6896_s16  ;;  %v8153_v47 = vpop.f32.mrb[30].mxu0  ;;  %v8172_v42 = vpack.c.bf16 %v983_v21, %v981_v54 }
 0x1b1   : > { %10712 = vst [vmem:[#allocation111_spill] sm:$0xff] %v8147_v58  ;;  %10714 = vst [vmem:[#allocation113_spill] sm:$0xff] %v8153_v47  ;;  %v8155_v29 = vpop.f32.mrb[31].mxu1  ;;  %v8157_v32 = vpop.f32.mrb[31].mxu0 }
 0x1b2   : > { %10715 = vst [vmem:[#allocation114_spill] sm:$0xff] %v8155_v29 }
 0x1b3   : > { %1906 = vmatmul.mubr.bf16.gmra.mrb[136].mxu1 %v8143_v30 }
 0x1b4   : > { %2583 = vrot.lane.b32.xlu0 %v8114_v37, %s6896_s16  ;;  %6026 = vmatprep.mubr.msk.bf16.mxu1 %vm1258_vm0, %v8151_v56 }
 0x1b6   : > { %v8166_v58 = vpop.f32.mrb[32].mxu1  ;;  %v8168_v31 = vpop.f32.mrb[32].mxu0 }
 0x1b7   : > { %10716 = vst [vmem:[#allocation115_spill] sm:$0xff] %v8166_v58  ;;  %10717 = vst [vmem:[#allocation116_spill] sm:$0xff] %v8168_v31  ;;  %v8170_v10 = vpop.f32.mrb[33].mxu1  ;;  %v8174_v47 = vpop.f32.mrb[33].mxu0 }
 0x1b8   : > { %10718 = vst [vmem:[#allocation117_spill] sm:$0xff] %v8170_v10  ;;  %v8176_v22 = vpop.f32.mrb[34].mxu1  ;;  %2679 = vrot.lane.b32.xlu0 %v8110_v9, %s6896_s16  ;;  %v8180_v37 = vpop.f32.mrb[34].mxu0 }
 0x1b9   : > { %10719 = vst [vmem:[#allocation118_spill] sm:$0xff] %v8176_v22  ;;  %10720 = vst [vmem:[#allocation119_spill] sm:$0xff] %v8180_v37  ;;  %v8182_v56 = vpop.f32.mrb[35].mxu1  ;;  %v8184_v30 = vpop.f32.mrb[35].mxu0 }
 0x1ba   : > { %10721 = vst [vmem:[#allocation120_spill] sm:$0xff] %v8182_v56 }
 0x1bb   : > { %1916 = vmatmul.mubr.bf16.gmra.mrb[140].mxu1 %v8172_v42 }
 0x1bc   : > { %2587 = vrot.lane.b32.xlu0 %v8126_v52, %s6896_s16  ;;  %6027 = vmatprep.mubr.msk.bf16.mxu1 %vm1258_vm0, %v7414_v12 }
 0x1be   : > { %v8191_v54 = vpop.f32.mrb[36].mxu1  ;;  %v8193_v21 = vpop.f32.mrb[36].mxu0 }
 0x1bf   : > { %10722 = vst [vmem:[#allocation121_spill] sm:$0xff] %v8191_v54  ;;  %10723 = vst [vmem:[#allocation122_spill] sm:$0xff] %v8193_v21  ;;  %v8195_v22 = vpop.f32.mrb[37].mxu1  ;;  %v8197_v58 = vpop.f32.mrb[37].mxu0 }
 0x1c0   : > { %10724 = vst [vmem:[#allocation123_spill] sm:$0xff] %v8195_v22  ;;  %v8199_v9 = vpop.f32.mrb[38].mxu1  ;;  %2683 = vrot.lane.b32.xlu0 %v8124_v8, %s6896_s16  ;;  %v8203_v37 = vpop.f32.mrb[38].mxu0 }
 0x1c1   : > { %10725 = vst [vmem:[#allocation124_spill] sm:$0xff] %v8199_v9  ;;  %10726 = vst [vmem:[#allocation125_spill] sm:$0xff] %v8203_v37  ;;  %v8205_v31 = vpop.f32.mrb[39].mxu1  ;;  %v8207_v52 = vpop.f32.mrb[39].mxu0 }
 0x1c2   : > { %10727 = vst [vmem:[#allocation126_spill] sm:$0xff] %v8205_v31 }
 0x1c3   : > { %1959 = vmatmul.mubr.bf16.vlgmr.msra.gmra.mrb[144].mxu1 %v7461_v33 }
 0x1c4   : > { %2591 = vrot.lane.b32.xlu0 %v8145_v7, %s6896_s16  ;;  %6028 = vmatprep.mubr.msk.bf16.mxu1 %vm1258_vm0, %v7468_v36 }
 0x1c6   : > { %v8214_v12 = vpop.f32.mrb[40].mxu1  ;;  %v8216_v9 = vpop.f32.mrb[40].mxu0 }
 0x1c7   : > { %10728 = vst [vmem:[#allocation127_spill] sm:$0xff] %v8214_v12  ;;  %v8218_v54 = vpop.f32.mrb[41].mxu1  ;;  %v8220_v8 = vpop.f32.mrb[41].mxu0 }
 0x1c8   : > { %10729 = vst [vmem:[#allocation128_spill] sm:$0xff] %v8218_v54  ;;  %v8222_v37 = vpop.f32.mrb[42].mxu1  ;;  %2687 = vrot.lane.b32.xlu0 %v8141_v57, %s6896_s16  ;;  %v8226_v33 = vpop.f32.mrb[42].mxu0 }
 0x1c9   : > { %10730 = vst [vmem:[#allocation129_spill] sm:$0xff] %v8222_v37  ;;  %v8228_v21 = vpop.f32.mrb[43].mxu1  ;;  %v8230_v7 = vpop.f32.mrb[43].mxu0 }
 0x1ca   : > { %10731 = vst [vmem:[#allocation130_spill] sm:$0xff] %v8228_v21 }
 0x1cb   : > { %1967 = vmatmul.mubr.bf16.gmra.mrb[148].mxu1 %v7492_v48 }
 0x1cc   : > { %2595 = vrot.lane.b32.xlu0 %v8157_v32, %s6896_s16  ;;  %6029 = vmatprep.mubr.msk.bf16.mxu1 %vm1258_vm0, %v7496_v50 }
 0x1ce   : > { %v8237_v36 = vpop.f32.mrb[44].mxu1 }
 0x1cf   : > { %10732 = vst [vmem:[#allocation131_spill] sm:$0xff] %v8237_v36  ;;  %v8239_v37 = vpop.f32.mrb[45].mxu1 }
 0x1d0   : > { %10733 = vst [vmem:[#allocation132_spill] sm:$0xff] %v8239_v37  ;;  %v8241_v12 = vpop.f32.mrb[46].mxu1  ;;  %2691 = vrot.lane.b32.xlu0 %v8155_v29, %s6896_s16 }
 0x1d1   : > { %10734 = vst [vmem:[#allocation133_spill] sm:$0xff] %v8241_v12  ;;  %v8245_v57 = vpop.f32.mrb[47].mxu1 }
 0x1d2   : > { %10735 = vst [vmem:[#allocation134_spill] sm:$0xff] %v8245_v57 }
 0x1d3   : > { %1975 = vmatmul.mubr.bf16.gmra.mrb[152].mxu1 %v7522_v62 }
 0x1d4   : > { %2599 = vrot.lane.b32.xlu0 %v8174_v47, %s6896_s16  ;;  %6030 = vmatprep.mubr.msk.bf16.mxu1 %vm1258_vm0, %v7526_v0 }
 0x1d6   : > { %v8252_v48 = vpop.f32.mrb[48].mxu1 }
 0x1d7   : > { %10736 = vst [vmem:[#allocation135_spill] sm:$0xff] %v8252_v48  ;;  %v8254_v50 = vpop.f32.mrb[49].mxu1 }
 0x1d8   : > { %10737 = vst [vmem:[#allocation136_spill] sm:$0xff] %v8254_v50  ;;  %v8256_v36 = vpop.f32.mrb[50].mxu1  ;;  %2695 = vrot.lane.b32.xlu0 %v8170_v10, %s6896_s16 }
 0x1d9   : > { %10738 = vst [vmem:[#allocation137_spill] sm:$0xff] %v8256_v36  ;;  %v8260_v12 = vpop.f32.mrb[51].mxu1 }
 0x1da   : > { %10739 = vst [vmem:[#allocation138_spill] sm:$0xff] %v8260_v12 }
 0x1db   : > { %1983 = vmatmul.mubr.bf16.gmra.mrb[156].mxu1 %v7549_v11 }
 0x1dc   : > { %2603 = vrot.lane.b32.xlu0 %v8184_v30, %s6896_s16  ;;  %6031 = vmatprep.mubr.msk.bf16.mxu1 %vm1258_vm0, %v7553_v15 }
 0x1de   : > { %v8267_v62 = vpop.f32.mrb[52].mxu1 }
 0x1df   : > { %10740 = vst [vmem:[#allocation139_spill] sm:$0xff] %v8267_v62  ;;  %v8269_v0 = vpop.f32.mrb[53].mxu1 }
 0x1e0   : > { %10741 = vst [vmem:[#allocation140_spill] sm:$0xff] %v8269_v0  ;;  %v8271_v48 = vpop.f32.mrb[54].mxu1  ;;  %2699 = vrot.lane.b32.xlu0 %v8182_v56, %s6896_s16 }
 0x1e1   : > { %10742 = vst [vmem:[#allocation141_spill] sm:$0xff] %v8271_v48  ;;  %v8275_v36 = vpop.f32.mrb[55].mxu1 }
 0x1e2   : > { %10743 = vst [vmem:[#allocation142_spill] sm:$0xff] %v8275_v36 }
 0x1e3   : > { %1991 = vmatmul.mubr.bf16.gmra.mrb[160].mxu1 %v7571_v25 }
 0x1e4   : > { %2607 = vrot.lane.b32.xlu0 %v8197_v58, %s6896_s16  ;;  %6032 = vmatprep.mubr.msk.bf16.mxu1 %vm1258_vm0, %v7577_v28 }
 0x1e6   : > { %v8282_v11 = vpop.f32.mrb[56].mxu1 }
 0x1e7   : > { %10744 = vst [vmem:[#allocation143_spill] sm:$0xff] %v8282_v11  ;;  %v8284_v15 = vpop.f32.mrb[57].mxu1 }
 0x1e8   : > { %10745 = vst [vmem:[#allocation144_spill] sm:$0xff] %v8284_v15  ;;  %v8286_v62 = vpop.f32.mrb[58].mxu1  ;;  %2703 = vrot.lane.b32.xlu0 %v8195_v22, %s6896_s16 }
 0x1e9   : > { %10746 = vst [vmem:[#allocation145_spill] sm:$0xff] %v8286_v62  ;;  %v8290_v48 = vpop.f32.mrb[59].mxu1 }
 0x1ea   : > { %10747 = vst [vmem:[#allocation146_spill] sm:$0xff] %v8290_v48 }
 0x1eb   : > { %1999 = vmatmul.mubr.bf16.gmra.mrb[164].mxu1 %v7599_v44 }
 0x1ec   : > { %2611 = vrot.lane.b32.xlu0 %v8207_v52, %s6896_s16  ;;  %6033 = vmatprep.mubr.msk.bf16.mxu1 %vm1258_vm0, %v7603_v46 }
 0x1ee   : > { %v8297_v25 = vpop.f32.mrb[60].mxu1 }
 0x1ef   : > { %10748 = vst [vmem:[#allocation147_spill] sm:$0xff] %v8297_v25  ;;  %v8299_v28 = vpop.f32.mrb[61].mxu1 }
 0x1f0   : > { %10749 = vst [vmem:[#allocation148_spill] sm:$0xff] %v8299_v28  ;;  %v8301_v11 = vpop.f32.mrb[62].mxu1  ;;  %2707 = vrot.lane.b32.xlu0 %v8205_v31, %s6896_s16 }
 0x1f1   : > { %10750 = vst [vmem:[#allocation149_spill] sm:$0xff] %v8301_v11  ;;  %v8305_v62 = vpop.f32.mrb[63].mxu1 }
 0x1f2   : > { %10751 = vst [vmem:[#allocation150_spill] sm:$0xff] %v8305_v62 }
 0x1f3   : > { %2007 = vmatmul.mubr.bf16.gmra.mrb[168].mxu1 %v7621_v60 }
 0x1f4   : > { %2615 = vrot.lane.b32.xlu0 %v8220_v8, %s6896_s16  ;;  %6034 = vmatprep.mubr.msk.bf16.mxu1 %vm1258_vm0, %v7625_v2 }
 0x1f6   : > { %v8312_v44 = vpop.f32.mrb[64].mxu1 }
 0x1f7   : > { %10752 = vst [vmem:[#allocation151_spill] sm:$0xff] %v8312_v44  ;;  %v8314_v46 = vpop.f32.mrb[65].mxu1 }
 0x1f8   : > { %10753 = vst [vmem:[#allocation152_spill] sm:$0xff] %v8314_v46  ;;  %v8316_v25 = vpop.f32.mrb[66].mxu1  ;;  %2711 = vrot.lane.b32.xlu0 %v8218_v54, %s6896_s16 }
 0x1f9   : > { %10754 = vst [vmem:[#allocation153_spill] sm:$0xff] %v8316_v25  ;;  %v8320_v11 = vpop.f32.mrb[67].mxu1 }
 0x1fa   : > { %10755 = vst [vmem:[#allocation154_spill] sm:$0xff] %v8320_v11 }
 0x1fb   : > { %2015 = vmatmul.mubr.bf16.gmra.mrb[172].mxu1 %v7643_v18 }
 0x1fc   : > { %2619 = vrot.lane.b32.xlu0 %v8230_v7, %s6896_s16  ;;  %6035 = vmatprep.mubr.msk.bf16.mxu1 %vm1258_vm0, %v7647_v20 }
 0x1fe   : > { %v8327_v60 = vpop.f32.mrb[68].mxu1 }
 0x1ff   : > { %10756 = vst [vmem:[#allocation155_spill] sm:$0xff] %v8327_v60  ;;  %v8329_v2 = vpop.f32.mrb[69].mxu1 }
 0x200   : > { %10757 = vst [vmem:[#allocation156_spill] sm:$0xff] %v8329_v2  ;;  %v8331_v44 = vpop.f32.mrb[70].mxu1  ;;  %2715 = vrot.lane.b32.xlu0 %v8228_v21, %s6896_s16 }
 0x201   : > { %10758 = vst [vmem:[#allocation157_spill] sm:$0xff] %v8331_v44  ;;  %v8335_v25 = vpop.f32.mrb[71].mxu1 }
 0x202   : > { %10759 = vst [vmem:[#allocation158_spill] sm:$0xff] %v8335_v25 }
 0x203   : > { %2023 = vmatmul.mubr.bf16.gmra.mrb[176].mxu1 %v7665_v39 }
 0x204   : > { %6036 = vmatprep.mubr.msk.bf16.mxu1 %vm1258_vm0, %v7669_v41 }
 0x206   : > { %v8340_v18 = vpop.f32.mrb[72].mxu1 }
 0x207   : > { %10760 = vst [vmem:[#allocation159_spill] sm:$0xff] %v8340_v18  ;;  %v8342_v31 = vpop.f32.mrb[73].mxu1 }
 0x208   : > { %10761 = vst [vmem:[#allocation160_spill] sm:$0xff] %v8342_v31  ;;  %v8344_v20 = vpop.f32.mrb[74].mxu1 }
 0x209   : > { %10762 = vst [vmem:[#allocation161_spill] sm:$0xff] %v8344_v20  ;;  %v8346_v60 = vpop.f32.mrb[75].mxu1 }
 0x20a   : > { %10763 = vst [vmem:[#allocation162_spill] sm:$0xff] %v8346_v60 }
 0x20b   : > { %2031 = vmatmul.mubr.bf16.gmra.mrb[180].mxu1 %v7691_v4 }
 0x20c   : > { %6037 = vmatprep.mubr.msk.bf16.mxu1 %vm1258_vm0, %v7695_v6 }
 0x20e   : > { %v8351_v44 = vpop.f32.mrb[76].mxu1 }
 0x20f   : > { %10764 = vst [vmem:[#allocation163_spill] sm:$0xff] %v8351_v44  ;;  %v8353_v22 = vpop.f32.mrb[77].mxu1 }
 0x210   : > { %10765 = vst [vmem:[#allocation164_spill] sm:$0xff] %v8353_v22  ;;  %v8355_v39 = vpop.f32.mrb[78].mxu1 }
 0x211   : > { %10766 = vst [vmem:[#allocation165_spill] sm:$0xff] %v8355_v39  ;;  %v8357_v41 = vpop.f32.mrb[79].mxu1 }
 0x212   : > { %10767 = vst [vmem:[#allocation166_spill] sm:$0xff] %v8357_v41 }
 0x213   : > { %2039 = vmatmul.mubr.bf16.gmra.mrb[184].mxu1 %v7711_v24 }
 0x214   : > { %6038 = vmatprep.mubr.msk.bf16.mxu1 %vm1258_vm0, %v7867_v55 }
 0x216   : > { %v8362_v20 = vpop.f32.mrb[80].mxu1 }
 0x217   : > { %10768 = vst [vmem:[#allocation167_spill] sm:$0xff] %v8362_v20  ;;  %v8364_v18 = vpop.f32.mrb[81].mxu1 }
 0x218   : > { %10769 = vst [vmem:[#allocation168_spill] sm:$0xff] %v8364_v18  ;;  %v8366_v4 = vpop.f32.mrb[82].mxu1 }
 0x219   : > { %10770 = vst [vmem:[#allocation169_spill] sm:$0xff] %v8366_v4  ;;  %v8368_v6 = vpop.f32.mrb[83].mxu1 }
 0x21a   : > { %10771 = vst [vmem:[#allocation170_spill] sm:$0xff] %v8368_v6 }
 0x21b   : > { %2047 = vmatmul.mubr.bf16.gmra.mrb[188].mxu1 %v7873_v53 }
 0x21c   : > { %6039 = vmatprep.mubr.msk.bf16.mxu1 %vm1258_vm0, %v7417_v14 }
 0x21e   : > { %v8373_v39 = vpop.f32.mrb[84].mxu1 }
 0x21f   : > { %10772 = vst [vmem:[#allocation171_spill] sm:$0xff] %v8373_v39  ;;  %v8375_v44 = vpop.f32.mrb[85].mxu1 }
 0x220   : > { %10773 = vst [vmem:[#allocation172_spill] sm:$0xff] %v8375_v44  ;;  %v8377_v24 = vpop.f32.mrb[86].mxu1 }
 0x221   : > { %10774 = vst [vmem:[#allocation173_spill] sm:$0xff] %v8377_v24  ;;  %v8379_v55 = vpop.f32.mrb[87].mxu1 }
 0x222   : > { %10775 = vst [vmem:[#allocation174_spill] sm:$0xff] %v8379_v55 }
 0x223   : > { %2055 = vmatmul.mubr.bf16.gmra.mrb[192].mxu1 %v7463_v34 }
 0x224   : > { %6040 = vmatprep.mubr.msk.bf16.mxu1 %vm1258_vm0, %v7471_v38 }
 0x226   : > { %v8384_v4 = vpop.f32.mrb[88].mxu1 }
 0x227   : > { %10776 = vst [vmem:[#allocation175_spill] sm:$0xff] %v8384_v4  ;;  %v8386_v20 = vpop.f32.mrb[89].mxu1 }
 0x228   : > { %10777 = vst [vmem:[#allocation176_spill] sm:$0xff] %v8386_v20  ;;  %v8388_v53 = vpop.f32.mrb[90].mxu1 }
 0x229   : > { %10778 = vst [vmem:[#allocation177_spill] sm:$0xff] %v8388_v53  ;;  %v8390_v14 = vpop.f32.mrb[91].mxu1  ;;  %v8395_v24 = vpop.f32.mrb[44].mxu0 }
 0x22a   : > { %10779 = vst [vmem:[#allocation178_spill] sm:$0xff] %v8390_v14  ;;  %v8401_v38 = vpop.f32.mrb[45].mxu0 }
 0x22b   : > { %2063 = vmatmul.mubr.bf16.gmra.mrb[196].mxu1 %v7494_v49  ;;  %2623 = vrot.lane.b32.xlu0 %v8401_v38, %s6896_s16  ;;  %v8407_v53 = vpop.f32.mrb[46].mxu0 }
 0x22c   : > { %6041 = vmatprep.mubr.msk.bf16.mxu1 %vm1258_vm0, %v7498_v51  ;;  %v8411_v49 = vpop.f32.mrb[47].mxu0 }
 0x22e   : > { %v8397_v39 = vpop.f32.mrb[92].mxu1 }
 0x22f   : > { %10780 = vst [vmem:[#allocation179_spill] sm:$0xff] %v8397_v39  ;;  %v8399_v34 = vpop.f32.mrb[93].mxu1  ;;  %2627 = vrot.lane.b32.xlu0 %v8411_v49, %s6896_s16 }
 0x230   : > { %10781 = vst [vmem:[#allocation180_spill] sm:$0xff] %v8399_v34  ;;  %v8403_v4 = vpop.f32.mrb[94].mxu1 }
 0x231   : > { %10782 = vst [vmem:[#allocation181_spill] sm:$0xff] %v8403_v4  ;;  %v8409_v21 = vpop.f32.mrb[95].mxu1 }
 0x232   : > { %10783 = vst [vmem:[#allocation182_spill] sm:$0xff] %v8409_v21 }
 0x233   : > { %2071 = vmatmul.mubr.bf16.gmra.mrb[200].mxu1 %v7524_v63 }
 0x234   : > { %6042 = vmatprep.mubr.msk.bf16.mxu1 %vm1258_vm0, %v7528_v1 }
 0x236   : > { %v8418_v51 = vpop.f32.mrb[96].mxu1 }
 0x237   : > { %10784 = vst [vmem:[#allocation183_spill] sm:$0xff] %v8418_v51  ;;  %v8420_v4 = vpop.f32.mrb[97].mxu1 }
 0x238   : > { %v8422_v39 = vpop.f32.mrb[98].mxu1 }
 0x239   : > { %10785 = vst [vmem:[#allocation184_spill] sm:$0xff] %v8422_v39  ;;  %v8424_v56 = vpop.f32.mrb[99].mxu1 }
 0x23a   : > { %10786 = vst [vmem:[#allocation185_spill] sm:$0xff] %v8424_v56 }
 0x23b   : > { %2079 = vmatmul.mubr.bf16.gmra.mrb[204].mxu1 %v7551_v13 }
 0x23c   : > { %6043 = vmatprep.mubr.msk.bf16.mxu1 %vm1258_vm0, %v7555_v16 }
 0x23e   : > { %v8429_v63 = vpop.f32.mrb[100].mxu1 }
 0x23f   : > { %10787 = vst [vmem:[#allocation186_spill] sm:$0xff] %v8429_v63  ;;  %v8431_v54 = vpop.f32.mrb[101].mxu1  ;;  %v8449_v63 = vpop.permute.xlu0 %2631 }
 0x240   : > { %10788 = vst [vmem:[#allocation187_spill] sm:$0xff] %v8431_v54  ;;  %v8433_v1 = vpop.f32.mrb[102].mxu1  ;;  %10794 = vst [vmem:[#allocation193_spill] sm:$0xff] %v8449_v63 }
 0x241   : > { %10789 = vst [vmem:[#allocation188_spill] sm:$0xff] %v8433_v1  ;;  %v8435_v10 = vpop.f32.mrb[103].mxu1 }
 0x242   : > { %10790 = vst [vmem:[#allocation189_spill] sm:$0xff] %v8435_v10 }
 0x243   : > { %2087 = vmatmul.mubr.bf16.gmra.mrb[208].mxu1 %v7573_v26  ;;  %v8461_v29 = vpop.permute.xlu0 %2635 }
 0x244   : > { %6044 = vmatprep.mubr.msk.bf16.mxu1 %vm1258_vm0, %v7575_v27  ;;  %10799 = vst [vmem:[#allocation198_spill] sm:$0xff] %v8461_v29 }
 0x246   : > { %v8440_v39 = vpop.f32.mrb[104].mxu1 }
 0x247   : > { %10791 = vst [vmem:[#allocation190_spill] sm:$0xff] %v8440_v39  ;;  %v8442_v51 = vpop.f32.mrb[105].mxu1 }
 0x248   : > { %v8444_v13 = vpop.f32.mrb[106].mxu1 }
 0x249   : > { %10792 = vst [vmem:[#allocation191_spill] sm:$0xff] %v8444_v13  ;;  %v8446_v16 = vpop.f32.mrb[107].mxu1 }
 0x24a   : > { %10793 = vst [vmem:[#allocation192_spill] sm:$0xff] %v8446_v16 }
 0x24b   : > { %2095 = vmatmul.mubr.bf16.gmra.mrb[212].mxu1 %v7597_v43 }
 0x24c   : > { %6045 = vmatprep.mubr.msk.bf16.mxu1 %vm1258_vm0, %v7601_v45  ;;  %v8470_v45 = vpop.permute.xlu0 %2639 }
 0x24d   : > { %10802 = vst [vmem:[#allocation201_spill] sm:$0xff] %v8470_v45 }
 0x24e   : > { %v8453_v1 = vpop.f32.mrb[108].mxu1 }
 0x24f   : > { %10795 = vst [vmem:[#allocation194_spill] sm:$0xff] %v8453_v1  ;;  %v8455_v26 = vpop.f32.mrb[109].mxu1 }
 0x250   : > { %10796 = vst [vmem:[#allocation195_spill] sm:$0xff] %v8455_v26  ;;  %v8457_v27 = vpop.f32.mrb[110].mxu1 }
 0x251   : > { %10797 = vst [vmem:[#allocation196_spill] sm:$0xff] %v8457_v27  ;;  %v8459_v39 = vpop.f32.mrb[111].mxu1  ;;  %v8479_v27 = vpop.permute.xlu0 %2643 }
 0x252   : > { %10798 = vst [vmem:[#allocation197_spill] sm:$0xff] %v8459_v39  ;;  %10805 = vst [vmem:[#allocation204_spill] sm:$0xff] %v8479_v27 }
 0x253   : > { %2103 = vmatmul.mubr.bf16.gmra.mrb[216].mxu1 %v7619_v59 }
 0x254   : > { %6046 = vmatprep.mubr.msk.bf16.mxu1 %vm1258_vm0, %v7623_v61 }
 0x256   : > { %v8466_v43 = vpop.f32.mrb[112].mxu1 }
 0x257   : > { %10800 = vst [vmem:[#allocation199_spill] sm:$0xff] %v8466_v43  ;;  %v8468_v13 = vpop.f32.mrb[113].mxu1 }
 0x258   : > { %10801 = vst [vmem:[#allocation200_spill] sm:$0xff] %v8468_v13  ;;  %v8472_v1 = vpop.f32.mrb[114].mxu1 }
 0x259   : > { %10803 = vst [vmem:[#allocation202_spill] sm:$0xff] %v8472_v1  ;;  %v8474_v63 = vpop.f32.mrb[115].mxu1  ;;  %v8490_v1 = vpop.permute.xlu0 %2647 }
 0x25a   : > { %10804 = vst [vmem:[#allocation203_spill] sm:$0xff] %v8474_v63  ;;  %10810 = vst [vmem:[#allocation209_spill] sm:$0xff] %v8490_v1 }
 0x25b   : > { %2111 = vmatmul.mubr.bf16.gmra.mrb[220].mxu1 %v7641_v17 }
 0x25c   : > { %6047 = vmatprep.mubr.msk.bf16.mxu1 %vm1258_vm0, %v7645_v19 }
 0x25d   : > { %v8502_v45 = vpop.permute.xlu0 %2651 }
 0x25e   : > { %v8481_v59 = vpop.f32.mrb[116].mxu1  ;;  %10815 = vst [vmem:[#allocation214_spill] sm:$0xff] %v8502_v45 }
 0x25f   : > { %10806 = vst [vmem:[#allocation205_spill] sm:$0xff] %v8481_v59  ;;  %v8483_v61 = vpop.f32.mrb[117].mxu1 }
 0x260   : > { %10807 = vst [vmem:[#allocation206_spill] sm:$0xff] %v8483_v61  ;;  %v8485_v43 = vpop.f32.mrb[118].mxu1 }
 0x261   : > { %10808 = vst [vmem:[#allocation207_spill] sm:$0xff] %v8485_v43  ;;  %v8487_v29 = vpop.f32.mrb[119].mxu1 }
 0x262   : > { %10809 = vst [vmem:[#allocation208_spill] sm:$0xff] %v8487_v29 }
 0x263   : > { %2119 = vmatmul.mubr.bf16.gmra.mrb[224].mxu1 %v7663_v35 }
 0x264   : > { %6048 = vmatprep.mubr.msk.bf16.mxu1 %vm1258_vm0, %v7667_v40  ;;  %v8511_v40 = vpop.permute.xlu0 %2655 }
 0x265   : > { %10818 = vst [vmem:[#allocation217_spill] sm:$0xff] %v8511_v40  ;;  %v10827_v40 = vld [vmem:[#allocation4_spill] sm:$0xff] }
 0x266   : > { %v8494_v17 = vpop.f32.mrb[120].mxu1 }
 0x267   : > { %10811 = vst [vmem:[#allocation210_spill] sm:$0xff] %v8494_v17  ;;  %v8496_v19 = vpop.f32.mrb[121].mxu1 }
 0x268   : > { %10812 = vst [vmem:[#allocation211_spill] sm:$0xff] %v8496_v19  ;;  %v8498_v27 = vpop.f32.mrb[122].mxu1  ;;  %v8520_v45 = vpop.permute.xlu0 %2659  ;;  %v10860_v19 = vld [vmem:[#allocation17_spill] sm:$0xff] }
 0x269   : > { %10813 = vst [vmem:[#allocation212_spill] sm:$0xff] %v8498_v27  ;;  %v8500_v59 = vpop.f32.mrb[123].mxu1  ;;  %v10821_v27 = vld [vmem:[#allocation3_spill] sm:$0xff] }
 0x26a   : > { %10814 = vst [vmem:[#allocation213_spill] sm:$0xff] %v8500_v59  ;;  %10822 = vst [vmem:[#allocation3_spill] sm:$0xff] %v8520_v45 }
 0x26b   : > { %2127 = vmatmul.mubr.bf16.gmra.mrb[228].mxu1 %v7689_v3 }
 0x26c   : > { %6049 = vmatprep.mubr.msk.bf16.mxu1 %vm1258_vm0, %v7693_v5 }
 0x26e   : > { %v8507_v35 = vpop.f32.mrb[124].mxu1 }
 0x26f   : > { %10816 = vst [vmem:[#allocation215_spill] sm:$0xff] %v8507_v35  ;;  %v8509_v43 = vpop.f32.mrb[125].mxu1 }
 0x270   : > { %10817 = vst [vmem:[#allocation216_spill] sm:$0xff] %v8509_v43  ;;  %v8513_v17 = vpop.f32.mrb[126].mxu1 }
 0x271   : > { %10819 = vst [vmem:[#allocation218_spill] sm:$0xff] %v8513_v17  ;;  %v8515_v1 = vpop.f32.mrb[127].mxu1  ;;  %v8531_v17 = vpop.permute.xlu0 %2567 }
 0x272   : > { %10820 = vst [vmem:[#allocation219_spill] sm:$0xff] %v8515_v1  ;;  %v10828_v1 = vld [vmem:[#allocation5_spill] sm:$0xff] }
 0x273   : > { %2135 = vmatmul.mubr.bf16.gmra.mrb[232].mxu1 %v7709_v23 }
 0x274   : > { %6050 = vmatprep.mubr.msk.bf16.mxu1 %vm1258_vm0, %v10821_v27 }
 0x276   : > { %v8522_v3 = vpop.f32.mrb[128].mxu1 }
 0x277   : > { %10823 = vst [vmem:[#allocation220_spill] sm:$0xff] %v8522_v3  ;;  %v8524_v5 = vpop.f32.mrb[129].mxu1 }
 0x278   : > { %10824 = vst [vmem:[#allocation221_spill] sm:$0xff] %v8524_v5  ;;  %v8526_v35 = vpop.f32.mrb[130].mxu1  ;;  %v8543_v5 = vpop.permute.xlu0 %2663 }
 0x279   : > { %10825 = vst [vmem:[#allocation222_spill] sm:$0xff] %v8526_v35  ;;  %v8528_v43 = vpop.f32.mrb[131].mxu1  ;;  %10833 = vst [vmem:[#allocation226_spill] sm:$0xff] %v8543_v5  ;;  %v10834_v35 = vld [vmem:[#allocation6_spill] sm:$0xff] }
 0x27a   : > { %10826 = vst [vmem:[#allocation223_spill] sm:$0xff] %v8528_v43  ;;  %v10835_v43 = vld [vmem:[#allocation7_spill] sm:$0xff] }
 0x27b   : > { %2143 = vmatmul.mubr.bf16.gmra.mrb[236].mxu1 %v10827_v40 }
 0x27c   : > { %6051 = vmatprep.mubr.msk.bf16.mxu1 %vm1258_vm0, %v10828_v1  ;;  %v8552_v1 = vpop.permute.xlu0 %2667 }
 0x27d   : > { %10838 = vst [vmem:[#allocation227_spill] sm:$0xff] %v8552_v1  ;;  %v10847_v1 = vld [vmem:[#allocation10_spill] sm:$0xff] }
 0x27e   : > { %v8535_v23 = vpop.f32.mrb[132].mxu1 }
 0x27f   : > { %10829 = vst [vmem:[#allocation4_spill] sm:$0xff] %v8535_v23  ;;  %v8537_v27 = vpop.f32.mrb[133].mxu1 }
 0x280   : > { %10830 = vst [vmem:[#allocation5_spill] sm:$0xff] %v8537_v27  ;;  %v8539_v45 = vpop.f32.mrb[134].mxu1  ;;  %v8561_v5 = vpop.permute.xlu0 %2575 }
 0x281   : > { %10831 = vst [vmem:[#allocation224_spill] sm:$0xff] %v8539_v45  ;;  %v8541_v3 = vpop.f32.mrb[135].mxu1  ;;  %v10841_v45 = vld [vmem:[#allocation8_spill] sm:$0xff] }
 0x282   : > { %10832 = vst [vmem:[#allocation225_spill] sm:$0xff] %v8541_v3  ;;  %v10842_v3 = vld [vmem:[#allocation9_spill] sm:$0xff] }
 0x283   : > { %2151 = vmatmul.mubr.bf16.gmra.mrb[240].mxu1 %v10834_v35 }
 0x284   : > { %6052 = vmatprep.mubr.msk.bf16.mxu1 %vm1258_vm0, %v10835_v43 }
 0x286   : > { %v8548_v40 = vpop.f32.mrb[136].mxu1 }
 0x287   : > { %10836 = vst [vmem:[#allocation6_spill] sm:$0xff] %v8548_v40  ;;  %v8550_v29 = vpop.f32.mrb[137].mxu1 }
 0x288   : > { %10837 = vst [vmem:[#allocation7_spill] sm:$0xff] %v8550_v29  ;;  %v8554_v23 = vpop.f32.mrb[138].mxu1 }
 0x289   : > { %10839 = vst [vmem:[#allocation228_spill] sm:$0xff] %v8554_v23  ;;  %v8556_v27 = vpop.f32.mrb[139].mxu1  ;;  %v8572_v23 = vpop.permute.xlu0 %2671 }
 0x28a   : > { %10840 = vst [vmem:[#allocation229_spill] sm:$0xff] %v8556_v27  ;;  %10848 = vst [vmem:[#allocation10_spill] sm:$0xff] %v8572_v23  ;;  %v10849_v27 = vld [vmem:[#allocation11_spill] sm:$0xff] }
 0x28b   : > { %2159 = vmatmul.mubr.bf16.gmra.mrb[244].mxu1 %v10841_v45 }
 0x28c   : > { %6053 = vmatprep.mubr.msk.bf16.mxu1 %vm1258_vm0, %v10842_v3 }
 0x28e   : > { %v8563_v35 = vpop.f32.mrb[140].mxu1 }
 0x28f   : > { %10843 = vst [vmem:[#allocation8_spill] sm:$0xff] %v8563_v35  ;;  %v8565_v43 = vpop.f32.mrb[141].mxu1  ;;  %v6783_v35 = vld [vmem:[%s10427_s3 + $0x60] sm:$0xff]  }
 0x290   : > { %10844 = vst [vmem:[#allocation9_spill] sm:$0xff] %v8565_v43  ;;  %v8567_v40 = vpop.f32.mrb[142].mxu1  ;;  %3918 = vmatpush1.bf16.msra.mxu0 %v6783_v35  ;;  %v6785_v35 = vld [vmem:[%s10427_s3 + $0x70] sm:$0xff]  }
 0x291   : > { %10845 = vst [vmem:[#allocation230_spill] sm:$0xff] %v8567_v40  ;;  %v8569_v29 = vpop.f32.mrb[143].mxu1  ;;  %v8580_v40 = vpop.permute.xlu0 %2579 }
 0x292   : > { %10846 = vst [vmem:[#allocation231_spill] sm:$0xff] %v8569_v29  ;;  %v10850_v29 = vld [vmem:[#allocation12_spill] sm:$0xff] }
 0x293   : > { %2167 = vmatmul.mubr.bf16.gmra.mrb[248].mxu1 %v10847_v1  ;;  %v10851_v1 = vld [vmem:[#allocation13_spill] sm:$0xff] }
 0x294   : > { %6054 = vmatprep.mubr.msk.bf16.mxu1 %vm1258_vm0, %v10849_v27  ;;  %v10852_v27 = vmov 0  }
 0x295   : > { %3919 = vmatprep.subr.bf16.mxu0 %v10852_v27  ;;  %v8592_v23 = vpop.permute.xlu0 %2675 }
 0x296   : > { %v1960_v45 = vpop.f32.mrb[144].mxu1  ;;  %10854 = vst [vmem:[#allocation12_spill] sm:$0xff] %v8592_v23 }
 0x297   : > { %v1962_v61 = vpop.f32.mrb[145].mxu1  ;;  %2537 = vrot.lane.b32.xlu1 %v1960_v45, %s6896_s16 }
 0x298   : > { %v1963_v3 = vpop.f32.mrb[146].mxu1 }
 0x299   : > { %v1965_v59 = vpop.f32.mrb[147].mxu1 }
 0x29a   : > { %v6784_v59 = vld [vmem:[%s10427_s3 + $0x68] sm:$0xff]  }
 0x29b   : > { %2175 = vmatmul.mubr.bf16.gmra.mrb[252].mxu1 %v10850_v29  ;;  %2541 = vrot.lane.b32.xlu1 %v1963_v3, %s6896_s16  ;;  %v10856_v3 = vld [vmem:[#allocation14_spill] sm:$0xff] }
 0x29c   : > { %6055 = vmatprep.mubr.msk.bf16.mxu1 %vm1258_vm0, %v10851_v1  ;;  %3920 = vmatpush1.bf16.msra.mxu0 %v6784_v59  ;;  %v10857_v1 = vld [vmem:[#allocation15_spill] sm:$0xff]  ;;  %v8607_v59 = vpop.permute.xlu0 %2583 }
 0x29d   : > { %3921 = vmatprep.subr.bf16.mxu0 %v10852_v27 }
 0x29e   : > { %v8590_v61 = vpop.f32.mrb[148].mxu1 }
 0x29f   : > { %10853 = vst [vmem:[#allocation11_spill] sm:$0xff] %v8590_v61  ;;  %v1970_v45 = vpop.f32.mrb[149].mxu1 }
 0x2a0   : > { %v8594_v43 = vpop.f32.mrb[150].mxu1  ;;  %3922 = vmatpush1.bf16.msra.mxu0 %v6785_v35  ;;  %v6786_v45 = vld [vmem:[%s10427_s3 + $0x78] sm:$0xff]   ;;  %v6787_v35 = vld [vmem:[%s10427_s3 + $0x80] sm:$0xff]  }
 0x2a1   : > { %10855 = vst [vmem:[#allocation13_spill] sm:$0xff] %v8594_v43  ;;  %v1973_v29 = vpop.f32.mrb[151].mxu1  ;;  %3923 = vmatprep.subr.bf16.mxu0 %v10852_v27 }
 0x2a3   : > { %2183 = vmatmul.mubr.bf16.gmra.mrb[0].mxu1 %v10856_v3  ;;  %v10858_v3 = vld [vmem:[#allocation16_spill] sm:$0xff] }
 0x2a4   : > { %6056 = vmatprep.mubr.msk.bf16.mxu1 %vm1258_vm0, %v10857_v1  ;;  %3924 = vmatpush1.bf16.msra.mxu0 %v6786_v45  ;;  %v8616_v1 = vpop.permute.xlu0 %2679 }
 0x2a5   : > { %3925 = vmatprep.subr.bf16.mxu0 %v10852_v27  ;;  %10859 = vst [vmem:[#allocation14_spill] sm:$0xff] %v8616_v1  ;;  %v10864_v1 = vld [vmem:[#allocation19_spill] sm:$0xff] }
 0x2a6   : > { %v1976_v29 = vpop.f32.mrb[152].mxu1 }
 0x2a7   : > { %v1978_v43 = vpop.f32.mrb[153].mxu1  ;;  %2553 = vrot.lane.b32.xlu1 %v1976_v29, %s6896_s16 }
 0x2a8   : > { %v1979_v61 = vpop.f32.mrb[154].mxu1  ;;  %3926 = vmatpush1.bf16.msra.mxu0 %v6787_v35  ;;  %v10863_v35 = vld [vmem:[#allocation18_spill] sm:$0xff] }
 0x2a9   : > { %v1981_v23 = vpop.f32.mrb[155].mxu1  ;;  %3927 = vmatprep.subr.bf16.mxu0 %v10852_v27 }
 0x2aa   : > { %v6788_v23 = vld [vmem:[%s10427_s3 + $0x88] sm:$0xff]  }
 0x2ab   : > { %2191 = vmatmul.mubr.bf16.gmra.mrb[4].mxu1 %v10858_v3  ;;  %2557 = vrot.lane.b32.xlu1 %v1979_v61, %s6896_s16  ;;  %v8632_v61 = vpop.permute.xlu0 %2587 }
 0x2ac   : > { %6057 = vmatprep.mubr.msk.bf16.mxu1 %vm1258_vm0, %v10860_v19  ;;  %3928 = vmatpush1.bf16.msra.mxu0 %v6788_v23  ;;  %v6789_v19 = vld [vmem:[%s10427_s3 + $0x90] sm:$0xff]   ;;  %v6790_v23 = vld [vmem:[%s10427_s3 + $0x98] sm:$0xff]  }
 0x2ad   : > { %3929 = vmatprep.subr.bf16.mxu0 %v10852_v27 }
 0x2ae   : > { %v8624_v43 = vpop.f32.mrb[156].mxu1 }
 0x2af   : > { %10861 = vst [vmem:[#allocation15_spill] sm:$0xff] %v8624_v43  ;;  %v1986_v45 = vpop.f32.mrb[157].mxu1 }
 0x2b0   : > { %v8626_v29 = vpop.f32.mrb[158].mxu1  ;;  %3930 = vmatpush1.bf16.msra.mxu0 %v6789_v19  ;;  %v10866_v19 = vld [vmem:[#allocation20_spill] sm:$0xff] }
 0x2b1   : > { %10862 = vst [vmem:[#allocation16_spill] sm:$0xff] %v8626_v29  ;;  %v1989_v3 = vpop.f32.mrb[159].mxu1  ;;  %3931 = vmatprep.subr.bf16.mxu0 %v10852_v27  ;;  %v8642_v29 = vpop.permute.xlu0 %2683 }
 0x2b2   : > { %10865 = vst [vmem:[#allocation17_spill] sm:$0xff] %v8642_v29 }
 0x2b3   : > { %2199 = vmatmul.mubr.bf16.gmra.mrb[8].mxu1 %v10863_v35  ;;  %v10867_v35 = vld [vmem:[#allocation21_spill] sm:$0xff] }
 0x2b4   : > { %6058 = vmatprep.mubr.msk.bf16.mxu1 %vm1258_vm0, %v10864_v1  ;;  %3932 = vmatpush1.bf16.msra.mxu0 %v6790_v23  ;;  %v6791_v1 = vld [vmem:[%s10427_s3 + $0xa0] sm:$0xff]  }
 0x2b5   : > { %3933 = vmatprep.subr.bf16.mxu0 %v10852_v27 }
 0x2b6   : > { %v1992_v45 = vpop.f32.mrb[160].mxu1 }
 0x2b7   : > { %v1994_v3 = vpop.f32.mrb[161].mxu1  ;;  %2569 = vrot.lane.b32.xlu0 %v1992_v45, %s6896_s16 }
 0x2b8   : > { %v1995_v43 = vpop.f32.mrb[162].mxu1  ;;  %3934 = vmatpush1.bf16.msra.mxu0 %v6791_v1  ;;  %v6793_v1 = vld [vmem:[%s10427_s3 + $0xb0] sm:$0xff]  }
 0x2b9   : > { %v1997_v63 = vpop.f32.mrb[163].mxu1  ;;  %2573 = vrot.lane.b32.xlu1 %v1995_v43, %s6896_s16  ;;  %3935 = vmatprep.subr.bf16.mxu0 %v10852_v27  ;;  %v8658_v43 = vpop.permute.xlu0 %2591 }
 0x2ba   : > { %v6792_v63 = vld [vmem:[%s10427_s3 + $0xa8] sm:$0xff]  }
 0x2bb   : > { %2207 = vmatmul.mubr.bf16.gmra.mrb[12].mxu1 %v10866_v19  ;;  %2719 = vrot.lane.b32.xlu0 %v8239_v37, %s6896_s16 }
 0x2bc   : > { %6059 = vmatprep.mubr.msk.bf16.mxu1 %vm1258_vm0, %v10867_v35  ;;  %3936 = vmatpush1.bf16.msra.mxu0 %v6792_v63  ;;  %v10868_v35 = vld [vmem:[#allocation22_spill] sm:$0xff] }
 0x2bd   : > { %3937 = vmatprep.subr.bf16.mxu0 %v10852_v27  ;;  %v8669_v37 = vpop.permute.xlu0 %2687  ;;  %v6794_v63 = vld [vmem:[%s10427_s3 + $0xb8] sm:$0xff]  }
 0x2be   : > { %v2000_v23 = vpop.f32.mrb[164].mxu1  ;;  %10869 = vst [vmem:[#allocation18_spill] sm:$0xff] %v8669_v37  ;;  %v10906_v37 = vld [vmem:[#allocation90_spill] sm:$0xff] }
 0x2bf   : > { %v2002_v45 = vpop.f32.mrb[165].mxu1  ;;  %2577 = vrot.lane.b32.xlu1 %v2000_v23, %s6896_s16  ;;  %2723 = vrot.lane.b32.xlu0 %v8245_v57, %s6896_s16  ;;  %v10870_v23 = vld [vmem:[#allocation23_spill] sm:$0xff] }
 0x2c0   : > { %v2003_v3 = vpop.f32.mrb[166].mxu1  ;;  %3938 = vmatpush1.bf16.msra.mxu0 %v6793_v1  ;;  %v10871_v1 = vld [vmem:[#allocation24_spill] sm:$0xff]  ;;  %v10902_v57 = vld [vmem:[#allocation83_spill] sm:$0xff] }
 0x2c1   : > { %v2005_v19 = vpop.f32.mrb[167].mxu1  ;;  %3939 = vmatprep.subr.bf16.mxu0 %v10852_v27 }
 0x2c3   : > { %2215 = vmatmul.mubr.bf16.gmra.mrb[16].mxu1 %v10868_v35  ;;  %2581 = vrot.lane.b32.xlu1 %v2003_v3, %s6896_s16 }
 0x2c4   : > { %2727 = vrot.lane.b32.xlu0 %v8254_v50, %s6896_s16  ;;  %6060 = vmatprep.mubr.msk.bf16.mxu1 %vm1258_vm0, %v10870_v23  ;;  %v8682_v50 = vpop.permute.xlu0 %2595  ;;  %v10872_v23 = vld [vmem:[#allocation25_spill] sm:$0xff] }
 0x2c5   : > { %3940 = vmatpush1.bf16.msra.mxu0 %v6794_v63 }
 0x2c6   : > { %v2008_v45 = vpop.f32.mrb[168].mxu1  ;;  %4156 = vmatprep.subr.bf16.mxu0 %v10852_v27 }
 0x2c7   : > { %v2010_v19 = vpop.f32.mrb[169].mxu1  ;;  %2585 = vrot.lane.b32.xlu1 %v2008_v45, %s6896_s16 }
 0x2c8   : > { %2731 = vrot.lane.b32.xlu0 %v8260_v12, %s6896_s16  ;;  %v2011_v3 = vpop.f32.mrb[170].mxu1 }
 0x2c9   : > { %v2013_v35 = vpop.f32.mrb[171].mxu1 }
 0x2ca   : > { %v8692_v35 = vpop.permute.xlu0 %2691 }
 0x2cb   : > { %2223 = vmatmul.mubr.bf16.gmra.mrb[20].mxu1 %v10871_v1  ;;  %2589 = vrot.lane.b32.xlu1 %v2011_v3, %s6896_s16  ;;  %10873 = vst [vmem:[#allocation19_spill] sm:$0xff] %v8692_v35  ;;  %v10874_v1 = vld [vmem:[#allocation26_spill] sm:$0xff]  ;;  %v10875_v3 = vld [vmem:[#allocation27_spill] sm:$0xff] }
 0x2cc   : > { %2743 = vrot.lane.b32.xlu0 %v8284_v15, %s6896_s16  ;;  %6061 = vmatprep.mubr.msk.bf16.mxu1 %vm1258_vm0, %v10872_v23 }
 0x2ce   : > { %v2016_v45 = vpop.f32.mrb[172].mxu1  ;;  %v8702_v23 = vpop.permute.xlu0 %2599 }
 0x2cf   : > { %v2018_v19 = vpop.f32.mrb[173].mxu1  ;;  %2593 = vrot.lane.b32.xlu1 %v2016_v45, %s6896_s16 }
 0x2d0   : > { %2747 = vrot.lane.b32.xlu0 %v8290_v48, %s6896_s16  ;;  %v2019_v63 = vpop.f32.mrb[174].mxu1 }
 0x2d1   : > { %v2021_v12 = vpop.f32.mrb[175].mxu1 }
 0x2d3   : > { %2231 = vmatmul.mubr.bf16.gmra.mrb[24].mxu1 %v10874_v1  ;;  %2597 = vrot.lane.b32.xlu1 %v2019_v63, %s6896_s16  ;;  %v10876_v1 = vld [vmem:[#allocation28_spill] sm:$0xff]  ;;  %v8709_v63 = vpop.permute.xlu0 %2695 }
 0x2d4   : > { %2735 = vrot.lane.b32.xlu0 %v8269_v0, %s6896_s16  ;;  %6062 = vmatprep.mubr.msk.bf16.mxu1 %vm1258_vm0, %v10875_v3  ;;  %10877 = vst [vmem:[#allocation20_spill] sm:$0xff] %v8709_v63  ;;  %v10878_v3 = vld [vmem:[#allocation29_spill] sm:$0xff] }
 0x2d6   : > { %v2024_v45 = vpop.f32.mrb[176].mxu1 }
 0x2d7   : > { %v2026_v19 = vpop.f32.mrb[177].mxu1  ;;  %2601 = vrot.lane.b32.xlu1 %v2024_v45, %s6896_s16 }
 0x2d8   : > { %2739 = vrot.lane.b32.xlu0 %v8275_v36, %s6896_s16  ;;  %v2027_v12 = vpop.f32.mrb[178].mxu1  ;;  %v10880_v36 = vld [vmem:[#allocation31_spill] sm:$0xff] }
 0x2d9   : > { %v2029_v48 = vpop.f32.mrb[179].mxu1 }
 0x2db   : > { %2239 = vmatmul.mubr.bf16.gmra.mrb[28].mxu1 %v10876_v1  ;;  %2605 = vrot.lane.b32.xlu1 %v2027_v12, %s6896_s16  ;;  %v8718_v1 = vpop.permute.xlu0 %2603  ;;  %v10879_v12 = vld [vmem:[#allocation30_spill] sm:$0xff] }
 0x2dc   : > { %2751 = vrot.lane.b32.xlu0 %v8299_v28, %s6896_s16  ;;  %6063 = vmatprep.mubr.msk.bf16.mxu1 %vm1258_vm0, %v10878_v3 }
 0x2de   : > { %v2032_v19 = vpop.f32.mrb[180].mxu1 }
 0x2df   : > { %v2034_v0 = vpop.f32.mrb[181].mxu1  ;;  %2609 = vrot.lane.b32.xlu1 %v2032_v19, %s6896_s16  ;;  %v8727_v19 = vpop.permute.xlu0 %2699 }
 0x2e0   : > { %2755 = vrot.lane.b32.xlu0 %v8305_v62, %s6896_s16  ;;  %v2035_v48 = vpop.f32.mrb[182].mxu1  ;;  %10881 = vst [vmem:[#allocation21_spill] sm:$0xff] %v8727_v19 }
 0x2e1   : > { %v2037_v45 = vpop.f32.mrb[183].mxu1 }
 0x2e3   : > { %2613 = vrot.lane.b32.xlu1 %v2035_v48, %s6896_s16  ;;  %2247 = vmatmul.mubr.bf16.gmra.mrb[32].mxu1 %v10879_v12  ;;  %v10882_v48 = vld [vmem:[#allocation32_spill] sm:$0xff]  ;;  %v10883_v12 = vld [vmem:[#allocation33_spill] sm:$0xff] }
 0x2e4   : > { %2759 = vrot.lane.b32.xlu0 %v8314_v46, %s6896_s16  ;;  %6064 = vmatprep.mubr.msk.bf16.mxu1 %vm1258_vm0, %v10880_v36  ;;  %v8737_v36 = vpop.permute.xlu0 %2607 }
 0x2e6   : > { %v2040_v0 = vpop.f32.mrb[184].mxu1 }
 0x2e7   : > { %v2042_v3 = vpop.f32.mrb[185].mxu1  ;;  %2617 = vrot.lane.b32.xlu1 %v2040_v0, %s6896_s16 }
 0x2e8   : > { %2763 = vrot.lane.b32.xlu0 %v8320_v11, %s6896_s16  ;;  %v2043_v45 = vpop.f32.mrb[186].mxu1 }
 0x2e9   : > { %v2045_v62 = vpop.f32.mrb[187].mxu1 }
 0x2eb   : > { %2621 = vrot.lane.b32.xlu1 %v2043_v45, %s6896_s16  ;;  %2255 = vmatmul.mubr.bf16.gmra.mrb[36].mxu1 %v10882_v48  ;;  %v10884_v45 = vld [vmem:[#allocation34_spill] sm:$0xff]  ;;  %v8744_v48 = vpop.permute.xlu0 %2703 }
 0x2ec   : > { %2775 = vrot.lane.b32.xlu0 %v8342_v31, %s6896_s16  ;;  %6065 = vmatprep.mubr.msk.bf16.mxu1 %vm1258_vm0, %v10883_v12  ;;  %10885 = vst [vmem:[#allocation22_spill] sm:$0xff] %v8744_v48  ;;  %v10886_v12 = vld [vmem:[#allocation35_spill] sm:$0xff] }
 0x2ee   : > { %v2048_v0 = vpop.f32.mrb[188].mxu1 }
 0x2ef   : > { %v2050_v3 = vpop.f32.mrb[189].mxu1  ;;  %2625 = vrot.lane.b32.xlu1 %v2048_v0, %s6896_s16 }
 0x2f0   : > { %2779 = vrot.lane.b32.xlu0 %v8346_v60, %s6896_s16  ;;  %v2051_v62 = vpop.f32.mrb[190].mxu1 }
 0x2f1   : > { %v2053_v11 = vpop.f32.mrb[191].mxu1 }
 0x2f3   : > { %2629 = vrot.lane.b32.xlu1 %v2051_v62, %s6896_s16  ;;  %2263 = vmatmul.mubr.bf16.gmra.mrb[40].mxu1 %v10884_v45  ;;  %v8753_v62 = vpop.permute.xlu0 %2611  ;;  %v10887_v45 = vld [vmem:[#allocation39_spill] sm:$0xff] }
 0x2f4   : > { %2767 = vrot.lane.b32.xlu0 %v8329_v2, %s6896_s16  ;;  %6066 = vmatprep.mubr.msk.bf16.mxu1 %vm1258_vm0, %v10886_v12  ;;  %v10888_v2 = vld [vmem:[#allocation42_spill] sm:$0xff] }
 0x2f6   : > { %v2056_v3 = vpop.f32.mrb[192].mxu1 }
 0x2f7   : > { %v2058_v31 = vpop.f32.mrb[193].mxu1  ;;  %2633 = vrot.lane.b32.xlu1 %v2056_v3, %s6896_s16  ;;  %v8762_v3 = vpop.permute.xlu0 %2707 }
 0x2f8   : > { %2771 = vrot.lane.b32.xlu0 %v8335_v25, %s6896_s16  ;;  %v2059_v11 = vpop.f32.mrb[194].mxu1  ;;  %10889 = vst [vmem:[#allocation23_spill] sm:$0xff] %v8762_v3 }
 0x2f9   : > { %v2061_v0 = vpop.f32.mrb[195].mxu1 }
 0x2fb   : > { %2637 = vrot.lane.b32.xlu1 %v2059_v11, %s6896_s16  ;;  %2271 = vmatmul.mubr.bf16.gmra.mrb[44].mxu1 %v10887_v45  ;;  %v10890_v11 = vld [vmem:[#allocation49_spill] sm:$0xff]  ;;  %v10891_v45 = vld [vmem:[#allocation52_spill] sm:$0xff] }
 0x2fc   : > { %2783 = vrot.lane.b32.xlu0 %v8353_v22, %s6896_s16  ;;  %6067 = vmatprep.mubr.msk.bf16.mxu1 %vm1258_vm0, %v10888_v2  ;;  %v8772_v2 = vpop.permute.xlu0 %2615 }
 0x2fe   : > { %v2064_v31 = vpop.f32.mrb[196].mxu1 }
 0x2ff   : > { %v2066_v12 = vpop.f32.mrb[197].mxu1  ;;  %2641 = vrot.lane.b32.xlu1 %v2064_v31, %s6896_s16 }
 0x300   : > { %2787 = vrot.lane.b32.xlu0 %v8357_v41, %s6896_s16  ;;  %v2067_v0 = vpop.f32.mrb[198].mxu1  ;;  %v8777_v41 = vpop.permute.xlu1 %2571 }
 0x301   : > { %v2069_v25 = vpop.f32.mrb[199].mxu1 }
 0x303   : > { %2645 = vrot.lane.b32.xlu1 %v2067_v0, %s6896_s16  ;;  %2279 = vmatmul.mubr.bf16.gmra.mrb[48].mxu1 %v10890_v11  ;;  %v10892_v11 = vld [vmem:[#allocation59_spill] sm:$0xff] }
 0x304   : > { %2791 = vrot.lane.b32.xlu0 %v8364_v18, %s6896_s16  ;;  %6068 = vmatprep.mubr.msk.bf16.mxu1 %vm1258_vm0, %v10891_v45  ;;  %v8781_v18 = vpop.permute.xlu0 %2711  ;;  %v10894_v45 = vld [vmem:[#allocation63_spill] sm:$0xff] }
 0x305   : > { %10893 = vst [vmem:[#allocation24_spill] sm:$0xff] %v8781_v18 }
 0x306   : > { %v2072_v31 = vpop.f32.mrb[200].mxu1 }
 0x307   : > { %v2074_v12 = vpop.f32.mrb[201].mxu1  ;;  %2649 = vrot.lane.b32.xlu1 %v2072_v31, %s6896_s16 }
 0x308   : > { %2795 = vrot.lane.b32.xlu0 %v8368_v6, %s6896_s16  ;;  %v2075_v25 = vpop.f32.mrb[202].mxu1  ;;  %v8792_v22 = vpop.permute.xlu0 %2619 }
 0x309   : > { %v2077_v0 = vpop.f32.mrb[203].mxu1  ;;  %v8787_v12 = vpop.permute.xlu1 %2537 }
 0x30a   : > { %v3498_v0 = vlaneseq }
 0x30b   : > { %2653 = vrot.lane.b32.xlu1 %v2075_v25, %s6896_s16  ;;  %2287 = vmatmul.mubr.bf16.gmra.mrb[52].mxu1 %v10892_v11 }
 0x30c   : > { %2807 = vrot.lane.b32.xlu0 %v8386_v20, %s6896_s16  ;;  %6069 = vmatprep.mubr.msk.bf16.mxu1 %vm1258_vm0, %v10894_v45  ;;  %v10895_v20 = vld [vmem:[#allocation70_spill] sm:$0xff]  ;;  %v8798_v45 = vshrl.u32 %v3498_v0, 7  ;;  %v8813_v0 = vld [vmem:[%s10426_s2] sm:$0x3] }
 0x30e   : > { %v2080_v31 = vpop.f32.mrb[204].mxu1 }
 0x30f   : > { %v2082_v6 = vpop.f32.mrb[205].mxu1  ;;  %2657 = vrot.lane.b32.xlu1 %v2080_v31, %s6896_s16  ;;  %v8802_v31 = vpop.permute.xlu1 %2541 }
 0x310   : > { %2811 = vrot.lane.b32.xlu0 %v8390_v14, %s6896_s16  ;;  %v2083_v25 = vpop.f32.mrb[206].mxu1  ;;  %v10896_v6 = vld [vmem:[#allocation73_spill] sm:$0xff] }
 0x311   : > { %v2085_v11 = vpop.f32.mrb[207].mxu1 }
 0x312   : > { %v8805_v11 = vpop.permute.xlu0 %2715 }
 0x313   : > { %2661 = vrot.lane.b32.xlu1 %v2083_v25, %s6896_s16  ;;  %2295 = vmatmul.mubr.bf16.gmra.mrb[56].mxu1 %v10895_v20  ;;  %10897 = vst [vmem:[#allocation25_spill] sm:$0xff] %v8805_v11  ;;  %v3504_v25 = vsub.s32 1, %v8798_v45  ;;  %v10904_v11 = vld [vmem:[#allocation45_spill] sm:$0xff] }
 0x314   : > { %2799 = vrot.lane.b32.xlu0 %v8375_v44, %s6896_s16  ;;  %6070 = vmatprep.mubr.msk.bf16.mxu1 %vm1258_vm0, %v10896_v6  ;;  %v3211_v19 = vmax.f32 %v10904_v11, %v8802_v31 }
 0x315   : > { %v8824_v15 = vrot.slane %v8813_v0, %v3504_v25 }
 0x316   : > { %v2088_v14 = vpop.f32.mrb[208].mxu1  ;;  %v8832_v48 = vpop.permute.xlu0 %2623 }
 0x317   : > { %v2090_v60 = vpop.f32.mrb[209].mxu1  ;;  %2665 = vrot.lane.b32.xlu1 %v2088_v14, %s6896_s16  ;;  %v10900_v14 = vld [vmem:[#allocation60_spill] sm:$0xff] }
 0x318   : > { %2803 = vrot.lane.b32.xlu0 %v8379_v55, %s6896_s16  ;;  %v2091_v20 = vpop.f32.mrb[210].mxu1  ;;  %v10899_v60 = vld [vmem:[#allocation40_spill] sm:$0xff] }
 0x319   : > { %v2093_v44 = vpop.f32.mrb[211].mxu1  ;;  %v8815_v6 = vpop.permute.xlu1 %2553  ;;  %v3209_v46 = vmax.f32 %v10899_v60, %v8787_v12  ;;  %v10901_v55 = vld [vmem:[#allocation80_spill] sm:$0xff] }
 0x31a   : > { %10898 = vst [vmem:[#allocation26_spill] sm:$0xff] %v8815_v6  ;;  %v3217_v28 = vmax.f32 %v10900_v14, %v8815_v6  ;;  %v8844_v35 = vpop.permute.xlu0 %2627 }
 0x31b   : > { %2669 = vrot.lane.b32.xlu1 %v2091_v20, %s6896_s16  ;;  %2303 = vmatmul.mubr.bf16.gmra.mrb[60].mxu1 %v10901_v55  ;;  %v10905_v20 = vld [vmem:[#allocation65_spill] sm:$0xff] }
 0x31c   : > { %v3401_v44 = vmax.f32 %v3209_v46, %v3217_v28  ;;  %2815 = vrot.lane.b32.xlu0 %v8399_v34, %s6896_s16  ;;  %6071 = vmatprep.mubr.msk.bf16.mxu1 %vm1258_vm0, %v10902_v57 }
 0x31d   : > { %v8830_v3 = vpop.permute.xlu1 %2557 }
 0x31e   : > { %10903 = vst [vmem:[#allocation27_spill] sm:$0xff] %v8830_v3  ;;  %v3219_v55 = vmax.f32 %v10905_v20, %v8830_v3  ;;  %v2096_v18 = vpop.f32.mrb[212].mxu1  ;;  %v3509_v28 = vadd.f32 %v8824_v15, %v3401_v44 }
 0x31f   : > { %v2098_v25 = vpop.f32.mrb[213].mxu1  ;;  %2673 = vrot.lane.b32.xlu1 %v2096_v18, %s6896_s16  ;;  %v10907_v18 = vld [vmem:[#allocation93_spill] sm:$0xff] }
 0x320   : > { %v3403_v46 = vmax.f32 %v3211_v19, %v3219_v55  ;;  %2819 = vrot.lane.b32.xlu0 %v8409_v21, %s6896_s16  ;;  %v2099_v57 = vpop.f32.mrb[214].mxu1  ;;  %v3605_v3 = vmax.f32 %v3509_v28, 0.0 }
 0x321   : > { %v2101_v34 = vpop.f32.mrb[215].mxu1 }
 0x322   : > { %v3511_v63 = vadd.f32 %v8824_v15, %v3403_v46 }
 0x323   : > { %2677 = vrot.lane.b32.xlu1 %v2099_v57, %s6896_s16  ;;  %2311 = vmatmul.mubr.bf16.gmra.mrb[64].mxu1 %v10906_v37 }
 0x324   : > { %v3607_v25 = vmax.f32 %v3511_v63, 0.0  ;;  %2535 = vrot.lane.b32.xlu0 %v10899_v60, %s6896_s16  ;;  %6072 = vmatprep.mubr.msk.bf16.mxu1 %vm1258_vm0, %v10907_v18  ;;  %v10909_v63 = vld [vmem:[#allocation99_spill] sm:$0xff]  ;;  %v10910_v60 = vld [vmem:[#allocation102_spill] sm:$0xff] }
 0x326   : > { %v2104_v19 = vpop.f32.mrb[216].mxu1  ;;  %v8851_v44 = vpack.c.bf16 %v3607_v25, %v3605_v3 }
 0x327   : > { %v2106_v34 = vpop.f32.mrb[217].mxu1  ;;  %2681 = vrot.lane.b32.xlu1 %v2104_v19, %s6896_s16 }
 0x328   : > { %10908 = vst [vmem:[#allocation28_spill] sm:$0xff] %v8851_v44  ;;  %2539 = vrot.lane.b32.xlu0 %v10904_v11, %s6896_s16  ;;  %v2107_v55 = vpop.f32.mrb[218].mxu1  ;;  %v3500_v44 = vsub.s32 0, %v8798_v45 }
 0x329   : > { %v2109_v46 = vpop.f32.mrb[219].mxu1  ;;  %v2570_v37 = vpop.permute.xlu0 %2569 }
 0x32a   : > { %v10915_v46 = vld [vmem:[#allocation112_spill] sm:$0xff] }
 0x32b   : > { %2685 = vrot.lane.b32.xlu1 %v2107_v55, %s6896_s16  ;;  %2319 = vmatmul.mubr.bf16.gmra.mrb[68].mxu1 %v10909_v63  ;;  %v2574_v3 = vpop.permute.xlu1 %2573  ;;  %v10914_v55 = vld [vmem:[#allocation50_spill] sm:$0xff] }
 0x32c   : > { %2551 = vrot.lane.b32.xlu0 %v10900_v14, %s6896_s16  ;;  %6073 = vmatprep.mubr.msk.bf16.mxu1 %vm1258_vm0, %v10910_v60  ;;  %v10913_v14 = vld [vmem:[#allocation109_spill] sm:$0xff]  ;;  %v2929_v45 = vsel %vm2919_vm2, %v8777_v41, %v2574_v3  ;;  %v10925_v41 = vld [vmem:[#allocation82_spill] sm:$0xff] }
 0x32d   : > { %v8862_v28 = vpop.permute.xlu0 %2719 }
 0x32e   : > { %10911 = vst [vmem:[#allocation29_spill] sm:$0xff] %v8862_v28  ;;  %v2112_v57 = vpop.f32.mrb[220].mxu1 }
 0x32f   : > { %v2114_v25 = vpop.f32.mrb[221].mxu1  ;;  %2689 = vrot.lane.b32.xlu1 %v2112_v57, %s6896_s16 }
 0x330   : > { %2555 = vrot.lane.b32.xlu0 %v10905_v20, %s6896_s16  ;;  %v2115_v11 = vpop.f32.mrb[222].mxu1  ;;  %v2928_v25 = vsel %vm2919_vm2, %v8531_v17, %v2570_v37  ;;  %v10921_v17 = vld [vmem:[#allocation97_spill] sm:$0xff] }
 0x331   : > { %v2117_v18 = vpop.f32.mrb[223].mxu1  ;;  %v8867_v19 = vpop.permute.xlu1 %2577 }
 0x332   : > { %v8869_v34 = vpop.permute.xlu0 %2723 }
 0x333   : > { %10912 = vst [vmem:[#allocation30_spill] sm:$0xff] %v8869_v34  ;;  %2693 = vrot.lane.b32.xlu1 %v2115_v11, %s6896_s16  ;;  %2327 = vmatmul.mubr.bf16.gmra.mrb[72].mxu1 %v10913_v14  ;;  %v10917_v11 = vld [vmem:[#allocation55_spill] sm:$0xff]  ;;  %v10919_v34 = vld [vmem:[#allocation100_spill] sm:$0xff] }
 0x334   : > { %2543 = vrot.lane.b32.xlu0 %v10914_v55, %s6896_s16  ;;  %6074 = vmatprep.mubr.msk.bf16.mxu1 %vm1258_vm0, %v10915_v46  ;;  %v10918_v55 = vld [vmem:[#allocation78_spill] sm:$0xff] }
 0x335   : > { %v8877_v63 = vpop.permute.xlu1 %2581  ;;  %v3225_v21 = vmax.f32 %v10918_v55, %v2570_v37  ;;  %v10922_v37 = vld [vmem:[#allocation69_spill] sm:$0xff] }
 0x336   : > { %v8879_v20 = vpop.permute.xlu0 %2727  ;;  %v2120_v60 = vpop.f32.mrb[224].mxu1 }
 0x337   : > { %10916 = vst [vmem:[#allocation31_spill] sm:$0xff] %v8879_v20  ;;  %v2122_v57 = vpop.f32.mrb[225].mxu1  ;;  %2697 = vrot.lane.b32.xlu1 %v2120_v60, %s6896_s16  ;;  %v10920_v60 = vld [vmem:[#allocation76_spill] sm:$0xff] }
 0x338   : > { %2547 = vrot.lane.b32.xlu0 %v10917_v11, %s6896_s16  ;;  %v2123_v18 = vpop.f32.mrb[226].mxu1  ;;  %v3224_v6 = vmax.f32 %v10920_v60, %v2928_v25 }
 0x339   : > { %v2125_v14 = vpop.f32.mrb[227].mxu1  ;;  %v2586_v46 = vpop.permute.xlu1 %2585 }
 0x33a   : > { %v2932_v20 = vsel %vm2919_vm2, %v8607_v59, %v2586_v46  ;;  %v3233_v57 = vmax.f32 %v10919_v34, %v2586_v46  ;;  %v8891_v28 = vpop.permute.xlu0 %2731  ;;  %v8902_v59 = vrot.slane %v8813_v0, %v3500_v44  ;;  %v10923_v46 = vld [vmem:[#allocation85_spill] sm:$0xff] }
 0x33b   : > { %v3232_v29 = vmax.f32 %v10921_v17, %v2932_v20  ;;  %2701 = vrot.lane.b32.xlu1 %v2123_v18, %s6896_s16  ;;  %2335 = vmatmul.mubr.bf16.gmra.mrb[76].mxu1 %v8172_v42  ;;  %v3227_v25 = vmax.f32 %v10923_v46, %v2574_v3  ;;  %v10924_v18 = vld [vmem:[#allocation105_spill] sm:$0xff] }
 0x33c   : > { %v3409_v14 = vmax.f32 %v3225_v21, %v3233_v57  ;;  %2559 = vrot.lane.b32.xlu0 %v10922_v37, %s6896_s16  ;;  %v3226_v21 = vmax.f32 %v10925_v41, %v2929_v45  ;;  %v10926_v57 = vld [vmem:[#allocation103_spill] sm:$0xff] }
 0x33d   : > { %v3408_v34 = vmax.f32 %v3224_v6, %v3232_v29  ;;  %v2590_v55 = vpop.permute.xlu1 %2589  ;;  %v2930_v29 = vsel %vm2919_vm2, %v8561_v5, %v8867_v19 }
 0x33e   : > { %v2933_v20 = vsel %vm2919_vm2, %v8632_v61, %v2590_v55  ;;  %v3235_v60 = vmax.f32 %v10924_v18, %v2590_v55  ;;  %v8908_v42 = vpop.permute.xlu0 %2743  ;;  %v2128_v17 = vpop.f32.mrb[228].mxu1  ;;  %v3517_v0 = vadd.f32 %v8824_v15, %v3409_v14  ;;  %v10927_v61 = vld [vmem:[#allocation75_spill] sm:$0xff] }
 0x33f   : > { %v3234_v11 = vmax.f32 %v10926_v57, %v2933_v20  ;;  %v2130_v37 = vpop.f32.mrb[229].mxu1  ;;  %2705 = vrot.lane.b32.xlu1 %v2128_v17, %s6896_s16  ;;  %v3516_v3 = vadd.f32 %v8902_v59, %v3408_v34  ;;  %v10929_v17 = vld [vmem:[#allocation110_spill] sm:$0xff]  ;;  %v10931_v34 = vld [vmem:[#allocation107_spill] sm:$0xff] }
 0x340   : > { %v3411_v6 = vmax.f32 %v3227_v25, %v3235_v60  ;;  %2563 = vrot.lane.b32.xlu0 %v10927_v61, %s6896_s16  ;;  %v2131_v44 = vpop.f32.mrb[230].mxu1  ;;  %v10928_v37 = vld [vmem:[#allocation89_spill] sm:$0xff]  ;;  %v10930_v60 = vld [vmem:[#allocation87_spill] sm:$0xff] }
 0x341   : > { %v3410_v55 = vmax.f32 %v3226_v21, %v3234_v11  ;;  %v2133_v45 = vpop.f32.mrb[231].mxu1  ;;  %v2594_v46 = vpop.permute.xlu1 %2593  ;;  %v3229_v20 = vmax.f32 %v10928_v37, %v8867_v19  ;;  %v3228_v41 = vmax.f32 %v10930_v60, %v2930_v29  ;;  %v2931_v19 = vsel %vm2919_vm2, %v8580_v40, %v8877_v63 }
 0x342   : > { %v3519_v18 = vadd.f32 %v8824_v15, %v3411_v6  ;;  %v2934_v5 = vsel %vm2919_vm2, %v8658_v43, %v2594_v46  ;;  %v3237_v14 = vmax.f32 %v10929_v17, %v2594_v46  ;;  %v8926_v25 = vpop.permute.xlu0 %2747  ;;  %v3613_v21 = vmax.f32 %v3517_v0, 0.0 }
 0x343   : > { %v3518_v57 = vadd.f32 %v8902_v59, %v3410_v55  ;;  %v3236_v11 = vmax.f32 %v10931_v34, %v2934_v5  ;;  %2709 = vrot.lane.b32.xlu1 %v2131_v44, %s6896_s16  ;;  %v3612_v43 = vmax.f32 %v3516_v3, 0.0  ;;  %v10932_v55 = vld [vmem:[#allocation95_spill] sm:$0xff] }
 0x344   : > { %v3615_v6 = vmax.f32 %v3519_v18, 0.0  ;;  %v3413_v45 = vmax.f32 %v3229_v20, %v3237_v14  ;;  %2823 = vrot.lane.b32.xlu0 %v8420_v4, %s6896_s16  ;;  %v3231_v17 = vmax.f32 %v10932_v55, %v8877_v63  ;;  %v6795_v3 = vld [vmem:[%s10427_s3] sm:$0xff]   ;;  %v10933_v20 = vld [vmem:[#allocation92_spill] sm:$0xff] }
 0x345   : > { %v3614_v46 = vmax.f32 %v3518_v57, 0.0  ;;  %v3412_v37 = vmax.f32 %v3228_v41, %v3236_v11  ;;  %v2598_v29 = vpop.permute.xlu1 %2597  ;;  %v3230_v18 = vmax.f32 %v10933_v20, %v2931_v19  ;;  %v10934_v41 = vld [vmem:[#allocation113_spill] sm:$0xff] }
 0x346   : > { %v2935_v44 = vsel %vm2919_vm2, %v8682_v50, %v2598_v29  ;;  %v3239_v5 = vmax.f32 %v8157_v32, %v2598_v29  ;;  %v8942_v60 = vpop.permute.xlu0 %2735  ;;  %v2136_v40 = vpop.f32.mrb[232].mxu1  ;;  %v8944_v0 = vpack.c.bf16 %v3615_v6, %v3613_v21  ;;  %v3521_v32 = vadd.f32 %v8824_v15, %v3413_v45 }
 0x347   : > { %v8950_v14 = vpack.c.bf16 %v3614_v46, %v3612_v43  ;;  %v3238_v63 = vmax.f32 %v10934_v41, %v2935_v44  ;;  %v2138_v57 = vpop.f32.mrb[233].mxu1  ;;  %2713 = vrot.lane.b32.xlu1 %v2136_v40, %s6896_s16  ;;  %v3520_v6 = vadd.f32 %v8902_v59, %v3412_v37  ;;  %v6796_v41 = vld [vmem:[%s10427_s3 + $0x8] sm:$0xff]  }
 0x348   : > { %v3415_v50 = vmax.f32 %v3231_v17, %v3239_v5  ;;  %2827 = vrot.lane.b32.xlu0 %v8424_v56, %s6896_s16  ;;  %v2139_v34 = vpop.f32.mrb[234].mxu1  ;;  %6111 = vmatprep.mubr.msk.bf16.mxu0 %vm2919_vm2, %v8944_v0  ;;  %v3617_v29 = vmax.f32 %v3521_v32, 0.0  ;;  %v11048_v56 = vld [vmem:[#allocation124_spill] sm:$0xff] }
 0x349   : > { %v3414_v11 = vmax.f32 %v3230_v18, %v3238_v63  ;;  %v2141_v21 = vpop.f32.mrb[235].mxu1  ;;  %v2602_v19 = vpop.permute.xlu1 %2601  ;;  %3950 = vmatmul.mubr.bf16.vlgmr.msra.gmra.mrb[48].mxu0 %v8950_v14  ;;  %v3616_v44 = vmax.f32 %v3520_v6, 0.0 }
 0x34a   : > { %v3523_v43 = vadd.f32 %v8824_v15, %v3415_v50  ;;  %v8962_v46 = vpop.permute.xlu0 %2739  ;;  %4157 = vmatpush1.bf16.msra.mxu0 %v6795_v3 }
 0x34b   : > { %2717 = vrot.lane.b32.xlu1 %v2139_v34, %s6896_s16  ;;  %v3522_v45 = vadd.f32 %v8902_v59, %v3414_v11  ;;  %4158 = vmatprep.subr.bf16.mxu0 %v10852_v27  ;;  %v6797_v34 = vld [vmem:[%s10427_s3 + $0x10] sm:$0xff]  }
 0x34c   : > { %v3619_v55 = vmax.f32 %v3523_v43, 0.0  ;;  %2839 = vrot.lane.b32.xlu0 %v8442_v51, %s6896_s16 }
 0x34d   : > { %v2606_v17 = vpop.permute.xlu1 %2605  ;;  %v3618_v5 = vmax.f32 %v3522_v45, 0.0  ;;  %v2936_v45 = vsel %vm2919_vm2, %v8702_v23, %v2602_v19 }
 0x34e   : > { %v8969_v37 = vpop.permute.xlu0 %2751  ;;  %v2144_v40 = vpop.f32.mrb[236].mxu1  ;;  %v8971_v20 = vpack.c.bf16 %v3619_v55, %v3617_v29  ;;  %4159 = vmatpush1.bf16.msra.mxu0 %v6796_v41  ;;  %v2937_v23 = vsel %vm2919_vm2, %v8718_v1, %v2606_v17 }
 0x34f   : > { %v2146_v3 = vpop.f32.mrb[237].mxu1  ;;  %2721 = vrot.lane.b32.xlu1 %v2144_v40, %s6896_s16  ;;  %v8974_v18 = vpack.c.bf16 %v3618_v5, %v3616_v44  ;;  %4160 = vmatprep.subr.bf16.mxu0 %v10852_v27  ;;  %v3241_v5 = vmax.f32 %v8174_v47, %v2602_v19 }
 0x350   : > { %10935 = vst [vmem:[#allocation32_spill] sm:$0xff] %v8971_v20  ;;  %2843 = vrot.lane.b32.xlu0 %v8446_v16, %s6896_s16  ;;  %v2147_v63 = vpop.f32.mrb[238].mxu1  ;;  %6112 = vmatprep.mubr.msk.bf16.mxu0 %vm2919_vm2, %v8971_v20 }
 0x351   : > { %10936 = vst [vmem:[#allocation33_spill] sm:$0xff] %v8974_v18  ;;  %v2149_v57 = vpop.f32.mrb[239].mxu1  ;;  %v8983_v32 = vpop.permute.xlu1 %2609  ;;  %3958 = vmatmul.mubr.bf16.gmra.mrb[52].mxu0 %v8974_v18  ;;  %v11041_v18 = vld [vmem:[#allocation121_spill] sm:$0xff] }
 0x352   : > { %v8986_v50 = vpop.permute.xlu0 %2755  ;;  %4161 = vmatpush1.bf16.msra.mxu0 %v6797_v34 }
 0x353   : > { %2725 = vrot.lane.b32.xlu1 %v2147_v63, %s6896_s16  ;;  %4162 = vmatprep.subr.bf16.mxu0 %v10852_v27  ;;  %v10937_v63 = vld [vmem:[#allocation116_spill] sm:$0xff] }
 0x354   : > { %2831 = vrot.lane.b32.xlu0 %v8431_v54, %s6896_s16  ;;  %v3240_v57 = vmax.f32 %v10937_v63, %v2936_v45 }
 0x355   : > { %v8995_v11 = vpop.permute.xlu1 %2613 }
 0x356   : > { %v8997_v21 = vpop.permute.xlu0 %2759  ;;  %v2152_v6 = vpop.f32.mrb[240].mxu1 }
 0x357   : > { %v2154_v43 = vpop.f32.mrb[241].mxu1  ;;  %2729 = vrot.lane.b32.xlu1 %v2152_v6, %s6896_s16 }
 0x358   : > { %2835 = vrot.lane.b32.xlu0 %v8435_v10, %s6896_s16  ;;  %v2155_v29 = vpop.f32.mrb[242].mxu1  ;;  %v11001_v10 = vld [vmem:[#allocation26_spill] sm:$0xff] }
 0x359   : > { %v2157_v55 = vpop.f32.mrb[243].mxu1  ;;  %v2618_v44 = vpop.permute.xlu1 %2617 }
 0x35a   : > { %v2940_v40 = vsel %vm2919_vm2, %v8772_v2, %v2618_v44  ;;  %v3249_v3 = vmax.f32 %v8220_v8, %v2618_v44  ;;  %v9009_v41 = vpop.permute.xlu0 %2763  ;;  %v3243_v2 = vmax.f32 %v8184_v30, %v2606_v17 }
 0x35b   : > { %v3248_v34 = vmax.f32 %v8216_v9, %v2940_v40  ;;  %2733 = vrot.lane.b32.xlu1 %v2155_v29, %s6896_s16  ;;  %v10938_v29 = vld [vmem:[#allocation119_spill] sm:$0xff] }
 0x35c   : > { %v3417_v6 = vmax.f32 %v3241_v5, %v3249_v3  ;;  %2847 = vrot.lane.b32.xlu0 %v8455_v26, %s6896_s16  ;;  %v3242_v55 = vmax.f32 %v10938_v29, %v2937_v23  ;;  %v2938_v5 = vsel %vm2919_vm2, %v8737_v36, %v8983_v32 }
 0x35d   : > { %v3416_v47 = vmax.f32 %v3240_v57, %v3248_v34  ;;  %v2622_v19 = vpop.permute.xlu1 %2621  ;;  %v3245_v57 = vmax.f32 %v8197_v58, %v8983_v32  ;;  %v2939_v58 = vsel %vm2919_vm2, %v8753_v62, %v8995_v11 }
 0x35e   : > { %v2941_v8 = vsel %vm2919_vm2, %v8792_v22, %v2622_v19  ;;  %v3251_v43 = vmax.f32 %v8230_v7, %v2622_v19  ;;  %v9022_v45 = vpop.permute.xlu0 %2775  ;;  %v2160_v9 = vpop.f32.mrb[244].mxu1  ;;  %v3525_v30 = vadd.f32 %v8824_v15, %v3417_v6  ;;  %v10939_v19 = vld [vmem:[#allocation122_spill] sm:$0xff] }
 0x35f   : > { %v3250_v1 = vmax.f32 %v8226_v33, %v2941_v8  ;;  %v2162_v44 = vpop.f32.mrb[245].mxu1  ;;  %2737 = vrot.lane.b32.xlu1 %v2160_v9, %s6896_s16  ;;  %v3524_v63 = vadd.f32 %v8902_v59, %v3416_v47  ;;  %v6798_v33 = vld [vmem:[%s10427_s3 + $0x18] sm:$0xff]  }
 0x360   : > { %v3419_v17 = vmax.f32 %v3243_v2, %v3251_v43  ;;  %2851 = vrot.lane.b32.xlu0 %v8459_v39, %s6896_s16  ;;  %v2163_v7 = vpop.f32.mrb[246].mxu1  ;;  %v3244_v2 = vmax.f32 %v10939_v19, %v2938_v5  ;;  %4163 = vmatpush1.bf16.msra.mxu0 %v6798_v33  ;;  %v3621_v32 = vmax.f32 %v3525_v30, 0.0 }
 0x361   : > { %v3418_v22 = vmax.f32 %v3242_v55, %v3250_v1  ;;  %v2165_v40 = vpop.f32.mrb[247].mxu1  ;;  %v2626_v3 = vpop.permute.xlu1 %2625  ;;  %4164 = vmatprep.subr.bf16.mxu0 %v10852_v27  ;;  %v3247_v55 = vmax.f32 %v8207_v52, %v8995_v11 }
 0x362   : > { %v3527_v36 = vadd.f32 %v8824_v15, %v3419_v17  ;;  %v2942_v34 = vsel %vm2919_vm2, %v8832_v48, %v2626_v3  ;;  %v3253_v23 = vmax.f32 %v8401_v38, %v2626_v3  ;;  %v9043_v6 = vpop.permute.xlu0 %2779  ;;  %v10941_v17 = vld [vmem:[#allocation125_spill] sm:$0xff] }
 0x363   : > { %v3252_v47 = vmax.f32 %v8395_v24, %v2942_v34  ;;  %2741 = vrot.lane.b32.xlu1 %v2163_v7, %s6896_s16  ;;  %v3526_v8 = vadd.f32 %v8902_v59, %v3418_v22  ;;  %v3620_v24 = vmax.f32 %v3524_v63, 0.0  ;;  %v3246_v7 = vmax.f32 %v10941_v17, %v2939_v58 }
 0x364   : > { %v3623_v43 = vmax.f32 %v3527_v36, 0.0  ;;  %v3421_v48 = vmax.f32 %v3245_v57, %v3253_v23  ;;  %2855 = vrot.lane.b32.xlu0 %v8468_v13, %s6896_s16 }
 0x365   : > { %v3420_v38 = vmax.f32 %v3244_v2, %v3252_v47  ;;  %v2630_v9 = vpop.permute.xlu1 %2629  ;;  %v3622_v29 = vmax.f32 %v3526_v8, 0.0  ;;  %v10944_v47 = vld [vmem:[#allocation211_spill] sm:$0xff] }
 0x366   : > { %v2943_v1 = vsel %vm2919_vm2, %v8844_v35, %v2630_v9  ;;  %v3255_v62 = vmax.f32 %v8411_v49, %v2630_v9  ;;  %v9060_v44 = vpop.permute.xlu0 %2767  ;;  %v2168_v5 = vpop.f32.mrb[248].mxu1  ;;  %v9062_v30 = vpack.c.bf16 %v3623_v43, %v3621_v32  ;;  %v3529_v52 = vadd.f32 %v8824_v15, %v3421_v48  ;;  %v10943_v35 = vld [vmem:[#allocation203_spill] sm:$0xff] }
 0x367   : > { %v3254_v22 = vmax.f32 %v8407_v53, %v2943_v1  ;;  %v2170_v40 = vpop.f32.mrb[249].mxu1  ;;  %2745 = vrot.lane.b32.xlu1 %v2168_v5, %s6896_s16  ;;  %v9067_v3 = vpack.c.bf16 %v3622_v29, %v3620_v24  ;;  %v3528_v53 = vadd.f32 %v8902_v59, %v3420_v38  ;;  %v6799_v29 = vld [vmem:[%s10427_s3 + $0x20] sm:$0xff]  }
 0x368   : > { %10940 = vst [vmem:[#allocation34_spill] sm:$0xff] %v9062_v30  ;;  %v3423_v11 = vmax.f32 %v3247_v55, %v3255_v62  ;;  %2859 = vrot.lane.b32.xlu0 %v10943_v35, %s6896_s16  ;;  %v2171_v49 = vpop.f32.mrb[250].mxu1  ;;  %6113 = vmatprep.mubr.msk.bf16.mxu0 %vm2919_vm2, %v9062_v30  ;;  %v3625_v19 = vmax.f32 %v3529_v52, 0.0  ;;  %v10947_v55 = vld [vmem:[#allocation213_spill] sm:$0xff]  ;;  %v10960_v35 = vld [vmem:[#allocation64_spill] sm:$0xff] }
 0x369   : > { %10942 = vst [vmem:[#allocation35_spill] sm:$0xff] %v9067_v3  ;;  %v3422_v63 = vmax.f32 %v3246_v7, %v3254_v22  ;;  %v2173_v33 = vpop.f32.mrb[251].mxu1  ;;  %v2634_v57 = vpop.permute.xlu1 %2633  ;;  %3966 = vmatmul.mubr.bf16.gmra.mrb[56].mxu0 %v9067_v3  ;;  %v3624_v58 = vmax.f32 %v3528_v53, 0.0  ;;  %v6800_v7 = vld [vmem:[%s10427_s3 + $0x28] sm:$0xff]   ;;  %v10948_v22 = vld [vmem:[#allocation206_spill] sm:$0xff] }
 0x36a   : > { %v3531_v36 = vadd.f32 %v8824_v15, %v3423_v11  ;;  %v9077_v34 = vpop.permute.xlu0 %2771  ;;  %4165 = vmatpush1.bf16.msra.mxu0 %v6799_v29  ;;  %v10950_v53 = vld [vmem:[#allocation208_spill] sm:$0xff] }
 0x36b   : > { %2749 = vrot.lane.b32.xlu1 %v2171_v49, %s6896_s16  ;;  %v3530_v23 = vadd.f32 %v8902_v59, %v3422_v63  ;;  %4166 = vmatprep.subr.bf16.mxu0 %v10852_v27  ;;  %v10949_v63 = vld [vmem:[#allocation193_spill] sm:$0xff] }
 0x36c   : > { %v3627_v2 = vmax.f32 %v3531_v36, 0.0  ;;  %2871 = vrot.lane.b32.xlu0 %v10944_v47, %s6896_s16  ;;  %v2944_v33 = vsel %vm2919_vm2, %v10949_v63, %v2634_v57  ;;  %v10956_v63 = vld [vmem:[#allocation198_spill] sm:$0xff]  ;;  %v10962_v47 = vld [vmem:[#allocation61_spill] sm:$0xff] }
 0x36d   : > { %v2638_v8 = vpop.permute.xlu1 %2637  ;;  %v3626_v32 = vmax.f32 %v3530_v23, 0.0 }
 0x36e   : > { %v9083_v43 = vpop.permute.xlu0 %2783  ;;  %v2176_v48 = vpop.f32.mrb[252].mxu1  ;;  %v9085_v38 = vpack.c.bf16 %v3627_v2, %v3625_v19  ;;  %4167 = vmatpush1.bf16.msra.mxu0 %v6800_v7  ;;  %v10951_v2 = vld [vmem:[#allocation38_spill] sm:$0xff] }
 0x36f   : > { %v2178_v9 = vpop.f32.mrb[253].mxu1  ;;  %2753 = vrot.lane.b32.xlu1 %v2176_v48, %s6896_s16  ;;  %v9088_v24 = vpack.c.bf16 %v3626_v32, %v3624_v58  ;;  %4168 = vmatprep.subr.bf16.mxu0 %v10852_v27  ;;  %v3257_v58 = vmax.f32 %v10951_v2, %v2634_v57  ;;  %v10952_v32 = vld [vmem:[#allocation209_spill] sm:$0xff] }
 0x370   : > { %10945 = vst [vmem:[#allocation39_spill] sm:$0xff] %v9085_v38  ;;  %2875 = vrot.lane.b32.xlu0 %v10947_v55, %s6896_s16  ;;  %v2179_v1 = vpop.f32.mrb[254].mxu1  ;;  %6114 = vmatprep.mubr.msk.bf16.mxu0 %vm2919_vm2, %v9085_v38  ;;  %v10953_v9 = vld [vmem:[#allocation58_spill] sm:$0xff]  ;;  %v10977_v38 = vld [vmem:[#allocation71_spill] sm:$0xff] }
 0x371   : > { %10946 = vst [vmem:[#allocation42_spill] sm:$0xff] %v9088_v24  ;;  %v2181_v62 = vpop.f32.mrb[255].mxu1  ;;  %v9097_v5 = vpop.permute.xlu1 %2641  ;;  %3974 = vmatmul.mubr.bf16.gmra.mrb[60].mxu0 %v9088_v24  ;;  %v10974_v24 = vld [vmem:[#allocation74_spill] sm:$0xff] }
 0x372   : > { %v9100_v17 = vpop.permute.xlu0 %2787  ;;  %v10954_v62 = vld [vmem:[#allocation36_spill] sm:$0xff] }
 0x373   : > { %2757 = vrot.lane.b32.xlu1 %v2179_v1, %s6896_s16  ;;  %v3256_v7 = vmax.f32 %v10954_v62, %v2944_v33 }
 0x374   : > { %2863 = vrot.lane.b32.xlu0 %v10948_v22, %s6896_s16  ;;  %v10957_v22 = vld [vmem:[#allocation216_spill] sm:$0xff] }
 0x375   : > { %v9109_v40 = vpop.permute.xlu1 %2645 }
 0x376   : > { %v9111_v52 = vpop.permute.xlu0 %2791  ;;  %v2184_v11 = vpop.f32.mrb[0].mxu1 }
 0x377   : > { %v2186_v49 = vpop.f32.mrb[1].mxu1  ;;  %2761 = vrot.lane.b32.xlu1 %v2184_v11, %s6896_s16  ;;  %v10955_v11 = vld [vmem:[#allocation56_spill] sm:$0xff] }
 0x378   : > { %2867 = vrot.lane.b32.xlu0 %v10950_v53, %s6896_s16  ;;  %v2187_v36 = vpop.f32.mrb[2].mxu1  ;;  %v2945_v53 = vsel %vm2919_vm2, %v10956_v63, %v2638_v8 }
 0x379   : > { %v2189_v23 = vpop.f32.mrb[3].mxu1  ;;  %v2650_v19 = vpop.permute.xlu1 %2649 }
 0x37a   : > { %v2948_v48 = vsel %vm2919_vm2, %v10952_v32, %v2650_v19  ;;  %v3265_v29 = vmax.f32 %v10953_v9, %v2650_v19  ;;  %v9123_v1 = vpop.permute.xlu0 %2795  ;;  %v10958_v32 = vld [vmem:[#allocation44_spill] sm:$0xff]  ;;  %v10959_v19 = vld [vmem:[#allocation214_spill] sm:$0xff] }
 0x37b   : > { %v3264_v49 = vmax.f32 %v10955_v11, %v2948_v48  ;;  %2765 = vrot.lane.b32.xlu1 %v2187_v36, %s6896_s16  ;;  %v3259_v55 = vmax.f32 %v10958_v32, %v2638_v8  ;;  %v10961_v36 = vld [vmem:[#allocation41_spill] sm:$0xff]  ;;  %v10964_v32 = vld [vmem:[#allocation219_spill] sm:$0xff] }
 0x37c   : > { %v3425_v23 = vmax.f32 %v3257_v58, %v3265_v29  ;;  %2879 = vrot.lane.b32.xlu0 %v10957_v22, %s6896_s16  ;;  %v3258_v11 = vmax.f32 %v10961_v36, %v2945_v53  ;;  %v10963_v29 = vld [vmem:[#allocation201_spill] sm:$0xff] }
 0x37d   : > { %v3424_v57 = vmax.f32 %v3256_v7, %v3264_v49  ;;  %v2654_v2 = vpop.permute.xlu1 %2653  ;;  %v2946_v7 = vsel %vm2919_vm2, %v10963_v29, %v9097_v5 }
 0x37e   : > { %v2949_v9 = vsel %vm2919_vm2, %v10959_v19, %v2654_v2  ;;  %v3267_v33 = vmax.f32 %v10960_v35, %v2654_v2  ;;  %v9136_v62 = vpop.permute.xlu0 %2807  ;;  %v2192_v48 = vpop.f32.mrb[4].mxu1  ;;  %v3533_v8 = vadd.f32 %v8824_v15, %v3425_v23  ;;  %v10966_v23 = vld [vmem:[#allocation217_spill] sm:$0xff] }
 0x37f   : > { %v3266_v63 = vmax.f32 %v10962_v47, %v2949_v9  ;;  %v2194_v58 = vpop.f32.mrb[5].mxu1  ;;  %2769 = vrot.lane.b32.xlu1 %v2192_v48, %s6896_s16  ;;  %v3532_v2 = vadd.f32 %v8902_v59, %v3424_v57  ;;  %v6801_v47 = vld [vmem:[%s10427_s3 + $0x30] sm:$0xff]   ;;  %v10965_v9 = vld [vmem:[#allocation48_spill] sm:$0xff]  ;;  %v10968_v57 = vld [vmem:[#allocation46_spill] sm:$0xff] }
 0x380   : > { %v3427_v49 = vmax.f32 %v3259_v55, %v3267_v33  ;;  %2883 = vrot.lane.b32.xlu0 %v10964_v32, %s6896_s16  ;;  %v2195_v35 = vpop.f32.mrb[6].mxu1  ;;  %v3261_v48 = vmax.f32 %v10965_v9, %v9097_v5  ;;  %v10967_v33 = vld [vmem:[#allocation68_spill] sm:$0xff]  ;;  %4169 = vmatpush1.bf16.msra.mxu0 %v6801_v47  ;;  %v3629_v9 = vmax.f32 %v3533_v8, 0.0  ;;  %v10973_v47 = vld [vmem:[#allocation3_spill] sm:$0xff] }
 0x381   : > { %v3426_v19 = vmax.f32 %v3258_v11, %v3266_v63  ;;  %v2197_v53 = vpop.f32.mrb[7].mxu1  ;;  %v2658_v36 = vpop.permute.xlu1 %2657  ;;  %v3260_v11 = vmax.f32 %v10968_v57, %v2946_v7  ;;  %v10970_v5 = vld [vmem:[#allocation204_spill] sm:$0xff]  ;;  %4170 = vmatprep.subr.bf16.mxu0 %v10852_v27  ;;  %v3628_v7 = vmax.f32 %v3532_v2, 0.0 }
 0x382   : > { %v3535_v58 = vadd.f32 %v8824_v15, %v3427_v49  ;;  %v2950_v55 = vsel %vm2919_vm2, %v10966_v23, %v2658_v36  ;;  %v3269_v29 = vmax.f32 %v10967_v33, %v2658_v36  ;;  %v9157_v32 = vpop.permute.xlu0 %2811  ;;  %v10969_v53 = vld [vmem:[#allocation66_spill] sm:$0xff]  ;;  %v2947_v49 = vsel %vm2919_vm2, %v10970_v5, %v9109_v40  ;;  %v10971_v36 = vld [vmem:[#allocation221_spill] sm:$0xff] }
 0x383   : > { %v3534_v63 = vadd.f32 %v8902_v59, %v3426_v19  ;;  %v3268_v22 = vmax.f32 %v10969_v53, %v2950_v55  ;;  %2773 = vrot.lane.b32.xlu1 %v2195_v35, %s6896_s16  ;;  %v10972_v55 = vld [vmem:[#allocation54_spill] sm:$0xff] }
 0x384   : > { %v3631_v13 = vmax.f32 %v3535_v58, 0.0  ;;  %v3429_v23 = vmax.f32 %v3261_v48, %v3269_v29  ;;  %2887 = vrot.lane.b32.xlu0 %v10971_v36, %s6896_s16  ;;  %v3263_v35 = vmax.f32 %v10972_v55, %v9109_v40  ;;  %v10976_v29 = vld [vmem:[#allocation51_spill] sm:$0xff] }
 0x385   : > { %v3630_v33 = vmax.f32 %v3534_v63, 0.0  ;;  %v3428_v19 = vmax.f32 %v3260_v11, %v3268_v22  ;;  %v2662_v57 = vpop.permute.xlu1 %2661  ;;  %v3262_v36 = vmax.f32 %v10976_v29, %v2947_v49  ;;  %v10979_v55 = vld [vmem:[#allocation223_spill] sm:$0xff] }
 0x386   : > { %v2951_v53 = vsel %vm2919_vm2, %v10973_v47, %v2662_v57  ;;  %v3271_v5 = vmax.f32 %v10974_v24, %v2662_v57  ;;  %v9174_v8 = vpop.permute.xlu0 %2799  ;;  %v2200_v48 = vpop.f32.mrb[8].mxu1  ;;  %v9176_v58 = vpack.c.bf16 %v3631_v13, %v3629_v9  ;;  %v3537_v40 = vadd.f32 %v8824_v15, %v3429_v23  ;;  %v10980_v47 = vld [vmem:[#allocation7_spill] sm:$0xff] }
 0x387   : > { %v3270_v2 = vmax.f32 %v10977_v38, %v2951_v53  ;;  %v2202_v63 = vpop.f32.mrb[9].mxu1  ;;  %2777 = vrot.lane.b32.xlu1 %v2200_v48, %s6896_s16  ;;  %v9181_v22 = vpack.c.bf16 %v3630_v33, %v3628_v7  ;;  %v3536_v13 = vadd.f32 %v8902_v59, %v3428_v19 }
 0x388   : > { %10975 = vst [vmem:[#allocation49_spill] sm:$0xff] %v9176_v58  ;;  %v3431_v11 = vmax.f32 %v3263_v35, %v3271_v5  ;;  %2891 = vrot.lane.b32.xlu0 %v10979_v55, %s6896_s16  ;;  %v2203_v24 = vpop.f32.mrb[10].mxu1  ;;  %6115 = vmatprep.mubr.msk.bf16.mxu0 %vm2919_vm2, %v9176_v58  ;;  %v3633_v57 = vmax.f32 %v3537_v40, 0.0  ;;  %v6802_v40 = vld [vmem:[%s10427_s3 + $0x38] sm:$0xff]   ;;  %v10991_v58 = vld [vmem:[#allocation96_spill] sm:$0xff] }
 0x389   : > { %10978 = vst [vmem:[#allocation52_spill] sm:$0xff] %v9181_v22  ;;  %v3430_v49 = vmax.f32 %v3262_v36, %v3270_v2  ;;  %v2205_v9 = vpop.f32.mrb[11].mxu1  ;;  %v2666_v38 = vpop.permute.xlu1 %2665  ;;  %3982 = vmatmul.mubr.bf16.gmra.mrb[64].mxu0 %v9181_v22  ;;  %v3632_v53 = vmax.f32 %v3536_v13, 0.0 }
 0x38a   : > { %v3539_v7 = vadd.f32 %v8824_v15, %v3431_v11  ;;  %v9191_v33 = vpop.permute.xlu0 %2803  ;;  %v10983_v11 = vld [vmem:[#allocation229_spill] sm:$0xff]  ;;  %4171 = vmatpush1.bf16.msra.mxu0 %v6802_v40 }
 0x38b   : > { %v3538_v23 = vadd.f32 %v8902_v59, %v3430_v49  ;;  %2781 = vrot.lane.b32.xlu1 %v2203_v24, %s6896_s16  ;;  %4172 = vmatprep.subr.bf16.mxu0 %v10852_v27  ;;  %v10986_v40 = vld [vmem:[#allocation225_spill] sm:$0xff] }
 0x38c   : > { %v3635_v35 = vmax.f32 %v3539_v7, 0.0  ;;  %2903 = vrot.lane.b32.xlu0 %v10980_v47, %s6896_s16  ;;  %v6803_v7 = vld [vmem:[%s10427_s3 + $0x40] sm:$0xff]   ;;  %v10988_v47 = vld [vmem:[#allocation14_spill] sm:$0xff] }
 0x38d   : > { %v3634_v19 = vmax.f32 %v3538_v23, 0.0  ;;  %v2670_v36 = vpop.permute.xlu1 %2669  ;;  %v10984_v23 = vld [vmem:[#allocation5_spill] sm:$0xff] }
 0x38e   : > { %v9197_v5 = vpop.permute.xlu0 %2815  ;;  %v2208_v48 = vpop.f32.mrb[12].mxu1  ;;  %v9199_v29 = vpack.c.bf16 %v3635_v35, %v3633_v57  ;;  %4173 = vmatpush1.bf16.msra.mxu0 %v6803_v7  ;;  %v10989_v7 = vld [vmem:[#allocation98_spill] sm:$0xff] }
 0x38f   : > { %v2210_v2 = vpop.f32.mrb[13].mxu1  ;;  %2785 = vrot.lane.b32.xlu1 %v2208_v48, %s6896_s16  ;;  %v9202_v63 = vpack.c.bf16 %v3634_v19, %v3632_v53  ;;  %4174 = vmatprep.subr.bf16.mxu0 %v10852_v27  ;;  %v10985_v48 = vld [vmem:[#allocation226_spill] sm:$0xff] }
 0x390   : > { %10981 = vst [vmem:[#allocation59_spill] sm:$0xff] %v9199_v29  ;;  %2907 = vrot.lane.b32.xlu0 %v10983_v11, %s6896_s16  ;;  %v2211_v24 = vpop.f32.mrb[14].mxu1  ;;  %6116 = vmatprep.mubr.msk.bf16.mxu0 %vm2919_vm2, %v9199_v29  ;;  %v2952_v2 = vsel %vm2919_vm2, %v10985_v48, %v2666_v38  ;;  %v10992_v48 = vld [vmem:[#allocation227_spill] sm:$0xff] }
 0x391   : > { %10982 = vst [vmem:[#allocation63_spill] sm:$0xff] %v9202_v63  ;;  %v2213_v13 = vpop.f32.mrb[15].mxu1  ;;  %v9211_v49 = vpop.permute.xlu1 %2673  ;;  %3990 = vmatmul.mubr.bf16.gmra.mrb[68].mxu0 %v9202_v63 }
 0x392   : > { %v9214_v9 = vpop.permute.xlu0 %2819 }
 0x393   : > { %2789 = vrot.lane.b32.xlu1 %v2211_v24, %s6896_s16 }
 0x394   : > { %2895 = vrot.lane.b32.xlu0 %v10984_v23, %s6896_s16  ;;  %v10987_v23 = vld [vmem:[#allocation79_spill] sm:$0xff] }
 0x395   : > { %v9223_v57 = vpop.permute.xlu1 %2677  ;;  %v3273_v55 = vmax.f32 %v10987_v23, %v2666_v38  ;;  %v10994_v38 = vld [vmem:[#allocation84_spill] sm:$0xff] }
 0x396   : > { %v2536_v35 = vpop.permute.xlu0 %2535  ;;  %v2216_v53 = vpop.f32.mrb[16].mxu1  ;;  %v3275_v23 = vmax.f32 %v10994_v38, %v2670_v36 }
 0x397   : > { %v2218_v19 = vpop.f32.mrb[17].mxu1  ;;  %2793 = vrot.lane.b32.xlu1 %v2216_v53, %s6896_s16  ;;  %v10990_v53 = vld [vmem:[#allocation77_spill] sm:$0xff] }
 0x398   : > { %2899 = vrot.lane.b32.xlu0 %v10986_v40, %s6896_s16  ;;  %v2219_v24 = vpop.f32.mrb[18].mxu1  ;;  %v3272_v22 = vmax.f32 %v10990_v53, %v2952_v2  ;;  %v2953_v40 = vsel %vm2919_vm2, %v10992_v48, %v2670_v36  ;;  %v10995_v2 = vld [vmem:[#allocation10_spill] sm:$0xff]  ;;  %v10998_v36 = vld [vmem:[#allocation81_spill] sm:$0xff] }
 0x399   : > { %v2221_v13 = vpop.f32.mrb[19].mxu1  ;;  %v2682_v11 = vpop.permute.xlu1 %2681  ;;  %v3274_v38 = vmax.f32 %v10998_v36, %v2953_v40  ;;  %v11004_v40 = vld [vmem:[#allocation231_spill] sm:$0xff] }
 0x39a   : > { %v2956_v63 = vsel %vm2919_vm2, %v10988_v47, %v2682_v11  ;;  %v3281_v19 = vmax.f32 %v10989_v7, %v2682_v11  ;;  %v2540_v29 = vpop.permute.xlu0 %2539  ;;  %v10993_v13 = vld [vmem:[#allocation9_spill] sm:$0xff]  ;;  %v2920_v47 = vsel %vm2919_vm2, %v2536_v35, %v8787_v12  ;;  %v10999_v12 = vld [vmem:[#allocation88_spill] sm:$0xff] }
 0x39b   : > { %v3280_v3 = vmax.f32 %v10991_v58, %v2956_v63  ;;  %2797 = vrot.lane.b32.xlu1 %v2219_v24, %s6896_s16  ;;  %v2954_v58 = vsel %vm2919_vm2, %v10995_v2, %v9211_v49  ;;  %v2921_v63 = vsel %vm2919_vm2, %v2540_v29, %v8802_v31  ;;  %v10996_v24 = vld [vmem:[#allocation17_spill] sm:$0xff] }
 0x39c   : > { %v3433_v39 = vmax.f32 %v3273_v55, %v3281_v19  ;;  %2911 = vrot.lane.b32.xlu0 %v10993_v13, %s6896_s16  ;;  %v10997_v19 = vld [vmem:[#allocation104_spill] sm:$0xff]  ;;  %v11002_v31 = vld [vmem:[#allocation37_spill] sm:$0xff] }
 0x39d   : > { %v3432_v11 = vmax.f32 %v3272_v22, %v3280_v3  ;;  %v2686_v7 = vpop.permute.xlu1 %2685  ;;  %v3277_v3 = vmax.f32 %v10999_v12, %v9211_v49  ;;  %v11000_v22 = vld [vmem:[#allocation101_spill] sm:$0xff]  ;;  %v3208_v29 = vmax.f32 %v11002_v31, %v2920_v47  ;;  %v11005_v49 = vld [vmem:[#allocation86_spill] sm:$0xff]  ;;  %v11008_v31 = vld [vmem:[#allocation108_spill] sm:$0xff] }
 0x39e   : > { %v2957_v55 = vsel %vm2919_vm2, %v10996_v24, %v2686_v7  ;;  %v3283_v53 = vmax.f32 %v10997_v19, %v2686_v7  ;;  %v2552_v48 = vpop.permute.xlu0 %2551  ;;  %v2224_v13 = vpop.f32.mrb[20].mxu1  ;;  %v3541_v24 = vadd.f32 %v8824_v15, %v3433_v39  ;;  %v11003_v19 = vld [vmem:[#allocation57_spill] sm:$0xff]  ;;  %v3276_v12 = vmax.f32 %v11005_v49, %v2954_v58  ;;  %v6804_v39 = vld [vmem:[%s10427_s3 + $0x48] sm:$0xff]   ;;  %v11009_v49 = vld [vmem:[#allocation106_spill] sm:$0xff] }
 0x39f   : > { %v3282_v35 = vmax.f32 %v11000_v22, %v2957_v55  ;;  %v2924_v2 = vsel %vm2919_vm2, %v2552_v48, %v11001_v10  ;;  %v2226_v30 = vpop.f32.mrb[21].mxu1  ;;  %2801 = vrot.lane.b32.xlu1 %v2224_v13, %s6896_s16  ;;  %v3540_v55 = vadd.f32 %v8902_v59, %v3432_v11  ;;  %v11006_v22 = vld [vmem:[#allocation43_spill] sm:$0xff]  ;;  %4175 = vmatpush1.bf16.msra.mxu0 %v6804_v39 }
 0x3a0   : > { %v3435_v7 = vmax.f32 %v3275_v23, %v3283_v53  ;;  %v3216_v26 = vmax.f32 %v11003_v19, %v2924_v2  ;;  %2915 = vrot.lane.b32.xlu0 %v11004_v40, %s6896_s16  ;;  %v2227_v36 = vpop.f32.mrb[22].mxu1  ;;  %v3210_v10 = vmax.f32 %v11006_v22, %v2921_v63  ;;  %v11007_v53 = vld [vmem:[#allocation18_spill] sm:$0xff]  ;;  %v3637_v22 = vmax.f32 %v3541_v24, 0.0  ;;  %4176 = vmatprep.subr.bf16.mxu0 %v10852_v27 }
 0x3a1   : > { %v3434_v30 = vmax.f32 %v3274_v38, %v3282_v35  ;;  %v2229_v48 = vpop.f32.mrb[23].mxu1  ;;  %v2690_v13 = vpop.permute.xlu1 %2689  ;;  %v11010_v38 = vld [vmem:[#allocation27_spill] sm:$0xff] }
 0x3a2   : > { %v3543_v23 = vadd.f32 %v8824_v15, %v3435_v7  ;;  %v3400_v47 = vmax.f32 %v3208_v29, %v3216_v26  ;;  %v2958_v2 = vsel %vm2919_vm2, %v11007_v53, %v2690_v13  ;;  %v3285_v19 = vmax.f32 %v11008_v31, %v2690_v13  ;;  %v2556_v58 = vpop.permute.xlu0 %2555  ;;  %v11011_v26 = vld [vmem:[#allocation62_spill] sm:$0xff]  ;;  %v11012_v13 = vld [vmem:[#allocation12_spill] sm:$0xff] }
 0x3a3   : > { %v3542_v11 = vadd.f32 %v8902_v59, %v3434_v30  ;;  %v3284_v63 = vmax.f32 %v11009_v49, %v2958_v2  ;;  %v2925_v35 = vsel %vm2919_vm2, %v2556_v58, %v11010_v38  ;;  %2805 = vrot.lane.b32.xlu1 %v2227_v36, %s6896_s16  ;;  %v2955_v53 = vsel %vm2919_vm2, %v11012_v13, %v9223_v57  ;;  %v11016_v58 = vld [vmem:[#allocation19_spill] sm:$0xff] }
 0x3a4   : > { %v3639_v48 = vmax.f32 %v3543_v23, 0.0  ;;  %v3437_v7 = vmax.f32 %v3277_v3, %v3285_v19  ;;  %v3218_v29 = vmax.f32 %v11011_v26, %v2925_v35  ;;  %v3636_v30 = vmax.f32 %v3540_v55, 0.0  ;;  %v11014_v3 = vld [vmem:[#allocation94_spill] sm:$0xff] }
 0x3a5   : > { %v3638_v31 = vmax.f32 %v3542_v11, 0.0  ;;  %v3436_v2 = vmax.f32 %v3276_v12, %v3284_v63  ;;  %v2694_v49 = vpop.permute.xlu1 %2693  ;;  %v3508_v36 = vadd.f32 %v8902_v59, %v3400_v47  ;;  %v3279_v23 = vmax.f32 %v11014_v3, %v9223_v57  ;;  %v11017_v35 = vld [vmem:[#allocation114_spill] sm:$0xff]  ;;  %v11018_v12 = vld [vmem:[#allocation91_spill] sm:$0xff] }
 0x3a6   : > { %v9285_v40 = vpack.c.bf16 %v3639_v48, %v3637_v22  ;;  %v3402_v39 = vmax.f32 %v3210_v10, %v3218_v29  ;;  %v2232_v24 = vpop.f32.mrb[24].mxu1  ;;  %v2959_v38 = vsel %vm2919_vm2, %v11016_v58, %v2694_v49  ;;  %v3287_v26 = vmax.f32 %v11017_v35, %v2694_v49  ;;  %v11019_v47 = vld [vmem:[#allocation111_spill] sm:$0xff] }
 0x3a7   : > { %v9290_v19 = vpack.c.bf16 %v3638_v31, %v3636_v30  ;;  %v2234_v55 = vpop.f32.mrb[25].mxu1  ;;  %2809 = vrot.lane.b32.xlu1 %v2232_v24, %s6896_s16  ;;  %v3278_v11 = vmax.f32 %v11018_v12, %v2955_v53  ;;  %v3286_v10 = vmax.f32 %v11019_v47, %v2959_v38  ;;  %v3545_v57 = vadd.f32 %v8824_v15, %v3437_v7  ;;  %v6805_v38 = vld [vmem:[%s10427_s3 + $0x50] sm:$0xff]  }
 0x3a8   : > { %11013 = vst [vmem:[#allocation70_spill] sm:$0xff] %v9285_v40  ;;  %v3510_v63 = vadd.f32 %v8902_v59, %v3402_v39  ;;  %v2235_v22 = vpop.f32.mrb[26].mxu1  ;;  %6117 = vmatprep.mubr.msk.bf16.mxu0 %vm2919_vm2, %v9285_v40  ;;  %v3439_v48 = vmax.f32 %v3279_v23, %v3287_v26  ;;  %v3604_v30 = vmax.f32 %v3508_v36, 0.0  ;;  %v3544_v31 = vadd.f32 %v8902_v59, %v3436_v2 }
 0x3a9   : > { %11015 = vst [vmem:[#allocation73_spill] sm:$0xff] %v9290_v19  ;;  %v2237_v29 = vpop.f32.mrb[27].mxu1  ;;  %v2698_v13 = vpop.permute.xlu1 %2697  ;;  %3998 = vmatmul.mubr.bf16.gmra.mrb[72].mxu0 %v9290_v19  ;;  %v3438_v53 = vmax.f32 %v3278_v11, %v3286_v10  ;;  %v3641_v58 = vmax.f32 %v3545_v57, 0.0  ;;  %v11033_v19 = vld [vmem:[#allocation130_spill] sm:$0xff] }
 0x3aa   : > { %v3606_v49 = vmax.f32 %v3510_v63, 0.0  ;;  %v3547_v39 = vadd.f32 %v8824_v15, %v3439_v48  ;;  %v3640_v36 = vmax.f32 %v3544_v31, 0.0  ;;  %4177 = vmatpush1.bf16.msra.mxu0 %v6805_v38  ;;  %v6806_v63 = vld [vmem:[%s10427_s3 + $0x58] sm:$0xff]   ;;  %v11022_v48 = vld [vmem:[#allocation11_spill] sm:$0xff] }
 0x3ab   : > { %2813 = vrot.lane.b32.xlu1 %v2235_v22, %s6896_s16  ;;  %v3546_v3 = vadd.f32 %v8902_v59, %v3438_v53  ;;  %4178 = vmatprep.subr.bf16.mxu0 %v10852_v27 }
 0x3ac   : > { %v9306_v24 = vpack.c.bf16 %v3606_v49, %v3604_v30  ;;  %v3643_v7 = vmax.f32 %v3547_v39, 0.0  ;;  %v11023_v30 = vld [vmem:[#allocation20_spill] sm:$0xff] }
 0x3ad   : > { %v2702_v23 = vpop.permute.xlu1 %2701  ;;  %v3642_v35 = vmax.f32 %v3546_v3, 0.0  ;;  %v2960_v31 = vsel %vm2919_vm2, %v11023_v30, %v2698_v13  ;;  %v11024_v3 = vld [vmem:[#allocation117_spill] sm:$0xff] }
 0x3ae   : > { %v2240_v2 = vpop.f32.mrb[28].mxu1  ;;  %v9312_v26 = vpack.c.bf16 %v3643_v7, %v3641_v58  ;;  %4179 = vmatpush1.bf16.msra.mxu0 %v6806_v63  ;;  %v3289_v58 = vmax.f32 %v11024_v3, %v2698_v13  ;;  %v11025_v7 = vld [vmem:[#allocation24_spill] sm:$0xff]  ;;  %v11032_v3 = vld [vmem:[#allocation25_spill] sm:$0xff] }
 0x3af   : > { %v2242_v55 = vpop.f32.mrb[29].mxu1  ;;  %2817 = vrot.lane.b32.xlu1 %v2240_v2, %s6896_s16  ;;  %v9315_v12 = vpack.c.bf16 %v3642_v35, %v3640_v36  ;;  %4420 = vmatprep.subr.bf16.mxu0 %v10852_v27  ;;  %v11026_v36 = vld [vmem:[#allocation128_spill] sm:$0xff]  ;;  %v11027_v2 = vld [vmem:[#allocation115_spill] sm:$0xff] }
 0x3b0   : > { %11020 = vst [vmem:[#allocation40_spill] sm:$0xff] %v9312_v26  ;;  %v2243_v11 = vpop.f32.mrb[30].mxu1  ;;  %6118 = vmatprep.mubr.msk.bf16.mxu0 %vm2919_vm2, %v9312_v26  ;;  %v3288_v55 = vmax.f32 %v11027_v2, %v2960_v31  ;;  %v11031_v26 = vld [vmem:[#allocation120_spill] sm:$0xff]  ;;  %v11034_v31 = vld [vmem:[#allocation118_spill] sm:$0xff] }
 0x3b1   : > { %11021 = vst [vmem:[#allocation60_spill] sm:$0xff] %v9315_v12  ;;  %v2245_v47 = vpop.f32.mrb[31].mxu1  ;;  %v2706_v10 = vpop.permute.xlu1 %2705  ;;  %4006 = vmatmul.mubr.bf16.gmra.mrb[76].mxu0 %v9315_v12  ;;  %v3291_v13 = vmax.f32 %v11031_v26, %v2702_v23 }
 0x3b2   : > { %v11029_v47 = vld [vmem:[#allocation13_spill] sm:$0xff] }
 0x3b3   : > { %2821 = vrot.lane.b32.xlu1 %v2243_v11, %s6896_s16  ;;  %v11028_v11 = vld [vmem:[#allocation127_spill] sm:$0xff] }
 0x3b5   : > { %v2710_v22 = vpop.permute.xlu1 %2709 }
 0x3b6   : > { %v2248_v57 = vpop.f32.mrb[32].mxu1 }
 0x3b7   : > { %2545 = vrot.lane.b32.xlu1 %v11022_v48, %s6896_s16  ;;  %v2250_v29 = vpop.f32.mrb[33].mxu1  ;;  %v11030_v48 = vld [vmem:[#allocation21_spill] sm:$0xff] }
 0x3b8   : > { %v9330_v49 = vpop.f32.mrb[34].mxu1  ;;  %v2961_v29 = vsel %vm2919_vm2, %v11030_v48, %v2702_v23  ;;  %v11037_v48 = vld [vmem:[#allocation22_spill] sm:$0xff] }
 0x3b9   : > { %v2714_v53 = vpop.permute.xlu1 %2713  ;;  %v2253_v39 = vpop.f32.mrb[35].mxu1  ;;  %v3290_v2 = vmax.f32 %v11034_v31, %v2961_v29  ;;  %v11039_v31 = vld [vmem:[#allocation29_spill] sm:$0xff] }
 0x3ba   : > { %v2964_v38 = vsel %vm2919_vm2, %v11025_v7, %v2714_v53  ;;  %v3297_v35 = vmax.f32 %v11026_v36, %v2714_v53 }
 0x3bb   : > { %v3296_v63 = vmax.f32 %v11028_v11, %v2964_v38  ;;  %2549 = vrot.lane.b32.xlu1 %v11029_v47, %s6896_s16  ;;  %v11035_v38 = vld [vmem:[#allocation129_spill] sm:$0xff]  ;;  %v11036_v47 = vld [vmem:[#allocation15_spill] sm:$0xff] }
 0x3bc   : > { %v3441_v30 = vmax.f32 %v3289_v58, %v3297_v35  ;;  %v2962_v58 = vsel %vm2919_vm2, %v11037_v48, %v2706_v10 }
 0x3bd   : > { %v3440_v12 = vmax.f32 %v3288_v55, %v3296_v63  ;;  %v2718_v39 = vpop.permute.xlu1 %2717  ;;  %v3292_v48 = vmax.f32 %v11041_v18, %v2962_v58  ;;  %v11046_v58 = vld [vmem:[#allocation30_spill] sm:$0xff] }
 0x3be   : > { %v2965_v7 = vsel %vm2919_vm2, %v11032_v3, %v2718_v39  ;;  %v3299_v53 = vmax.f32 %v11033_v19, %v2718_v39  ;;  %v2256_v36 = vpop.f32.mrb[36].mxu1  ;;  %v3549_v35 = vadd.f32 %v8824_v15, %v3441_v30  ;;  %v11038_v3 = vld [vmem:[#allocation123_spill] sm:$0xff] }
 0x3bf   : > { %v3298_v11 = vmax.f32 %v11035_v38, %v2965_v7  ;;  %2561 = vrot.lane.b32.xlu1 %v11036_v47, %s6896_s16  ;;  %v2258_v40 = vpop.f32.mrb[37].mxu1  ;;  %v3548_v55 = vadd.f32 %v8902_v59, %v3440_v12  ;;  %v3293_v29 = vmax.f32 %v11038_v3, %v2706_v10  ;;  %v11043_v12 = vld [vmem:[#allocation16_spill] sm:$0xff] }
 0x3c0   : > { %v3443_v23 = vmax.f32 %v3291_v13, %v3299_v53  ;;  %v2259_v26 = vpop.f32.mrb[38].mxu1  ;;  %v11040_v40 = vld [vmem:[#allocation132_spill] sm:$0xff]  ;;  %v11042_v13 = vld [vmem:[#allocation131_spill] sm:$0xff]  ;;  %v3645_v10 = vmax.f32 %v3549_v35, 0.0  ;;  %v11049_v35 = vld [vmem:[#allocation133_spill] sm:$0xff] }
 0x3c1   : > { %v3442_v63 = vmax.f32 %v3290_v2, %v3298_v11  ;;  %v2722_v19 = vpop.permute.xlu1 %2721  ;;  %v2261_v39 = vpop.f32.mrb[39].mxu1  ;;  %v11044_v2 = vld [vmem:[#allocation23_spill] sm:$0xff]  ;;  %v3644_v3 = vmax.f32 %v3548_v55, 0.0 }
 0x3c2   : > { %v3551_v7 = vadd.f32 %v8824_v15, %v3443_v23  ;;  %v2966_v38 = vsel %vm2919_vm2, %v11039_v31, %v2722_v19  ;;  %v3301_v47 = vmax.f32 %v11040_v40, %v2722_v19  ;;  %v2963_v11 = vsel %vm2919_vm2, %v11044_v2, %v2710_v22  ;;  %v11045_v19 = vld [vmem:[#allocation126_spill] sm:$0xff] }
 0x3c3   : > { %v3550_v30 = vadd.f32 %v8902_v59, %v3442_v63  ;;  %v3300_v53 = vmax.f32 %v11042_v13, %v2966_v38  ;;  %2565 = vrot.lane.b32.xlu1 %v11043_v12, %s6896_s16  ;;  %v3295_v40 = vmax.f32 %v11045_v19, %v2710_v22  ;;  %v11047_v38 = vld [vmem:[#allocation134_spill] sm:$0xff]  ;;  %v3294_v20 = vmax.f32 %v11048_v56, %v2963_v11 }
 0x3c4   : > { %v3647_v39 = vmax.f32 %v3551_v7, 0.0  ;;  %v3445_v23 = vmax.f32 %v3293_v29, %v3301_v47 }
 0x3c5   : > { %v3646_v54 = vmax.f32 %v3550_v30, 0.0  ;;  %v3444_v31 = vmax.f32 %v3292_v48, %v3300_v53  ;;  %v2726_v16 = vpop.permute.xlu1 %2725 }
 0x3c6   : > { %v9367_v18 = vpack.c.bf16 %v3647_v39, %v3645_v10  ;;  %v2967_v63 = vsel %vm2919_vm2, %v11046_v58, %v2726_v16  ;;  %v3303_v13 = vmax.f32 %v11047_v38, %v2726_v16  ;;  %v2264_v12 = vpop.f32.mrb[40].mxu1  ;;  %v3553_v7 = vadd.f32 %v8824_v15, %v3445_v23 }
 0x3c7   : > { %v9373_v2 = vpack.c.bf16 %v3646_v54, %v3644_v3  ;;  %v3302_v29 = vmax.f32 %v11049_v35, %v2967_v63  ;;  %2825 = vrot.lane.b32.xlu1 %v2248_v57, %s6896_s16  ;;  %v2266_v55 = vpop.f32.mrb[41].mxu1  ;;  %v3552_v48 = vadd.f32 %v8902_v59, %v3444_v31  ;;  %v11050_v35 = vld [vmem:[#allocation31_spill] sm:$0xff] }
 0x3c8   : > { %v3447_v22 = vmax.f32 %v3295_v40, %v3303_v13  ;;  %6119 = vmatprep.mubr.msk.bf16.mxu0 %vm2919_vm2, %v9367_v18  ;;  %v2267_v47 = vpop.f32.mrb[42].mxu1  ;;  %v3649_v57 = vmax.f32 %v3553_v7, 0.0 }
 0x3c9   : > { %v3446_v16 = vmax.f32 %v3294_v20, %v3302_v29  ;;  %v2730_v30 = vpop.permute.xlu1 %2729  ;;  %4014 = vmatmul.mubr.bf16.gmra.mrb[80].mxu0 %v9373_v2  ;;  %v2269_v56 = vpop.f32.mrb[43].mxu1  ;;  %v3648_v10 = vmax.f32 %v3552_v48, 0.0 }
 0x3ca   : > { %v3555_v54 = vadd.f32 %v8824_v15, %v3447_v22  ;;  %v2968_v29 = vsel %vm2919_vm2, %v11050_v35, %v2730_v30  ;;  %v11051_v22 = vld [vmem:[#allocation136_spill] sm:$0xff] }
 0x3cb   : > { %v3554_v53 = vadd.f32 %v8902_v59, %v3446_v16  ;;  %2829 = vrot.lane.b32.xlu1 %v9330_v49, %s6896_s16  ;;  %v3305_v48 = vmax.f32 %v11051_v22, %v2730_v30  ;;  %v11052_v56 = vld [vmem:[#allocation144_spill] sm:$0xff]  ;;  %v11058_v22 = vld [vmem:[#allocation145_spill] sm:$0xff] }
 0x3cc   : > { %v3651_v11 = vmax.f32 %v3555_v54, 0.0 }
 0x3cd   : > { %v3650_v39 = vmax.f32 %v3554_v53, 0.0  ;;  %v2734_v23 = vpop.permute.xlu1 %2733 }
 0x3ce   : > { %v9386_v3 = vpack.c.bf16 %v3651_v11, %v3649_v57  ;;  %v2272_v31 = vpop.f32.mrb[44].mxu1  ;;  %v11054_v57 = vld [vmem:[#allocation143_spill] sm:$0xff] }
 0x3cf   : > { %v9388_v20 = vpack.c.bf16 %v3650_v39, %v3648_v10  ;;  %2833 = vrot.lane.b32.xlu1 %v2256_v36, %s6896_s16  ;;  %v2274_v19 = vpop.f32.mrb[45].mxu1 }
 0x3d0   : > { %6120 = vmatprep.mubr.msk.bf16.mxu0 %vm2919_vm2, %v9386_v3  ;;  %v2275_v40 = vpop.f32.mrb[46].mxu1 }
 0x3d1   : > { %v2738_v58 = vpop.permute.xlu1 %2737  ;;  %4022 = vmatmul.mubr.bf16.gmra.mrb[84].mxu0 %v9388_v20  ;;  %v2277_v49 = vpop.f32.mrb[47].mxu1 }
 0x3d2   : > { %v11055_v49 = vld [vmem:[#allocation138_spill] sm:$0xff] }
 0x3d3   : > { %2837 = vrot.lane.b32.xlu1 %v2259_v26, %s6896_s16  ;;  %v11053_v26 = vld [vmem:[#allocation135_spill] sm:$0xff] }
 0x3d4   : > { %v3304_v53 = vmax.f32 %v11053_v26, %v2968_v29 }
 0x3d5   : > { %v2742_v63 = vpop.permute.xlu1 %2741 }
 0x3d6   : > { %v2280_v38 = vpop.f32.mrb[48].mxu1 }
 0x3d7   : > { %2841 = vrot.lane.b32.xlu1 %v2264_v12, %s6896_s16  ;;  %v2282_v13 = vpop.f32.mrb[49].mxu1  ;;  %v2969_v12 = vsel %vm2919_vm2, %v8891_v28, %v2734_v23  ;;  %v2970_v28 = vsel %vm2919_vm2, %v8942_v60, %v2738_v58 }
 0x3d8   : > { %v9398_v36 = vpop.f32.mrb[50].mxu1  ;;  %v3307_v13 = vmax.f32 %v11055_v49, %v2734_v23 }
 0x3d9   : > { %v2746_v55 = vpop.permute.xlu1 %2745  ;;  %v2285_v7 = vpop.f32.mrb[51].mxu1 }
 0x3da   : > { %v2972_v16 = vsel %vm2919_vm2, %v8908_v42, %v2746_v55  ;;  %v3313_v54 = vmax.f32 %v11052_v56, %v2746_v55  ;;  %v11056_v42 = vld [vmem:[#allocation146_spill] sm:$0xff]  ;;  %v11057_v7 = vld [vmem:[#allocation137_spill] sm:$0xff] }
 0x3db   : > { %v3312_v11 = vmax.f32 %v11054_v57, %v2972_v16  ;;  %2845 = vrot.lane.b32.xlu1 %v2267_v47, %s6896_s16  ;;  %v3306_v29 = vmax.f32 %v11057_v7, %v2969_v12  ;;  %v11059_v57 = vld [vmem:[#allocation140_spill] sm:$0xff] }
 0x3dc   : > { %v3449_v10 = vmax.f32 %v3305_v48, %v3313_v54 }
 0x3dd   : > { %v3448_v39 = vmax.f32 %v3304_v53, %v3312_v11  ;;  %v2750_v19 = vpop.permute.xlu1 %2749  ;;  %v3309_v11 = vmax.f32 %v11059_v57, %v2738_v58  ;;  %v11065_v57 = vld [vmem:[#allocation141_spill] sm:$0xff] }
 0x3de   : > { %v2973_v30 = vsel %vm2919_vm2, %v8926_v25, %v2750_v19  ;;  %v3315_v35 = vmax.f32 %v11056_v42, %v2750_v19  ;;  %v2288_v55 = vpop.f32.mrb[52].mxu1  ;;  %v3557_v48 = vadd.f32 %v8824_v15, %v3449_v10  ;;  %v11060_v19 = vld [vmem:[#allocation148_spill] sm:$0xff] }
 0x3df   : > { %v3314_v16 = vmax.f32 %v11058_v22, %v2973_v30  ;;  %2849 = vrot.lane.b32.xlu1 %v2272_v31, %s6896_s16  ;;  %v2290_v47 = vpop.f32.mrb[53].mxu1  ;;  %v3556_v54 = vadd.f32 %v8902_v59, %v3448_v39  ;;  %v11061_v30 = vld [vmem:[#allocation139_spill] sm:$0xff]  ;;  %v2971_v39 = vsel %vm2919_vm2, %v8962_v46, %v2742_v63 }
 0x3e0   : > { %v3451_v56 = vmax.f32 %v3307_v13, %v3315_v35  ;;  %v2291_v23 = vpop.f32.mrb[54].mxu1  ;;  %v3308_v60 = vmax.f32 %v11061_v30, %v2970_v28  ;;  %v11062_v13 = vld [vmem:[#allocation147_spill] sm:$0xff]  ;;  %v3653_v35 = vmax.f32 %v3557_v48, 0.0  ;;  %v11063_v47 = vld [vmem:[#allocation142_spill] sm:$0xff]  ;;  %v11066_v48 = vld [vmem:[#allocation149_spill] sm:$0xff] }
 0x3e1   : > { %v3450_v25 = vmax.f32 %v3306_v29, %v3314_v16  ;;  %v2754_v26 = vpop.permute.xlu1 %2753  ;;  %v2293_v53 = vpop.f32.mrb[55].mxu1  ;;  %v3652_v29 = vmax.f32 %v3556_v54, 0.0 }
 0x3e2   : > { %v3559_v12 = vadd.f32 %v8824_v15, %v3451_v56  ;;  %v2974_v31 = vsel %vm2919_vm2, %v8969_v37, %v2754_v26  ;;  %v3317_v49 = vmax.f32 %v11060_v19, %v2754_v26  ;;  %v3311_v56 = vmax.f32 %v11063_v47, %v2742_v63 }
 0x3e3   : > { %v3558_v10 = vadd.f32 %v8902_v59, %v3450_v25  ;;  %v3316_v42 = vmax.f32 %v11062_v13, %v2974_v31  ;;  %2853 = vrot.lane.b32.xlu1 %v2275_v40, %s6896_s16  ;;  %v11064_v25 = vld [vmem:[#allocation150_spill] sm:$0xff]  ;;  %v3310_v31 = vmax.f32 %v11065_v57, %v2971_v39 }
 0x3e4   : > { %v3655_v58 = vmax.f32 %v3559_v12, 0.0  ;;  %v3453_v7 = vmax.f32 %v3309_v11, %v3317_v49 }
 0x3e5   : > { %v3654_v22 = vmax.f32 %v3558_v10, 0.0  ;;  %v3452_v16 = vmax.f32 %v3308_v60, %v3316_v42  ;;  %v2758_v37 = vpop.permute.xlu1 %2757 }
 0x3e6   : > { %v9432_v26 = vpack.c.bf16 %v3655_v58, %v3653_v35  ;;  %v2975_v28 = vsel %vm2919_vm2, %v8986_v50, %v2758_v37  ;;  %v3319_v53 = vmax.f32 %v11064_v25, %v2758_v37  ;;  %v2296_v40 = vpop.f32.mrb[56].mxu1  ;;  %v3561_v12 = vadd.f32 %v8824_v15, %v3453_v7 }
 0x3e7   : > { %v9438_v46 = vpack.c.bf16 %v3654_v22, %v3652_v29  ;;  %v3318_v11 = vmax.f32 %v11066_v48, %v2975_v28  ;;  %2857 = vrot.lane.b32.xlu1 %v2280_v38, %s6896_s16  ;;  %v2298_v54 = vpop.f32.mrb[57].mxu1  ;;  %v3560_v50 = vadd.f32 %v8902_v59, %v3452_v16 }
 0x3e8   : > { %v3455_v63 = vmax.f32 %v3311_v56, %v3319_v53  ;;  %6121 = vmatprep.mubr.msk.bf16.mxu0 %vm2919_vm2, %v9432_v26  ;;  %v2299_v19 = vpop.f32.mrb[58].mxu1  ;;  %v3657_v38 = vmax.f32 %v3561_v12, 0.0  ;;  %v9459_v56 = vpop.permute.xlu0 %2543  ;;  %v11067_v54 = vld [vmem:[#allocation152_spill] sm:$0xff] }
 0x3e9   : > { %v3454_v49 = vmax.f32 %v3310_v31, %v3318_v11  ;;  %v2762_v30 = vpop.permute.xlu1 %2761  ;;  %4030 = vmatmul.mubr.bf16.gmra.mrb[88].mxu0 %v9438_v46  ;;  %v2301_v60 = vpop.f32.mrb[59].mxu1  ;;  %v3656_v39 = vmax.f32 %v3560_v50, 0.0 }
 0x3ea   : > { %v3563_v10 = vadd.f32 %v8824_v15, %v3455_v63  ;;  %v2976_v57 = vsel %vm2919_vm2, %v8997_v21, %v2762_v30  ;;  %v3321_v12 = vmax.f32 %v11067_v54, %v2762_v30  ;;  %v11068_v63 = vld [vmem:[#allocation160_spill] sm:$0xff]  ;;  %v11071_v30 = vld [vmem:[#allocation154_spill] sm:$0xff] }
 0x3eb   : > { %v3562_v13 = vadd.f32 %v8902_v59, %v3454_v49  ;;  %2861 = vrot.lane.b32.xlu1 %v9398_v36, %s6896_s16  ;;  %v11069_v49 = vld [vmem:[#allocation151_spill] sm:$0xff] }
 0x3ec   : > { %v3659_v42 = vmax.f32 %v3563_v10, 0.0  ;;  %v3320_v60 = vmax.f32 %v11069_v49, %v2976_v57  ;;  %v11073_v57 = vld [vmem:[#allocation153_spill] sm:$0xff] }
 0x3ed   : > { %v3658_v35 = vmax.f32 %v3562_v13, 0.0  ;;  %v2766_v58 = vpop.permute.xlu1 %2765 }
 0x3ee   : > { %v9451_v7 = vpack.c.bf16 %v3659_v42, %v3657_v38  ;;  %v2304_v29 = vpop.f32.mrb[60].mxu1  ;;  %v2977_v21 = vsel %vm2919_vm2, %v9009_v41, %v2766_v58 }
 0x3ef   : > { %v9453_v22 = vpack.c.bf16 %v3658_v35, %v3656_v39  ;;  %2865 = vrot.lane.b32.xlu1 %v2288_v55, %s6896_s16  ;;  %v2306_v16 = vpop.f32.mrb[61].mxu1  ;;  %v9465_v55 = vpop.permute.xlu0 %2547  ;;  %v3323_v35 = vmax.f32 %v11071_v30, %v2766_v58  ;;  %v11077_v30 = vld [vmem:[#allocation155_spill] sm:$0xff] }
 0x3f0   : > { %6122 = vmatprep.mubr.msk.bf16.mxu0 %vm2919_vm2, %v9451_v7  ;;  %v2307_v37 = vpop.f32.mrb[62].mxu1  ;;  %v11072_v16 = vld [vmem:[#allocation162_spill] sm:$0xff] }
 0x3f1   : > { %v2770_v47 = vpop.permute.xlu1 %2769  ;;  %4038 = vmatmul.mubr.bf16.gmra.mrb[92].mxu0 %v9453_v22  ;;  %v2309_v36 = vpop.f32.mrb[63].mxu1 }
 0x3f2   : > { %v2978_v54 = vsel %vm2919_vm2, %v9060_v44, %v2770_v47 }
 0x3f3   : > { %2869 = vrot.lane.b32.xlu1 %v2291_v23, %s6896_s16  ;;  %v9480_v39 = vpop.permute.xlu0 %2559  ;;  %v3324_v44 = vmax.f32 %v11077_v30, %v2978_v54 }
 0x3f5   : > { %v9462_v28 = vpop.permute.xlu1 %2773 }
 0x3f6   : > { %v2312_v25 = vpop.f32.mrb[64].mxu1 }
 0x3f7   : > { %2873 = vrot.lane.b32.xlu1 %v2296_v40, %s6896_s16  ;;  %v2314_v53 = vpop.f32.mrb[65].mxu1  ;;  %v11070_v40 = vld [vmem:[#allocation159_spill] sm:$0xff] }
 0x3f8   : > { %v9469_v31 = vpop.f32.mrb[66].mxu1 }
 0x3f9   : > { %v2778_v48 = vpop.permute.xlu1 %2777  ;;  %v2317_v11 = vpop.f32.mrb[67].mxu1 }
 0x3fa   : > { %v2980_v23 = vsel %vm2919_vm2, %v9022_v45, %v2778_v48  ;;  %v3329_v50 = vmax.f32 %v11068_v63, %v2778_v48  ;;  %v3322_v48 = vmax.f32 %v11073_v57, %v2977_v21  ;;  %v11074_v11 = vld [vmem:[#allocation161_spill] sm:$0xff]  ;;  %v11076_v21 = vld [vmem:[#allocation164_spill] sm:$0xff] }
 0x3fb   : > { %v3328_v10 = vmax.f32 %v11070_v40, %v2980_v23  ;;  %2877 = vrot.lane.b32.xlu1 %v2299_v19, %s6896_s16 }
 0x3fc   : > { %v3457_v13 = vmax.f32 %v3321_v12, %v3329_v50 }
 0x3fd   : > { %v3456_v38 = vmax.f32 %v3320_v60, %v3328_v10  ;;  %v2782_v42 = vpop.permute.xlu1 %2781  ;;  %v11075_v60 = vld [vmem:[#allocation156_spill] sm:$0xff] }
 0x3fe   : > { %v2981_v45 = vsel %vm2919_vm2, %v9043_v6, %v2782_v42  ;;  %v3331_v36 = vmax.f32 %v11072_v16, %v2782_v42  ;;  %v2320_v53 = vpop.f32.mrb[68].mxu1  ;;  %v3565_v12 = vadd.f32 %v8824_v15, %v3457_v13  ;;  %v3325_v40 = vmax.f32 %v11075_v60, %v2770_v47  ;;  %v11081_v60 = vld [vmem:[#allocation157_spill] sm:$0xff] }
 0x3ff   : > { %v3330_v19 = vmax.f32 %v11074_v11, %v2981_v45  ;;  %2881 = vrot.lane.b32.xlu1 %v2304_v29, %s6896_s16  ;;  %v2322_v41 = vpop.f32.mrb[69].mxu1  ;;  %v3564_v63 = vadd.f32 %v8902_v59, %v3456_v38  ;;  %v9502_v38 = vpop.permute.xlu0 %2563  ;;  %v2979_v47 = vsel %vm2919_vm2, %v9077_v34, %v9462_v28 }
 0x400   : > { %v3459_v23 = vmax.f32 %v3323_v35, %v3331_v36  ;;  %v2323_v58 = vpop.f32.mrb[70].mxu1  ;;  %v11078_v35 = vld [vmem:[#allocation163_spill] sm:$0xff]  ;;  %v3661_v16 = vmax.f32 %v3565_v12, 0.0  ;;  %v11079_v41 = vld [vmem:[#allocation158_spill] sm:$0xff]  ;;  %v3326_v34 = vmax.f32 %v11081_v60, %v2979_v47 }
 0x401   : > { %v3458_v6 = vmax.f32 %v3322_v48, %v3330_v19  ;;  %v2786_v50 = vpop.permute.xlu1 %2785  ;;  %v2325_v49 = vpop.f32.mrb[71].mxu1  ;;  %v3327_v54 = vmax.f32 %v11079_v41, %v9462_v28 }
 0x402   : > { %v3567_v10 = vadd.f32 %v8824_v15, %v3459_v23  ;;  %v2982_v29 = vsel %vm2919_vm2, %v9083_v43, %v2786_v50  ;;  %v3333_v42 = vmax.f32 %v11076_v21, %v2786_v50  ;;  %v3660_v43 = vmax.f32 %v3564_v63, 0.0 }
 0x403   : > { %v3566_v13 = vadd.f32 %v8902_v59, %v3458_v6  ;;  %v3332_v45 = vmax.f32 %v11078_v35, %v2982_v29  ;;  %2885 = vrot.lane.b32.xlu1 %v2307_v37, %s6896_s16  ;;  %v11080_v6 = vld [vmem:[#allocation166_spill] sm:$0xff] }
 0x404   : > { %v3663_v36 = vmax.f32 %v3567_v10, 0.0  ;;  %v3461_v57 = vmax.f32 %v3325_v40, %v3333_v42  ;;  %v11082_v40 = vld [vmem:[#allocation165_spill] sm:$0xff] }
 0x405   : > { %v3662_v48 = vmax.f32 %v3566_v13, 0.0  ;;  %v3460_v11 = vmax.f32 %v3324_v44, %v3332_v45  ;;  %v2790_v19 = vpop.permute.xlu1 %2789  ;;  %v9524_v13 = vpop.permute.xlu0 %2823 }
 0x406   : > { %v9509_v23 = vpack.c.bf16 %v3663_v36, %v3661_v16  ;;  %v2983_v37 = vsel %vm2919_vm2, %v9100_v17, %v2790_v19  ;;  %v3335_v50 = vmax.f32 %v11080_v6, %v2790_v19  ;;  %v2328_v49 = vpop.f32.mrb[72].mxu1  ;;  %v3569_v29 = vadd.f32 %v8824_v15, %v3461_v57 }
 0x407   : > { %v9515_v12 = vpack.c.bf16 %v3662_v48, %v3660_v43  ;;  %v3334_v63 = vmax.f32 %v11082_v40, %v2983_v37  ;;  %2889 = vrot.lane.b32.xlu1 %v2312_v25, %s6896_s16  ;;  %v2330_v10 = vpop.f32.mrb[73].mxu1  ;;  %v3568_v17 = vadd.f32 %v8902_v59, %v3460_v11 }
 0x408   : > { %v3463_v28 = vmax.f32 %v3327_v54, %v3335_v50  ;;  %6123 = vmatprep.mubr.msk.bf16.mxu0 %vm2919_vm2, %v9509_v23  ;;  %v2331_v21 = vpop.f32.mrb[74].mxu1  ;;  %v3665_v45 = vmax.f32 %v3569_v29, 0.0  ;;  %v11084_v10 = vld [vmem:[#allocation176_spill] sm:$0xff] }
 0x409   : > { %v3462_v42 = vmax.f32 %v3326_v34, %v3334_v63  ;;  %v2794_v30 = vpop.permute.xlu1 %2793  ;;  %4046 = vmatmul.mubr.bf16.gmra.mrb[96].mxu0 %v9515_v12  ;;  %v2333_v44 = vpop.f32.mrb[75].mxu1  ;;  %v3664_v16 = vmax.f32 %v3568_v17, 0.0  ;;  %v11083_v34 = vld [vmem:[#allocation168_spill] sm:$0xff] }
 0x40a   : > { %v3571_v35 = vadd.f32 %v8824_v15, %v3463_v28  ;;  %v9535_v41 = vpop.permute.xlu0 %2827  ;;  %v3337_v40 = vmax.f32 %v11083_v34, %v2794_v30  ;;  %v11085_v28 = vld [vmem:[#allocation167_spill] sm:$0xff] }
 0x40b   : > { %v3570_v25 = vadd.f32 %v8902_v59, %v3462_v42  ;;  %2893 = vrot.lane.b32.xlu1 %v9469_v31, %s6896_s16  ;;  %v11086_v42 = vld [vmem:[#allocation175_spill] sm:$0xff] }
 0x40c   : > { %v3667_v47 = vmax.f32 %v3571_v35, 0.0 }
 0x40d   : > { %v3666_v36 = vmax.f32 %v3570_v25, 0.0  ;;  %v2798_v57 = vpop.permute.xlu1 %2797 }
 0x40e   : > { %v9530_v43 = vpack.c.bf16 %v3667_v47, %v3665_v45  ;;  %v2336_v48 = vpop.f32.mrb[76].mxu1  ;;  %v9541_v50 = vpop.permute.xlu0 %2839  ;;  %v11088_v47 = vld [vmem:[#allocation178_spill] sm:$0xff] }
 0x40f   : > { %v9532_v11 = vpack.c.bf16 %v3666_v36, %v3664_v16  ;;  %2897 = vrot.lane.b32.xlu1 %v2320_v53, %s6896_s16  ;;  %v2338_v19 = vpop.f32.mrb[77].mxu1  ;;  %v2984_v53 = vsel %vm2919_vm2, %v9111_v52, %v2794_v30  ;;  %v11087_v30 = vld [vmem:[#allocation170_spill] sm:$0xff]  ;;  %v11089_v36 = vld [vmem:[#allocation169_spill] sm:$0xff] }
 0x410   : > { %6124 = vmatprep.mubr.msk.bf16.mxu0 %vm2919_vm2, %v9530_v43  ;;  %v2339_v54 = vpop.f32.mrb[78].mxu1  ;;  %v3336_v17 = vmax.f32 %v11085_v28, %v2984_v53  ;;  %v3339_v45 = vmax.f32 %v11087_v30, %v2798_v57  ;;  %v11092_v28 = vld [vmem:[#allocation180_spill] sm:$0xff] }
 0x411   : > { %v2802_v31 = vpop.permute.xlu1 %2801  ;;  %4054 = vmatmul.mubr.bf16.gmra.mrb[100].mxu0 %v9532_v11  ;;  %v2341_v37 = vpop.f32.mrb[79].mxu1 }
 0x412   : > { %v9555_v35 = vpop.permute.xlu0 %2843  ;;  %v11090_v37 = vld [vmem:[#allocation177_spill] sm:$0xff] }
 0x413   : > { %2901 = vrot.lane.b32.xlu1 %v2323_v58, %s6896_s16 }
 0x415   : > { %v2806_v6 = vpop.permute.xlu1 %2805 }
 0x417   : > { %2905 = vrot.lane.b32.xlu1 %v2328_v49, %s6896_s16  ;;  %v2985_v49 = vsel %vm2919_vm2, %v9123_v1, %v2798_v57  ;;  %v2986_v1 = vsel %vm2919_vm2, %v9174_v8, %v2802_v31 }
 0x418   : > { %v3338_v19 = vmax.f32 %v11089_v36, %v2985_v49  ;;  %v11094_v49 = vld [vmem:[#allocation179_spill] sm:$0xff] }
 0x419   : > { %v2810_v60 = vpop.permute.xlu1 %2809 }
 0x41a   : > { %v2988_v63 = vsel %vm2919_vm2, %v9136_v62, %v2810_v60  ;;  %v3345_v29 = vmax.f32 %v11084_v10, %v2810_v60 }
 0x41b   : > { %v3344_v58 = vmax.f32 %v11086_v42, %v2988_v63  ;;  %2909 = vrot.lane.b32.xlu1 %v2331_v21, %s6896_s16  ;;  %v11091_v63 = vld [vmem:[#allocation172_spill] sm:$0xff]  ;;  %v11093_v42 = vld [vmem:[#allocation171_spill] sm:$0xff] }
 0x41c   : > { %v3465_v44 = vmax.f32 %v3337_v40, %v3345_v29  ;;  %v3340_v8 = vmax.f32 %v11093_v42, %v2986_v1 }
 0x41d   : > { %v3464_v52 = vmax.f32 %v3336_v17, %v3344_v58  ;;  %v2814_v25 = vpop.permute.xlu1 %2813 }
 0x41e   : > { %v2989_v62 = vsel %vm2919_vm2, %v9157_v32, %v2814_v25  ;;  %v3347_v16 = vmax.f32 %v11088_v47, %v2814_v25  ;;  %v3573_v21 = vadd.f32 %v8824_v15, %v3465_v44  ;;  %v3341_v32 = vmax.f32 %v11091_v63, %v2802_v31 }
 0x41f   : > { %v3346_v53 = vmax.f32 %v11090_v37, %v2989_v62  ;;  %2913 = vrot.lane.b32.xlu1 %v2336_v48, %s6896_s16  ;;  %v3572_v34 = vadd.f32 %v8902_v59, %v3464_v52  ;;  %v9573_v48 = vpop.permute.xlu0 %2831  ;;  %v2987_v31 = vsel %vm2919_vm2, %v9191_v33, %v2806_v6  ;;  %v11096_v37 = vld [vmem:[#allocation182_spill] sm:$0xff] }
 0x420   : > { %v3467_v60 = vmax.f32 %v3339_v45, %v3347_v16  ;;  %v3669_v52 = vmax.f32 %v3573_v21, 0.0  ;;  %v11095_v16 = vld [vmem:[#allocation174_spill] sm:$0xff] }
 0x421   : > { %v3466_v57 = vmax.f32 %v3338_v19, %v3346_v53  ;;  %v2818_v40 = vpop.permute.xlu1 %2817  ;;  %v3668_v45 = vmax.f32 %v3572_v34, 0.0  ;;  %v3343_v36 = vmax.f32 %v11095_v16, %v2806_v6  ;;  %v11101_v16 = vld [vmem:[#allocation28_spill] sm:$0xff] }
 0x422   : > { %v3575_v10 = vadd.f32 %v8824_v15, %v3467_v60  ;;  %v2990_v29 = vsel %vm2919_vm2, %v9197_v5, %v2818_v40  ;;  %v3349_v17 = vmax.f32 %v11092_v28, %v2818_v40 }
 0x423   : > { %v3574_v58 = vadd.f32 %v8902_v59, %v3466_v57  ;;  %v3348_v44 = vmax.f32 %v11094_v49, %v2990_v29  ;;  %2917 = vrot.lane.b32.xlu1 %v2339_v54, %s6896_s16  ;;  %v11097_v54 = vld [vmem:[#allocation173_spill] sm:$0xff]  ;;  %v9594_v6 = vpop.permute.xlu0 %2835 }
 0x424   : > { %v3671_v25 = vmax.f32 %v3575_v10, 0.0  ;;  %v3469_v30 = vmax.f32 %v3341_v32, %v3349_v17  ;;  %v3342_v60 = vmax.f32 %v11097_v54, %v2987_v31  ;;  %v11098_v57 = vld [vmem:[#allocation181_spill] sm:$0xff] }
 0x425   : > { %v3670_v5 = vmax.f32 %v3574_v58, 0.0  ;;  %v3468_v62 = vmax.f32 %v3340_v8, %v3348_v44  ;;  %v2822_v47 = vpop.permute.xlu1 %2821 }
 0x426   : > { %v2991_v19 = vsel %vm2919_vm2, %v9214_v9, %v2822_v47  ;;  %v3351_v53 = vmax.f32 %v11096_v37, %v2822_v47  ;;  %v9585_v1 = vpack.c.bf16 %v3671_v25, %v3669_v52  ;;  %v3577_v34 = vadd.f32 %v8824_v15, %v3469_v30  ;;  %v11099_v30 = vld [vmem:[#allocation50_spill] sm:$0xff]  ;;  %v11103_v37 = vld [vmem:[#allocation67_spill] sm:$0xff] }
 0x427   : > { %v3350_v33 = vmax.f32 %v11098_v57, %v2991_v19  ;;  %v9589_v21 = vpack.c.bf16 %v3670_v5, %v3668_v45  ;;  %v3576_v9 = vadd.f32 %v8902_v59, %v3468_v62  ;;  %v9602_v44 = vpop.permute.xlu0 %2847  ;;  %v11100_v62 = vld [vmem:[#allocation69_spill] sm:$0xff] }
 0x428   : > { %v3471_v40 = vmax.f32 %v3343_v36, %v3351_v53  ;;  %6125 = vmatprep.mubr.msk.bf16.mxu0 %vm2919_vm2, %v9585_v1  ;;  %v3673_v28 = vmax.f32 %v3577_v34, 0.0  ;;  %v11102_v36 = vld [vmem:[#allocation47_spill] sm:$0xff] }
 0x429   : > { %v3470_v63 = vmax.f32 %v3342_v60, %v3350_v33  ;;  %v2546_v32 = vpop.permute.xlu1 %2545  ;;  %4062 = vmatmul.mubr.bf16.gmra.mrb[104].mxu0 %v9589_v21  ;;  %v3672_v42 = vmax.f32 %v3576_v9, 0.0  ;;  %v11104_v34 = vld [vmem:[#allocation55_spill] sm:$0xff] }
 0x42a   : > { %v3579_v10 = vadd.f32 %v8824_v15, %v3471_v40  ;;  %v2922_v52 = vsel %vm2919_vm2, %v9459_v56, %v2546_v32  ;;  %v3213_v45 = vmax.f32 %v11099_v30, %v2546_v32  ;;  %v11105_v32 = vld [vmem:[#allocation53_spill] sm:$0xff] }
 0x42b   : > { %v3578_v29 = vadd.f32 %v8902_v59, %v3470_v63  ;;  %v3212_v19 = vmax.f32 %v11102_v36, %v2922_v52  ;;  %v9621_v60 = vpop.permute.xlu0 %2851  ;;  %v6807_v63 = vld [vmem:[%s10427_s3 + $0xc0] sm:$0xff]  }
 0x42c   : > { %v3675_v17 = vmax.f32 %v3579_v10, 0.0 }
 0x42d   : > { %v3674_v8 = vmax.f32 %v3578_v29, 0.0  ;;  %v2550_v58 = vpop.permute.xlu1 %2549  ;;  %v11106_v29 = vld [vmem:[#allocation72_spill] sm:$0xff] }
 0x42e   : > { %v9600_v49 = vpack.c.bf16 %v3675_v17, %v3673_v28  ;;  %v2923_v53 = vsel %vm2919_vm2, %v9465_v55, %v2550_v58  ;;  %v3215_v40 = vmax.f32 %v11104_v34, %v2550_v58 }
 0x42f   : > { %v9604_v31 = vpack.c.bf16 %v3674_v8, %v3672_v42  ;;  %v3214_v10 = vmax.f32 %v11105_v32, %v2923_v53  ;;  %v9639_v52 = vpop.permute.xlu0 %2855  ;;  %v11108_v32 = vld [vmem:[#allocation183_spill] sm:$0xff] }
 0x430   : > { %6126 = vmatprep.mubr.msk.bf16.mxu0 %vm2919_vm2, %v9600_v49 }
 0x431   : > { %v2562_v25 = vpop.permute.xlu1 %2561  ;;  %4070 = vmatmul.mubr.bf16.gmra.mrb[108].mxu0 %v9604_v31 }
 0x432   : > { %v2926_v5 = vsel %vm2919_vm2, %v9480_v39, %v2562_v25  ;;  %v3221_v47 = vmax.f32 %v11100_v62, %v2562_v25  ;;  %6139 = vmatprep.mubr.msk.bf16.mxu0 %vm2919_vm2, %v11101_v16  ;;  %v6809_v16 = vld [vmem:[%s10427_s3 + $0xd0] sm:$0xff]  }
 0x433   : > { %v3220_v56 = vmax.f32 %v11103_v37, %v2926_v5 }
 0x434   : > { %v3405_v54 = vmax.f32 %v3213_v45, %v3221_v47 }
 0x435   : > { %v3404_v57 = vmax.f32 %v3212_v19, %v3220_v56  ;;  %v2566_v33 = vpop.permute.xlu1 %2565  ;;  %v9648_v19 = vpop.permute.xlu0 %2859  ;;  %v6810_v56 = vld [vmem:[%s10427_s3 + $0xd8] sm:$0xff]  }
 0x436   : > { %v2927_v39 = vsel %vm2919_vm2, %v9502_v38, %v2566_v33  ;;  %v3223_v9 = vmax.f32 %v10927_v61, %v2566_v33  ;;  %v3513_v28 = vadd.f32 %v8824_v15, %v3405_v54  ;;  %v6808_v61 = vld [vmem:[%s10427_s3 + $0xc8] sm:$0xff]   ;;  %v6811_v54 = vld [vmem:[%s10427_s3 + $0xe0] sm:$0xff]  }
 0x437   : > { %v3222_v55 = vmax.f32 %v11106_v29, %v2927_v39  ;;  %v3512_v58 = vadd.f32 %v8902_v59, %v3404_v57 }
 0x438   : > { %v3407_v17 = vmax.f32 %v3215_v40, %v3223_v9  ;;  %v3609_v30 = vmax.f32 %v3513_v28, 0.0  ;;  %v11107_v9 = vld [vmem:[#allocation32_spill] sm:$0xff]  ;;  %v11110_v28 = vld [vmem:[#allocation185_spill] sm:$0xff] }
 0x439   : > { %v3406_v42 = vmax.f32 %v3214_v10, %v3222_v55  ;;  %v2826_v8 = vpop.permute.xlu1 %2825  ;;  %4189 = vmatmul.mubr.bf16.vlgmr.msra.gmra.mrb[48].mxu0 %v9306_v24  ;;  %v3608_v62 = vmax.f32 %v3512_v58, 0.0  ;;  %v9661_v57 = vpop.permute.xlu0 %2871  ;;  %v11109_v10 = vld [vmem:[#allocation190_spill] sm:$0xff] }
 0x43a   : > { %v3515_v38 = vadd.f32 %v8824_v15, %v3407_v17  ;;  %4421 = vmatpush1.bf16.msra.mxu0 %v6807_v63  ;;  %v3353_v34 = vmax.f32 %v8420_v4, %v2826_v8  ;;  %v6812_v63 = vld [vmem:[%s10427_s3 + $0xe8] sm:$0xff]  }
 0x43b   : > { %v3514_v25 = vadd.f32 %v8902_v59, %v3406_v42  ;;  %4422 = vmatprep.subr.bf16.mxu0 %v10852_v27 }
 0x43c   : > { %v3611_v45 = vmax.f32 %v3515_v38, 0.0  ;;  %v6813_v38 = vld [vmem:[%s10427_s3 + $0xf0] sm:$0xff]  }
 0x43d   : > { %v2830_v5 = vpop.permute.xlu1 %2829  ;;  %v3610_v24 = vmax.f32 %v3514_v25, 0.0 }
 0x43e   : > { %v3703_v47 = vpack.c.bf16 %v3611_v45, %v3609_v30  ;;  %4423 = vmatpush1.bf16.msra.mxu0 %v6808_v61  ;;  %v2993_v4 = vsel %vm2919_vm2, %v9535_v41, %v2830_v5  ;;  %v3355_v17 = vmax.f32 %v11110_v28, %v2830_v5  ;;  %v11112_v61 = vld [vmem:[#allocation184_spill] sm:$0xff]  ;;  %v11113_v41 = vld [vmem:[#allocation191_spill] sm:$0xff] }
 0x43f   : > { %v3702_v36 = vpack.c.bf16 %v3610_v24, %v3608_v62  ;;  %4424 = vmatprep.subr.bf16.mxu0 %v10852_v27  ;;  %v3354_v25 = vmax.f32 %v11112_v61, %v2993_v4 }
 0x440   : > { %6140 = vmatprep.mubr.msk.bf16.mxu0 %vm2919_vm2, %v3703_v47 }
 0x441   : > { %v2834_v37 = vpop.permute.xlu1 %2833  ;;  %4197 = vmatmul.mubr.bf16.gmra.mrb[52].mxu0 %v3702_v36  ;;  %v11115_v36 = vld [vmem:[#allocation33_spill] sm:$0xff] }
 0x442   : > { %6141 = vmatprep.mubr.msk.bf16.mxu0 %vm2919_vm2, %v8944_v0  ;;  %4425 = vmatpush1.bf16.msra.mxu0 %v6809_v16  ;;  %v2992_v0 = vsel %vm2919_vm2, %v9524_v13, %v2826_v8  ;;  %v11111_v8 = vld [vmem:[#allocation192_spill] sm:$0xff]  ;;  %v2994_v45 = vsel %vm2919_vm2, %v9573_v48, %v2834_v37  ;;  %v6814_v48 = vld [vmem:[%s10427_s3 + $0xf8] sm:$0xff]  }
 0x443   : > { %4426 = vmatprep.subr.bf16.mxu0 %v10852_v27  ;;  %v3352_v13 = vmax.f32 %v11108_v32, %v2992_v0 }
 0x445   : > { %v9656_v53 = vpop.permute.xlu1 %2837 }
 0x446   : > { %4427 = vmatpush1.bf16.msra.mxu0 %v6810_v56 }
 0x447   : > { %4428 = vmatprep.subr.bf16.mxu0 %v10852_v27 }
 0x449   : > { %v2842_v33 = vpop.permute.xlu1 %2841  ;;  %4205 = vmatmul.mubr.bf16.gmra.mrb[56].mxu0 %v8950_v14 }
 0x44a   : > { %v2996_v40 = vsel %vm2919_vm2, %v9541_v50, %v2842_v33  ;;  %v3361_v39 = vmax.f32 %v8442_v51, %v2842_v33  ;;  %6142 = vmatprep.mubr.msk.bf16.mxu0 %vm2919_vm2, %v11107_v9  ;;  %4429 = vmatpush1.bf16.msra.mxu0 %v6811_v54  ;;  %v9681_v50 = vpop.permute.xlu0 %2875  ;;  %v11116_v33 = vld [vmem:[#allocation195_spill] sm:$0xff] }
 0x44b   : > { %v3360_v29 = vmax.f32 %v11109_v10, %v2996_v40  ;;  %4430 = vmatprep.subr.bf16.mxu0 %v10852_v27  ;;  %v11117_v40 = vld [vmem:[#allocation34_spill] sm:$0xff] }
 0x44c   : > { %v3473_v14 = vmax.f32 %v3353_v34, %v3361_v39  ;;  %v11118_v39 = vld [vmem:[#allocation186_spill] sm:$0xff] }
 0x44d   : > { %v3472_v51 = vmax.f32 %v3352_v13, %v3360_v29  ;;  %v2846_v55 = vpop.permute.xlu1 %2845  ;;  %v3356_v9 = vmax.f32 %v11118_v39, %v2994_v45  ;;  %v2995_v13 = vsel %vm2919_vm2, %v9594_v6, %v9656_v53  ;;  %v6815_v6 = vld [vmem:[%s10427_s3 + $0x100] sm:$0xff]  }
 0x44e   : > { %v2997_v42 = vsel %vm2919_vm2, %v9555_v35, %v2846_v55  ;;  %v3363_v58 = vmax.f32 %v11111_v8, %v2846_v55  ;;  %4431 = vmatpush1.bf16.msra.mxu0 %v6812_v63  ;;  %v3581_v5 = vadd.f32 %v8824_v15, %v3473_v14  ;;  %v11114_v35 = vld [vmem:[#allocation187_spill] sm:$0xff]  ;;  %v11119_v63 = vld [vmem:[#allocation194_spill] sm:$0xff] }
 0x44f   : > { %v3362_v30 = vmax.f32 %v11113_v41, %v2997_v42  ;;  %4432 = vmatprep.subr.bf16.mxu0 %v10852_v27  ;;  %v3357_v24 = vmax.f32 %v11114_v35, %v2834_v37  ;;  %v3580_v56 = vadd.f32 %v8902_v59, %v3472_v51  ;;  %v9708_v37 = vpop.permute.xlu0 %2863 }
 0x450   : > { %v3475_v62 = vmax.f32 %v3355_v17, %v3363_v58  ;;  %v3677_v10 = vmax.f32 %v3581_v5, 0.0  ;;  %v11120_v17 = vld [vmem:[#allocation189_spill] sm:$0xff] }
 0x451   : > { %v3474_v47 = vmax.f32 %v3354_v25, %v3362_v30  ;;  %v2850_v16 = vpop.permute.xlu1 %2849  ;;  %4213 = vmatmul.mubr.bf16.gmra.mrb[60].mxu0 %v11115_v36  ;;  %v3676_v55 = vmax.f32 %v3580_v56, 0.0  ;;  %v3359_v42 = vmax.f32 %v11120_v17, %v9656_v53  ;;  %v11121_v58 = vld [vmem:[#allocation197_spill] sm:$0xff]  ;;  %v11122_v25 = vld [vmem:[#allocation188_spill] sm:$0xff]  ;;  %v11125_v56 = vld [vmem:[#allocation39_spill] sm:$0xff] }
 0x452   : > { %v3583_v54 = vadd.f32 %v8824_v15, %v3475_v62  ;;  %v2998_v0 = vsel %vm2919_vm2, %v9602_v44, %v2850_v16  ;;  %v3365_v34 = vmax.f32 %v11116_v33, %v2850_v16  ;;  %6143 = vmatprep.mubr.msk.bf16.mxu0 %vm2919_vm2, %v11117_v40  ;;  %4433 = vmatpush1.bf16.msra.mxu0 %v6813_v38  ;;  %v11123_v30 = vld [vmem:[#allocation196_spill] sm:$0xff] }
 0x453   : > { %v3364_v32 = vmax.f32 %v11119_v63, %v2998_v0  ;;  %4434 = vmatprep.subr.bf16.mxu0 %v10852_v27  ;;  %v3582_v44 = vadd.f32 %v8902_v59, %v3474_v47  ;;  %v3358_v41 = vmax.f32 %v11122_v25, %v2995_v13  ;;  %v9733_v62 = vpop.permute.xlu0 %2867  ;;  %v11124_v47 = vld [vmem:[#allocation35_spill] sm:$0xff]  ;;  %v6817_v63 = vld [vmem:[%s10427_s3 + $0x110] sm:$0xff]  }
 0x454   : > { %v3679_v29 = vmax.f32 %v3583_v54, 0.0  ;;  %v3477_v4 = vmax.f32 %v3357_v24, %v3365_v34  ;;  %v6816_v54 = vld [vmem:[%s10427_s3 + $0x108] sm:$0xff]  }
 0x455   : > { %v3476_v14 = vmax.f32 %v3356_v9, %v3364_v32  ;;  %v2854_v51 = vpop.permute.xlu1 %2853  ;;  %v3678_v28 = vmax.f32 %v3582_v44, 0.0 }
 0x456   : > { %v2999_v8 = vsel %vm2919_vm2, %v9621_v60, %v2854_v51  ;;  %v3367_v38 = vmax.f32 %v11121_v58, %v2854_v51  ;;  %4435 = vmatpush1.bf16.msra.mxu0 %v6814_v48  ;;  %v9725_v61 = vpack.c.bf16 %v3679_v29, %v3677_v10  ;;  %v3585_v53 = vadd.f32 %v8824_v15, %v3477_v4  ;;  %v11126_v29 = vld [vmem:[#allocation42_spill] sm:$0xff]  ;;  %v11127_v4 = vld [vmem:[#allocation49_spill] sm:$0xff] }
 0x457   : > { %v3366_v45 = vmax.f32 %v11123_v30, %v2999_v8  ;;  %4436 = vmatprep.subr.bf16.mxu0 %v10852_v27  ;;  %v9730_v5 = vpack.c.bf16 %v3678_v28, %v3676_v55  ;;  %v3584_v16 = vadd.f32 %v8902_v59, %v3476_v14  ;;  %v2880_v44 = vpop.permute.xlu0 %2879  ;;  %v6818_v14 = vld [vmem:[%s10427_s3 + $0x118] sm:$0xff]   ;;  %v11129_v8 = vld [vmem:[#allocation200_spill] sm:$0xff] }
 0x458   : > { %v3479_v60 = vmax.f32 %v3359_v42, %v3367_v38  ;;  %v3681_v33 = vmax.f32 %v3585_v53, 0.0  ;;  %v11128_v42 = vld [vmem:[#allocation52_spill] sm:$0xff] }
 0x459   : > { %v3478_v35 = vmax.f32 %v3358_v41, %v3366_v45  ;;  %v2858_v24 = vpop.permute.xlu1 %2857  ;;  %4221 = vmatmul.mubr.bf16.gmra.mrb[64].mxu0 %v11124_v47  ;;  %v3680_v39 = vmax.f32 %v3584_v16, 0.0  ;;  %v11131_v41 = vld [vmem:[#allocation59_spill] sm:$0xff] }
 0x45a   : > { %v3587_v36 = vadd.f32 %v8824_v15, %v3479_v60  ;;  %6144 = vmatprep.mubr.msk.bf16.mxu0 %vm2919_vm2, %v11125_v56  ;;  %4437 = vmatpush1.bf16.msra.mxu0 %v6815_v6  ;;  %v3000_v28 = vsel %vm2919_vm2, %v9639_v52, %v2858_v24  ;;  %v3369_v58 = vmax.f32 %v11129_v8, %v2858_v24  ;;  %v11130_v6 = vld [vmem:[#allocation211_spill] sm:$0xff]  ;;  %v11133_v60 = vld [vmem:[#allocation210_spill] sm:$0xff] }
 0x45b   : > { %4438 = vmatprep.subr.bf16.mxu0 %v10852_v27  ;;  %v3586_v0 = vadd.f32 %v8902_v59, %v3478_v35  ;;  %v2884_v51 = vpop.permute.xlu0 %2883  ;;  %v11132_v45 = vld [vmem:[#allocation199_spill] sm:$0xff] }
 0x45c   : > { %v3683_v34 = vmax.f32 %v3587_v36, 0.0  ;;  %v3368_v53 = vmax.f32 %v11132_v45, %v3000_v28 }
 0x45d   : > { %v2862_v48 = vpop.permute.xlu1 %2861  ;;  %v3682_v9 = vmax.f32 %v3586_v0, 0.0 }
 0x45e   : > { %4439 = vmatpush1.bf16.msra.mxu0 %v6816_v54  ;;  %v9748_v32 = vpack.c.bf16 %v3683_v34, %v3681_v33  ;;  %v3001_v52 = vsel %vm2919_vm2, %v9648_v19, %v2862_v48  ;;  %v11134_v54 = vld [vmem:[#allocation203_spill] sm:$0xff]  ;;  %v11135_v33 = vld [vmem:[#allocation213_spill] sm:$0xff] }
 0x45f   : > { %4440 = vmatprep.subr.bf16.mxu0 %v10852_v27  ;;  %v9751_v13 = vpack.c.bf16 %v3682_v9, %v3680_v39  ;;  %v9770_v30 = vpop.permute.xlu0 %2887  ;;  %v3371_v0 = vmax.f32 %v11134_v54, %v2862_v48  ;;  %v11136_v39 = vld [vmem:[#allocation202_spill] sm:$0xff] }
 0x460   : > { %v3370_v9 = vmax.f32 %v11136_v39, %v3001_v52  ;;  %v11141_v52 = vld [vmem:[#allocation70_spill] sm:$0xff] }
 0x461   : > { %v2866_v10 = vpop.permute.xlu1 %2865  ;;  %4229 = vmatmul.mubr.bf16.gmra.mrb[68].mxu0 %v11126_v29 }
 0x462   : > { %6145 = vmatprep.mubr.msk.bf16.mxu0 %vm2919_vm2, %v11127_v4  ;;  %4441 = vmatpush1.bf16.msra.mxu0 %v6817_v63  ;;  %v11137_v63 = vld [vmem:[#allocation212_spill] sm:$0xff]  ;;  %v3002_v28 = vsel %vm2919_vm2, %v9708_v37, %v2866_v10  ;;  %v11142_v37 = vld [vmem:[#allocation205_spill] sm:$0xff] }
 0x463   : > { %4442 = vmatprep.subr.bf16.mxu0 %v10852_v27  ;;  %v2892_v8 = vpop.permute.xlu0 %2891 }
 0x465   : > { %v2870_v55 = vpop.permute.xlu1 %2869 }
 0x466   : > { %4443 = vmatpush1.bf16.msra.mxu0 %v6818_v14 }
 0x467   : > { %4716 = vmatprep.subr.bf16.mxu0 %v10852_v27 }
 0x469   : > { %v2874_v17 = vpop.permute.xlu1 %2873  ;;  %4237 = vmatmul.mubr.bf16.gmra.mrb[72].mxu0 %v11128_v42 }
 0x46a   : > { %v3004_v38 = vsel %vm2919_vm2, %v9661_v57, %v2874_v17  ;;  %v3377_v25 = vmax.f32 %v11130_v6, %v2874_v17  ;;  %6146 = vmatprep.mubr.msk.bf16.mxu0 %vm2919_vm2, %v11131_v41  ;;  %v11138_v6 = vld [vmem:[#allocation63_spill] sm:$0xff] }
 0x46b   : > { %v3376_v35 = vmax.f32 %v11133_v60, %v3004_v38  ;;  %v11140_v60 = vld [vmem:[#allocation216_spill] sm:$0xff] }
 0x46c   : > { %v3481_v16 = vmax.f32 %v3369_v58, %v3377_v25 }
 0x46d   : > { %v3480_v36 = vmax.f32 %v3368_v53, %v3376_v35  ;;  %v2878_v24 = vpop.permute.xlu1 %2877 }
 0x46e   : > { %v3005_v57 = vsel %vm2919_vm2, %v9681_v50, %v2878_v24  ;;  %v3379_v34 = vmax.f32 %v11135_v33, %v2878_v24  ;;  %v3589_v17 = vadd.f32 %v8824_v15, %v3481_v16  ;;  %v11139_v50 = vld [vmem:[#allocation206_spill] sm:$0xff]  ;;  %v3372_v16 = vmax.f32 %v11142_v37, %v3002_v28  ;;  %v11143_v24 = vld [vmem:[#allocation215_spill] sm:$0xff] }
 0x46f   : > { %v3378_v14 = vmax.f32 %v11137_v63, %v3005_v57  ;;  %v3588_v48 = vadd.f32 %v8902_v59, %v3480_v36  ;;  %v3373_v25 = vmax.f32 %v11139_v50, %v2866_v10  ;;  %v3003_v36 = vsel %vm2919_vm2, %v9733_v62, %v2870_v55  ;;  %v11144_v63 = vld [vmem:[#allocation208_spill] sm:$0xff]  ;;  %v11148_v37 = vld [vmem:[#allocation218_spill] sm:$0xff] }
 0x470   : > { %v3483_v19 = vmax.f32 %v3371_v0, %v3379_v34  ;;  %v3685_v57 = vmax.f32 %v3589_v17, 0.0 }
 0x471   : > { %v3482_v58 = vmax.f32 %v3370_v9, %v3378_v14  ;;  %v2882_v38 = vpop.permute.xlu1 %2881  ;;  %4245 = vmatmul.mubr.bf16.gmra.mrb[76].mxu0 %v11138_v6  ;;  %v3375_v14 = vmax.f32 %v11144_v63, %v2870_v55 }
 0x472   : > { %v3591_v45 = vadd.f32 %v8824_v15, %v3483_v19  ;;  %v3006_v53 = vsel %vm2919_vm2, %v2880_v44, %v2882_v38  ;;  %v3381_v35 = vmax.f32 %v11140_v60, %v2882_v38  ;;  %6147 = vmatprep.mubr.msk.bf16.mxu0 %vm2919_vm2, %v11141_v52  ;;  %v3684_v44 = vmax.f32 %v3588_v48, 0.0  ;;  %v11145_v38 = vld [vmem:[#allocation219_spill] sm:$0xff] }
 0x473   : > { %v3380_v54 = vmax.f32 %v11143_v24, %v3006_v53  ;;  %v3590_v0 = vadd.f32 %v8902_v59, %v3482_v58  ;;  %v2904_v53 = vpop.permute.xlu0 %2903  ;;  %v11147_v58 = vld [vmem:[#allocation207_spill] sm:$0xff]  ;;  %v11151_v24 = vld [vmem:[#allocation40_spill] sm:$0xff] }
 0x474   : > { %v3687_v10 = vmax.f32 %v3591_v45, 0.0  ;;  %v3485_v33 = vmax.f32 %v3373_v25, %v3381_v35  ;;  %v3374_v60 = vmax.f32 %v11147_v58, %v3003_v36 }
 0x475   : > { %v3484_v34 = vmax.f32 %v3372_v16, %v3380_v54  ;;  %v2886_v39 = vpop.permute.xlu1 %2885  ;;  %v3686_v9 = vmax.f32 %v3590_v0, 0.0  ;;  %v11150_v16 = vld [vmem:[#allocation73_spill] sm:$0xff] }
 0x476   : > { %v3007_v19 = vsel %vm2919_vm2, %v2884_v51, %v2886_v39  ;;  %v3383_v28 = vmax.f32 %v11145_v38, %v2886_v39  ;;  %v9801_v50 = vpack.c.bf16 %v3687_v10, %v3685_v57  ;;  %v3593_v25 = vadd.f32 %v8824_v15, %v3485_v33 }
 0x477   : > { %v3382_v62 = vmax.f32 %v11148_v37, %v3007_v19  ;;  %v9805_v17 = vpack.c.bf16 %v3686_v9, %v3684_v44  ;;  %v3592_v51 = vadd.f32 %v8902_v59, %v3484_v34  ;;  %v2908_v57 = vpop.permute.xlu0 %2907 }
 0x478   : > { %11146 = vst [vmem:[#allocation80_spill] sm:$0xff] %v9801_v50  ;;  %v3487_v45 = vmax.f32 %v3375_v14, %v3383_v28  ;;  %v3689_v0 = vmax.f32 %v3593_v25, 0.0  ;;  %v11154_v14 = vld [vmem:[#allocation60_spill] sm:$0xff]  ;;  %v11156_v25 = vld [vmem:[#allocation7_spill] sm:$0xff] }
 0x479   : > { %11149 = vst [vmem:[#allocation83_spill] sm:$0xff] %v9805_v17  ;;  %v3486_v48 = vmax.f32 %v3374_v60, %v3382_v62  ;;  %v2890_v35 = vpop.permute.xlu1 %2889  ;;  %4253 = vmatmul.mubr.bf16.gmra.mrb[80].mxu0 %v11150_v16  ;;  %v3688_v39 = vmax.f32 %v3592_v51, 0.0  ;;  %v11155_v60 = vld [vmem:[#allocation221_spill] sm:$0xff]  ;;  %v11162_v17 = vld [vmem:[#allocation228_spill] sm:$0xff] }
 0x47a   : > { %v3595_v55 = vadd.f32 %v8824_v15, %v3487_v45  ;;  %6148 = vmatprep.mubr.msk.bf16.mxu0 %vm2919_vm2, %v11151_v24  ;;  %v3008_v38 = vsel %vm2919_vm2, %v9770_v30, %v2890_v35  ;;  %v3385_v37 = vmax.f32 %v11155_v60, %v2890_v35  ;;  %v11160_v60 = vld [vmem:[#allocation229_spill] sm:$0xff] }
 0x47b   : > { %v3594_v54 = vadd.f32 %v8902_v59, %v3486_v48  ;;  %v2896_v34 = vpop.permute.xlu0 %2895  ;;  %v11157_v48 = vld [vmem:[#allocation220_spill] sm:$0xff] }
 0x47c   : > { %v3691_v36 = vmax.f32 %v3595_v55, 0.0  ;;  %v3384_v51 = vmax.f32 %v11157_v48, %v3008_v38  ;;  %v11158_v55 = vld [vmem:[#allocation6_spill] sm:$0xff] }
 0x47d   : > { %v2894_v10 = vpop.permute.xlu1 %2893  ;;  %v3690_v33 = vmax.f32 %v3594_v54, 0.0 }
 0x47e   : > { %v9814_v44 = vpack.c.bf16 %v3691_v36, %v3689_v0  ;;  %v3009_v0 = vsel %vm2919_vm2, %v2892_v8, %v2894_v10 }
 0x47f   : > { %v9816_v9 = vpack.c.bf16 %v3690_v33, %v3688_v39  ;;  %v2900_v28 = vpop.permute.xlu0 %2899  ;;  %v11159_v33 = vld [vmem:[#allocation223_spill] sm:$0xff] }
 0x480   : > { %11152 = vst [vmem:[#allocation45_spill] sm:$0xff] %v9814_v44 }
 0x481   : > { %11153 = vst [vmem:[#allocation65_spill] sm:$0xff] %v9816_v9  ;;  %v2898_v63 = vpop.permute.xlu1 %2897  ;;  %4261 = vmatmul.mubr.bf16.gmra.mrb[84].mxu0 %v11154_v14  ;;  %v3387_v9 = vmax.f32 %v11159_v33, %v2894_v10 }
 0x482   : > { %6149 = vmatprep.mubr.msk.bf16.mxu0 %vm2919_vm2, %v9367_v18  ;;  %v3010_v38 = vsel %vm2919_vm2, %v2896_v34, %v2898_v63 }
 0x483   : > { %v2912_v44 = vpop.permute.xlu0 %2911 }
 0x485   : > { %v2902_v19 = vpop.permute.xlu1 %2901 }
 0x489   : > { %v2906_v58 = vpop.permute.xlu1 %2905  ;;  %4269 = vmatmul.mubr.bf16.gmra.mrb[88].mxu0 %v9373_v2 }
 0x48a   : > { %v3012_v62 = vsel %vm2919_vm2, %v2904_v53, %v2906_v58  ;;  %v3393_v45 = vmax.f32 %v11156_v25, %v2906_v58  ;;  %6150 = vmatprep.mubr.msk.bf16.mxu0 %vm2919_vm2, %v9386_v3  ;;  %v11161_v58 = vld [vmem:[#allocation222_spill] sm:$0xff] }
 0x48b   : > { %v3392_v54 = vmax.f32 %v11158_v55, %v3012_v62  ;;  %v3386_v25 = vmax.f32 %v11161_v58, %v3009_v0 }
 0x48c   : > { %v3489_v30 = vmax.f32 %v3385_v37, %v3393_v45  ;;  %v11163_v45 = vld [vmem:[#allocation5_spill] sm:$0xff] }
 0x48d   : > { %v3488_v36 = vmax.f32 %v3384_v51, %v3392_v54  ;;  %v2910_v39 = vpop.permute.xlu1 %2909  ;;  %v11164_v54 = vld [vmem:[#allocation9_spill] sm:$0xff] }
 0x48e   : > { %v3013_v35 = vsel %vm2919_vm2, %v2908_v57, %v2910_v39  ;;  %v3395_v53 = vmax.f32 %v11160_v60, %v2910_v39  ;;  %v3597_v62 = vadd.f32 %v8824_v15, %v3489_v30  ;;  %v3389_v57 = vmax.f32 %v11163_v45, %v2898_v63  ;;  %v11168_v45 = vld [vmem:[#allocation231_spill] sm:$0xff] }
 0x48f   : > { %v3394_v50 = vmax.f32 %v11162_v17, %v3013_v35  ;;  %v3596_v10 = vadd.f32 %v8902_v59, %v3488_v36  ;;  %v11165_v17 = vld [vmem:[#allocation4_spill] sm:$0xff]  ;;  %v3011_v39 = vsel %vm2919_vm2, %v2900_v28, %v2902_v19  ;;  %v2916_v35 = vpop.permute.xlu0 %2915 }
 0x490   : > { %v3491_v48 = vmax.f32 %v3387_v9, %v3395_v53  ;;  %v3388_v34 = vmax.f32 %v11165_v17, %v3010_v38  ;;  %v11166_v9 = vld [vmem:[#allocation8_spill] sm:$0xff]  ;;  %v3693_v36 = vmax.f32 %v3597_v62, 0.0  ;;  %v11170_v17 = vld [vmem:[#allocation230_spill] sm:$0xff] }
 0x491   : > { %v3490_v8 = vmax.f32 %v3386_v25, %v3394_v50  ;;  %v2914_v37 = vpop.permute.xlu1 %2913  ;;  %4277 = vmatmul.mubr.bf16.gmra.mrb[92].mxu0 %v9388_v20  ;;  %v11167_v25 = vld [vmem:[#allocation225_spill] sm:$0xff] }
 0x492   : > { %v3599_v51 = vadd.f32 %v8824_v15, %v3491_v48  ;;  %v3014_v55 = vsel %vm2919_vm2, %v2912_v44, %v2914_v37  ;;  %v3397_v0 = vmax.f32 %v11164_v54, %v2914_v37  ;;  %6151 = vmatprep.mubr.msk.bf16.mxu0 %vm2919_vm2, %v9432_v26  ;;  %v3692_v44 = vmax.f32 %v3596_v10, 0.0 }
 0x493   : > { %v3396_v50 = vmax.f32 %v11166_v9, %v3014_v55  ;;  %v3598_v30 = vadd.f32 %v8902_v59, %v3490_v8  ;;  %v3391_v48 = vmax.f32 %v11167_v25, %v2902_v19  ;;  %v11169_v55 = vld [vmem:[#allocation224_spill] sm:$0xff]  ;;  %v6831_v25 = vld [vmem:[%s10427_s3 + $0x180] sm:$0xff]  }
 0x494   : > { %v3695_v33 = vmax.f32 %v3599_v51, 0.0  ;;  %v3493_v63 = vmax.f32 %v3389_v57, %v3397_v0  ;;  %v3390_v8 = vmax.f32 %v11169_v55, %v3011_v39  ;;  %v6840_v55 = vld [vmem:[%s10427_s3 + $0x1c8] sm:$0xff]  }
 0x495   : > { %v3492_v60 = vmax.f32 %v3388_v34, %v3396_v50  ;;  %v2918_v53 = vpop.permute.xlu1 %2917  ;;  %v3694_v58 = vmax.f32 %v3598_v30, 0.0 }
 0x496   : > { %v3015_v37 = vsel %vm2919_vm2, %v2916_v35, %v2918_v53  ;;  %v3399_v38 = vmax.f32 %v11168_v45, %v2918_v53  ;;  %v9854_v54 = vpack.c.bf16 %v3695_v33, %v3693_v36  ;;  %v3601_v57 = vadd.f32 %v8824_v15, %v3493_v63  ;;  %v6825_v63 = vld [vmem:[%s10427_s3 + $0x150] sm:$0xff]   ;;  %v6826_v35 = vld [vmem:[%s10427_s3 + $0x158] sm:$0xff]   ;;  %v6828_v53 = vld [vmem:[%s10427_s3 + $0x168] sm:$0xff]  }
 0x497   : > { %v3398_v28 = vmax.f32 %v11170_v17, %v3015_v37  ;;  %v9858_v62 = vpack.c.bf16 %v3694_v58, %v3692_v44  ;;  %v3600_v19 = vadd.f32 %v8902_v59, %v3492_v60  ;;  %v6827_v60 = vld [vmem:[%s10427_s3 + $0x160] sm:$0xff]   ;;  %v6829_v44 = vld [vmem:[%s10427_s3 + $0x170] sm:$0xff]   ;;  %v6830_v58 = vld [vmem:[%s10427_s3 + $0x178] sm:$0xff]  }
 0x498   : > { %v3495_v51 = vmax.f32 %v3391_v48, %v3399_v38  ;;  %v3697_v9 = vmax.f32 %v3601_v57, 0.0  ;;  %v6832_v48 = vld [vmem:[%s10427_s3 + $0x188] sm:$0xff]   ;;  %v6837_v37 = vld [vmem:[%s10427_s3 + $0x1b0] sm:$0xff]   ;;  %v6838_v45 = vld [vmem:[%s10427_s3 + $0x1b8] sm:$0xff]  }
 0x499   : > { %v3494_v0 = vmax.f32 %v3390_v8, %v3398_v28  ;;  %4285 = vmatmul.mubr.bf16.gmra.mrb[96].mxu0 %v9438_v46  ;;  %v3696_v30 = vmax.f32 %v3600_v19, 0.0  ;;  %v6839_v38 = vld [vmem:[%s10427_s3 + $0x1c0] sm:$0xff]   ;;  %v6841_v8 = vld [vmem:[%s10427_s3 + $0x1d0] sm:$0xff]   ;;  %v6842_v17 = vld [vmem:[%s10427_s3 + $0x1d8] sm:$0xff]  }
 0x49a   : > { %v3603_v10 = vadd.f32 %v8824_v15, %v3495_v51  ;;  %6152 = vmatprep.mubr.msk.bf16.mxu0 %vm2919_vm2, %v9451_v7  ;;  %v6819_v15 = vld [vmem:[%s10427_s3 + $0x120] sm:$0xff]   ;;  %v11173_v57 = vld [vmem:[#allocation45_spill] sm:$0xff] }
 0x49b   : > { %v3602_v34 = vadd.f32 %v8902_v59, %v3494_v0  ;;  %v6820_v59 = vld [vmem:[%s10427_s3 + $0x128] sm:$0xff]   ;;  %v11172_v28 = vld [vmem:[#allocation83_spill] sm:$0xff]  ;;  %v11174_v51 = vld [vmem:[#allocation65_spill] sm:$0xff] }
 0x49c   : > { %v3699_v50 = vmax.f32 %v3603_v10, 0.0  ;;  %v6843_v0 = vld [vmem:[%s10429_s5 + $0x40] sm:$0xff]  }
 0x49d   : > { %v3698_v39 = vmax.f32 %v3602_v34, 0.0  ;;  %v6844_v19 = vld [vmem:[%s10429_s5] sm:$0xff]   ;;  %6349 = vmatprep.subr.bf16.mxu1 %v6843_v0 }
 0x49e   : > { %v9867_v36 = vpack.c.bf16 %v3699_v50, %v3697_v9  ;;  %6350 = vmatpush3.bf16.msra.mxu1 %v6844_v19 }
 0x49f   : > { %v9869_v33 = vpack.c.bf16 %v3698_v39, %v3696_v30  ;;  %v6851_v30 = vld [vmem:[%s10429_s5 + $0x60] sm:$0xff]  }
 0x4a0   : > { %v6852_v39 = vld [vmem:[%s10429_s5 + $0x20] sm:$0xff]  }
 0x4a1   : > { %4293 = vmatmul.mubr.bf16.gmra.mrb[100].mxu0 %v9453_v22 }
 0x4a2   : > { %6153 = vmatprep.mubr.msk.bf16.mxu0 %vm2919_vm2, %v9509_v23 }
 0x4a9   : > { %4301 = vmatmul.mubr.bf16.gmra.mrb[104].mxu0 %v9515_v12 }
 0x4aa   : > { %6154 = vmatprep.mubr.msk.bf16.mxu0 %vm2919_vm2, %v9530_v43 }
 0x4b1   : > { %4309 = vmatmul.mubr.bf16.gmra.mrb[108].mxu0 %v9532_v11 }
 0x4b2   : > { %6191 = vmatprep.mubr.msk.bf16.mxu0 %vm2919_vm2, %v11117_v40  ;;  %v6821_v40 = vld [vmem:[%s10427_s3 + $0x130] sm:$0xff]  }
 0x4b9   : > { %4453 = vmatmul.mubr.bf16.vlgmr.msra.gmra.mrb[48].mxu0 %v11124_v47  ;;  %v6822_v47 = vld [vmem:[%s10427_s3 + $0x138] sm:$0xff]  }
 0x4ba   : > { %6192 = vmatprep.mubr.msk.bf16.mxu0 %vm2919_vm2, %v11125_v56  ;;  %4717 = vmatpush1.bf16.msra.mxu0 %v6819_v15  ;;  %v6823_v56 = vld [vmem:[%s10427_s3 + $0x140] sm:$0xff]  }
 0x4bb   : > { %4718 = vmatprep.subr.bf16.mxu0 %v10852_v27 }
 0x4be   : > { %4719 = vmatpush1.bf16.msra.mxu0 %v6820_v59 }
 0x4bf   : > { %4720 = vmatprep.subr.bf16.mxu0 %v10852_v27 }
 0x4c1   : > { %4461 = vmatmul.mubr.bf16.gmra.mrb[52].mxu0 %v11126_v29  ;;  %v6824_v29 = vld [vmem:[%s10427_s3 + $0x148] sm:$0xff]  }
 0x4c2   : > { %6193 = vmatprep.mubr.msk.bf16.mxu0 %vm2919_vm2, %v11127_v4  ;;  %4721 = vmatpush1.bf16.msra.mxu0 %v6821_v40 }
 0x4c3   : > { %4722 = vmatprep.subr.bf16.mxu0 %v10852_v27 }
 0x4c6   : > { %4723 = vmatpush1.bf16.msra.mxu0 %v6822_v47 }
 0x4c7   : > { %4724 = vmatprep.subr.bf16.mxu0 %v10852_v27 }
 0x4c9   : > { %4469 = vmatmul.mubr.bf16.gmra.mrb[56].mxu0 %v11128_v42 }
 0x4ca   : > { %6194 = vmatprep.mubr.msk.bf16.mxu0 %vm2919_vm2, %v11131_v41  ;;  %4725 = vmatpush1.bf16.msra.mxu0 %v6823_v56 }
 0x4cb   : > { %4726 = vmatprep.subr.bf16.mxu0 %v10852_v27 }
 0x4ce   : > { %4727 = vmatpush1.bf16.msra.mxu0 %v6824_v29 }
 0x4cf   : > { %4728 = vmatprep.subr.bf16.mxu0 %v10852_v27 }
 0x4d1   : > { %4477 = vmatmul.mubr.bf16.gmra.mrb[60].mxu0 %v11138_v6 }
 0x4d2   : > { %6195 = vmatprep.mubr.msk.bf16.mxu0 %vm2919_vm2, %v11141_v52  ;;  %4729 = vmatpush1.bf16.msra.mxu0 %v6825_v63 }
 0x4d3   : > { %4730 = vmatprep.subr.bf16.mxu0 %v10852_v27 }
 0x4d6   : > { %4731 = vmatpush1.bf16.msra.mxu0 %v6826_v35 }
 0x4d7   : > { %4732 = vmatprep.subr.bf16.mxu0 %v10852_v27 }
 0x4d9   : > { %4485 = vmatmul.mubr.bf16.gmra.mrb[64].mxu0 %v11150_v16 }
 0x4da   : > { %6196 = vmatprep.mubr.msk.bf16.mxu0 %vm2919_vm2, %v11151_v24  ;;  %4733 = vmatpush1.bf16.msra.mxu0 %v6827_v60 }
 0x4db   : > { %4734 = vmatprep.subr.bf16.mxu0 %v10852_v27 }
 0x4de   : > { %4735 = vmatpush1.bf16.msra.mxu0 %v6828_v53 }
 0x4df   : > { %4736 = vmatprep.subr.bf16.mxu0 %v10852_v27 }
 0x4e1   : > { %4493 = vmatmul.mubr.bf16.gmra.mrb[68].mxu0 %v11154_v14 }
 0x4e2   : > { %6197 = vmatprep.mubr.msk.bf16.mxu0 %vm2919_vm2, %v9367_v18  ;;  %4737 = vmatpush1.bf16.msra.mxu0 %v6829_v44 }
 0x4e3   : > { %4738 = vmatprep.subr.bf16.mxu0 %v10852_v27 }
 0x4e6   : > { %4739 = vmatpush1.bf16.msra.mxu0 %v6830_v58 }
 0x4e7   : > { %5012 = vmatprep.subr.bf16.mxu0 %v10852_v27 }
 0x4e9   : > { %4501 = vmatmul.mubr.bf16.gmra.mrb[72].mxu0 %v9373_v2 }
 0x4ea   : > { %6198 = vmatprep.mubr.msk.bf16.mxu0 %vm2919_vm2, %v9386_v3 }
 0x4f1   : > { %4509 = vmatmul.mubr.bf16.gmra.mrb[76].mxu0 %v9388_v20 }
 0x4f2   : > { %6199 = vmatprep.mubr.msk.bf16.mxu0 %vm2919_vm2, %v9432_v26 }
 0x4f9   : > { %4517 = vmatmul.mubr.bf16.gmra.mrb[80].mxu0 %v9438_v46 }
 0x4fa   : > { %6200 = vmatprep.mubr.msk.bf16.mxu0 %vm2919_vm2, %v9451_v7 }
 0x501   : > { %4525 = vmatmul.mubr.bf16.gmra.mrb[84].mxu0 %v9453_v22 }
 0x502   : > { %6201 = vmatprep.mubr.msk.bf16.mxu0 %vm2919_vm2, %v9509_v23 }
 0x509   : > { %4533 = vmatmul.mubr.bf16.gmra.mrb[88].mxu0 %v9515_v12 }
 0x50a   : > { %6202 = vmatprep.mubr.msk.bf16.mxu0 %vm2919_vm2, %v9530_v43 }
 0x511   : > { %4541 = vmatmul.mubr.bf16.gmra.mrb[92].mxu0 %v9532_v11 }
 0x512   : > { %6203 = vmatprep.mubr.msk.bf16.mxu0 %vm2919_vm2, %v9585_v1 }
 0x519   : > { %4549 = vmatmul.mubr.bf16.gmra.mrb[96].mxu0 %v9589_v21 }
 0x51a   : > { %6204 = vmatprep.mubr.msk.bf16.mxu0 %vm2919_vm2, %v9600_v49 }
 0x521   : > { %4557 = vmatmul.mubr.bf16.gmra.mrb[100].mxu0 %v9604_v31 }
 0x522   : > { %6205 = vmatprep.mubr.msk.bf16.mxu0 %vm2919_vm2, %v9725_v61 }
 0x529   : > { %4565 = vmatmul.mubr.bf16.gmra.mrb[104].mxu0 %v9730_v5 }
 0x52a   : > { %6206 = vmatprep.mubr.msk.bf16.mxu0 %vm2919_vm2, %v9748_v32 }
 0x531   : > { %4573 = vmatmul.mubr.bf16.gmra.mrb[108].mxu0 %v9751_v13 }
 0x532   : > { %6243 = vmatprep.mubr.msk.bf16.mxu0 %vm2919_vm2, %v11127_v4  ;;  %v6833_v4 = vld [vmem:[%s10427_s3 + $0x190] sm:$0xff]  }
 0x539   : > { %4749 = vmatmul.mubr.bf16.vlgmr.msra.gmra.mrb[48].mxu0 %v11128_v42  ;;  %v6834_v42 = vld [vmem:[%s10427_s3 + $0x198] sm:$0xff]  }
 0x53a   : > { %6244 = vmatprep.mubr.msk.bf16.mxu0 %vm2919_vm2, %v11131_v41  ;;  %5013 = vmatpush1.bf16.msra.mxu0 %v6831_v25  ;;  %v6835_v41 = vld [vmem:[%s10427_s3 + $0x1a0] sm:$0xff]  }
 0x53b   : > { %5014 = vmatprep.subr.bf16.mxu0 %v10852_v27 }
 0x53e   : > { %5015 = vmatpush1.bf16.msra.mxu0 %v6832_v48 }
 0x53f   : > { %5016 = vmatprep.subr.bf16.mxu0 %v10852_v27 }
 0x541   : > { %4757 = vmatmul.mubr.bf16.gmra.mrb[52].mxu0 %v11138_v6  ;;  %v6836_v6 = vld [vmem:[%s10427_s3 + $0x1a8] sm:$0xff]  }
 0x542   : > { %6245 = vmatprep.mubr.msk.bf16.mxu0 %vm2919_vm2, %v11141_v52  ;;  %5017 = vmatpush1.bf16.msra.mxu0 %v6833_v4 }
 0x543   : > { %5018 = vmatprep.subr.bf16.mxu0 %v10852_v27 }
 0x546   : > { %5019 = vmatpush1.bf16.msra.mxu0 %v6834_v42 }
 0x547   : > { %5020 = vmatprep.subr.bf16.mxu0 %v10852_v27 }
 0x549   : > { %4765 = vmatmul.mubr.bf16.gmra.mrb[56].mxu0 %v11150_v16 }
 0x54a   : > { %6246 = vmatprep.mubr.msk.bf16.mxu0 %vm2919_vm2, %v11151_v24  ;;  %5021 = vmatpush1.bf16.msra.mxu0 %v6835_v41 }
 0x54b   : > { %5022 = vmatprep.subr.bf16.mxu0 %v10852_v27 }
 0x54e   : > { %5023 = vmatpush1.bf16.msra.mxu0 %v6836_v6 }
 0x54f   : > { %5024 = vmatprep.subr.bf16.mxu0 %v10852_v27 }
 0x551   : > { %4773 = vmatmul.mubr.bf16.gmra.mrb[60].mxu0 %v11154_v14 }
 0x552   : > { %6247 = vmatprep.mubr.msk.bf16.mxu0 %vm2919_vm2, %v9367_v18  ;;  %5025 = vmatpush1.bf16.msra.mxu0 %v6837_v37 }
 0x553   : > { %5026 = vmatprep.subr.bf16.mxu0 %v10852_v27 }
 0x556   : > { %5027 = vmatpush1.bf16.msra.mxu0 %v6838_v45 }
 0x557   : > { %5028 = vmatprep.subr.bf16.mxu0 %v10852_v27 }
 0x559   : > { %4781 = vmatmul.mubr.bf16.gmra.mrb[64].mxu0 %v9373_v2 }
 0x55a   : > { %6248 = vmatprep.mubr.msk.bf16.mxu0 %vm2919_vm2, %v9386_v3  ;;  %5029 = vmatpush1.bf16.msra.mxu0 %v6839_v38 }
 0x55b   : > { %5030 = vmatprep.subr.bf16.mxu0 %v10852_v27 }
 0x55e   : > { %5031 = vmatpush1.bf16.msra.mxu0 %v6840_v55 }
 0x55f   : > { %5032 = vmatprep.subr.bf16.mxu0 %v10852_v27 }
 0x561   : > { %4789 = vmatmul.mubr.bf16.gmra.mrb[68].mxu0 %v9388_v20 }
 0x562   : > { %6249 = vmatprep.mubr.msk.bf16.mxu0 %vm2919_vm2, %v9432_v26  ;;  %5033 = vmatpush1.bf16.msra.mxu0 %v6841_v8  ;;  %v6853_v8 = vld [vmem:[%s10429_s5 + $0x68] sm:$0xff]  }
 0x563   : > { %5034 = vmatprep.subr.bf16.mxu0 %v10852_v27  ;;  %v11171_v27 = vld [vmem:[#allocation80_spill] sm:$0xff] }
 0x566   : > { %5035 = vmatpush1.bf16.msra.mxu0 %v6842_v17  ;;  %v6854_v17 = vld [vmem:[%s10429_s5 + $0x28] sm:$0xff]  }
 0x569   : > { %4797 = vmatmul.mubr.bf16.gmra.mrb[72].mxu0 %v9438_v46 }
 0x56a   : > { %6250 = vmatprep.mubr.msk.bf16.mxu0 %vm2919_vm2, %v9451_v7 }
 0x571   : > { %4805 = vmatmul.mubr.bf16.gmra.mrb[76].mxu0 %v9453_v22 }
 0x572   : > { %6251 = vmatprep.mubr.msk.bf16.mxu0 %vm2919_vm2, %v9509_v23 }
 0x579   : > { %4813 = vmatmul.mubr.bf16.gmra.mrb[80].mxu0 %v9515_v12 }
 0x57a   : > { %6252 = vmatprep.mubr.msk.bf16.mxu0 %vm2919_vm2, %v9530_v43 }
 0x581   : > { %4821 = vmatmul.mubr.bf16.gmra.mrb[84].mxu0 %v9532_v11 }
 0x582   : > { %6253 = vmatprep.mubr.msk.bf16.mxu0 %vm2919_vm2, %v9585_v1 }
 0x589   : > { %4829 = vmatmul.mubr.bf16.gmra.mrb[88].mxu0 %v9589_v21 }
 0x58a   : > { %6254 = vmatprep.mubr.msk.bf16.mxu0 %vm2919_vm2, %v9600_v49 }
 0x591   : > { %4837 = vmatmul.mubr.bf16.gmra.mrb[92].mxu0 %v9604_v31 }
 0x592   : > { %6255 = vmatprep.mubr.msk.bf16.mxu0 %vm2919_vm2, %v9725_v61 }
 0x599   : > { %4845 = vmatmul.mubr.bf16.gmra.mrb[96].mxu0 %v9730_v5 }
 0x59a   : > { %6256 = vmatprep.mubr.msk.bf16.mxu0 %vm2919_vm2, %v9748_v32 }
 0x5a1   : > { %4853 = vmatmul.mubr.bf16.gmra.mrb[100].mxu0 %v9751_v13 }
 0x5a2   : > { %6257 = vmatprep.mubr.msk.bf16.mxu0 %vm2919_vm2, %v11171_v27 }
 0x5a9   : > { %4861 = vmatmul.mubr.bf16.gmra.mrb[104].mxu0 %v11172_v28 }
 0x5aa   : > { %6258 = vmatprep.mubr.msk.bf16.mxu0 %vm2919_vm2, %v11173_v57 }
 0x5b1   : > { %4869 = vmatmul.mubr.bf16.gmra.mrb[108].mxu0 %v11174_v51 }
 0x5b2   : > { %6295 = vmatprep.mubr.msk.bf16.mxu0 %vm2919_vm2, %v11141_v52 }
 0x5b9   : > { %5045 = vmatmul.mubr.bf16.vlgmr.msra.gmra.mrb[48].mxu0 %v11150_v16 }
 0x5ba   : > { %6296 = vmatprep.mubr.msk.bf16.mxu0 %vm2919_vm2, %v11151_v24 }
 0x5c1   : > { %5053 = vmatmul.mubr.bf16.gmra.mrb[52].mxu0 %v11154_v14 }
 0x5c2   : > { %6297 = vmatprep.mubr.msk.bf16.mxu0 %vm2919_vm2, %v9367_v18  ;;  %v6845_v18 = vld [vmem:[%s10429_s5 + $0x48] sm:$0xff]  }
 0x5c3   : > { %6351 = vmatprep.subr.bf16.mxu1 %v6845_v18 }
 0x5c9   : > { %5061 = vmatmul.mubr.bf16.gmra.mrb[56].mxu0 %v9373_v2  ;;  %v6846_v2 = vld [vmem:[%s10429_s5 + $0x8] sm:$0xff]  }
 0x5ca   : > { %6298 = vmatprep.mubr.msk.bf16.mxu0 %vm2919_vm2, %v9386_v3  ;;  %6352 = vmatpush3.bf16.msra.mxu1 %v6846_v2  ;;  %v6847_v3 = vld [vmem:[%s10429_s5 + $0x50] sm:$0xff]  }
 0x5cb   : > { %6353 = vmatprep.subr.bf16.mxu1 %v6847_v3 }
 0x5d1   : > { %5069 = vmatmul.mubr.bf16.gmra.mrb[60].mxu0 %v9388_v20  ;;  %v6848_v20 = vld [vmem:[%s10429_s5 + $0x10] sm:$0xff]  }
 0x5d2   : > { %6299 = vmatprep.mubr.msk.bf16.mxu0 %vm2919_vm2, %v9432_v26  ;;  %6354 = vmatpush3.bf16.msra.mxu1 %v6848_v20  ;;  %v6849_v26 = vld [vmem:[%s10429_s5 + $0x58] sm:$0xff]  }
 0x5d3   : > { %6355 = vmatprep.subr.bf16.mxu1 %v6849_v26 }
 0x5d9   : > { %5077 = vmatmul.mubr.bf16.gmra.mrb[64].mxu0 %v9438_v46  ;;  %v6850_v46 = vld [vmem:[%s10429_s5 + $0x18] sm:$0xff]  }
 0x5da   : > { %6300 = vmatprep.mubr.msk.bf16.mxu0 %vm2919_vm2, %v9451_v7  ;;  %6356 = vmatpush3.bf16.msra.mxu1 %v6850_v46 }
 0x5db   : > { %6357 = vmatprep.subr.bf16.mxu1 %v6851_v30 }
 0x5de   : > { %6358 = vmatpush3.bf16.msra.mxu1 %v6852_v39 }
 0x5df   : > { %6359 = vmatprep.subr.bf16.mxu1 %v6853_v8 }
 0x5e1   : > { %5085 = vmatmul.mubr.bf16.gmra.mrb[68].mxu0 %v9453_v22 }
 0x5e2   : > { %6301 = vmatprep.mubr.msk.bf16.mxu0 %vm2919_vm2, %v9509_v23  ;;  %6360 = vmatpush3.bf16.msra.mxu1 %v6854_v17 }
 0x5e9   : > { %5093 = vmatmul.mubr.bf16.gmra.mrb[72].mxu0 %v9515_v12 }
 0x5ea   : > { %6302 = vmatprep.mubr.msk.bf16.mxu0 %vm2919_vm2, %v9530_v43 }
 0x5f1   : > { %5101 = vmatmul.mubr.bf16.gmra.mrb[76].mxu0 %v9532_v11 }
 0x5f2   : > { %6303 = vmatprep.mubr.msk.bf16.mxu0 %vm2919_vm2, %v9585_v1 }
 0x5f9   : > { %5109 = vmatmul.mubr.bf16.gmra.mrb[80].mxu0 %v9589_v21 }
 0x5fa   : > { %6304 = vmatprep.mubr.msk.bf16.mxu0 %vm2919_vm2, %v9600_v49 }
 0x601   : > { %5117 = vmatmul.mubr.bf16.gmra.mrb[84].mxu0 %v9604_v31 }
 0x602   : > { %6305 = vmatprep.mubr.msk.bf16.mxu0 %vm2919_vm2, %v9725_v61 }
 0x609   : > { %5125 = vmatmul.mubr.bf16.gmra.mrb[88].mxu0 %v9730_v5 }
 0x60a   : > { %6306 = vmatprep.mubr.msk.bf16.mxu0 %vm2919_vm2, %v9748_v32 }
 0x611   : > { %5133 = vmatmul.mubr.bf16.gmra.mrb[92].mxu0 %v9751_v13 }
 0x612   : > { %6307 = vmatprep.mubr.msk.bf16.mxu0 %vm2919_vm2, %v11171_v27 }
 0x619   : > { %5141 = vmatmul.mubr.bf16.gmra.mrb[96].mxu0 %v11172_v28 }
 0x61a   : > { %6308 = vmatprep.mubr.msk.bf16.mxu0 %vm2919_vm2, %v11173_v57 }
 0x621   : > { %5149 = vmatmul.mubr.bf16.gmra.mrb[100].mxu0 %v11174_v51 }
 0x622   : > { %6309 = vmatprep.mubr.msk.bf16.mxu0 %vm2919_vm2, %v9854_v54 }
 0x629   : > { %5157 = vmatmul.mubr.bf16.gmra.mrb[104].mxu0 %v9858_v62 }
 0x62a   : > { %6310 = vmatprep.mubr.msk.bf16.mxu0 %vm2919_vm2, %v9867_v36 }
 0x631   : > { %5165 = vmatmul.mubr.bf16.gmra.mrb[108].mxu0 %v9869_v33 }
 0x68c   : > { %v10141_v7 = vpop.f32.mrb[48].mxu0 }
 0x68d   : > { %v5048_v22 = vpop.f32.mrb[49].mxu0 }
 0x68e   : > { %v10143_v23 = vpop.f32.mrb[50].mxu0 }
 0x68f   : > { %v5051_v12 = vpop.f32.mrb[51].mxu0 }
 0x694   : > { %v10145_v43 = vpop.f32.mrb[52].mxu0 }
 0x695   : > { %v5056_v11 = vpop.f32.mrb[53].mxu0 }
 0x696   : > { %v10147_v1 = vpop.f32.mrb[54].mxu0 }
 0x697   : > { %v5059_v21 = vpop.f32.mrb[55].mxu0 }
 0x69c   : > { %v10149_v49 = vpop.f32.mrb[56].mxu0 }
 0x69d   : > { %v5064_v31 = vpop.f32.mrb[57].mxu0 }
 0x69e   : > { %v10151_v61 = vpop.f32.mrb[58].mxu0  ;;  %v6855_v31 = vld [vmem:[%s10429_s5 + $0x70] sm:$0xff]  }
 0x69f   : > { %v5067_v5 = vpop.f32.mrb[59].mxu0  ;;  %6361 = vmatprep.subr.bf16.mxu1 %v6855_v31 }
 0x6a0   : > { %v6856_v5 = vld [vmem:[%s10429_s5 + $0x30] sm:$0xff]  }
 0x6a1   : > { %6362 = vmatpush3.bf16.msra.mxu1 %v6856_v5 }
 0x6a4   : > { %v10153_v32 = vpop.f32.mrb[60].mxu0 }
 0x6a5   : > { %v5072_v13 = vpop.f32.mrb[61].mxu0 }
 0x6a6   : > { %v10155_v52 = vpop.f32.mrb[62].mxu0 }
 0x6a7   : > { %v5075_v16 = vpop.f32.mrb[63].mxu0 }
 0x6ac   : > { %v10157_v24 = vpop.f32.mrb[64].mxu0 }
 0x6ad   : > { %5253 = vrot.lane.b32.xlu0 %v10157_v24, %s6896_s16  ;;  %v5080_v14 = vpop.f32.mrb[65].mxu0 }
 0x6ae   : > { %v10161_v54 = vpop.f32.mrb[66].mxu0 }
 0x6af   : > { %5255 = vrot.lane.b32.xlu1 %v10161_v54, %s6896_s16  ;;  %v5083_v62 = vpop.f32.mrb[67].mxu0 }
 0x6b4   : > { %v10165_v10 = vpop.f32.mrb[68].mxu0 }
 0x6b5   : > { %v5088_v34 = vpop.f32.mrb[69].mxu0 }
 0x6b6   : > { %v10167_v9 = vpop.f32.mrb[70].mxu0 }
 0x6b7   : > { %v5091_v50 = vpop.f32.mrb[71].mxu0 }
 0x6b8   : > { %v10290_v50 = vld [vmem:[%s10428_s4] ss:$0 sm:$0xff] }
 0x6bc   : > { %v10175_v36 = vpop.f32.mrb[72].mxu0 }
 0x6bd   : > { %5261 = vrot.lane.b32.xlu0 %v10175_v36, %s6896_s16  ;;  %v5096_v33 = vpop.f32.mrb[73].mxu0 }
 0x6be   : > { %v10179_v15 = vpop.f32.mrb[74].mxu0 }
 0x6bf   : > { %5263 = vrot.lane.b32.xlu1 %v10179_v15, %s6896_s16  ;;  %v5099_v59 = vpop.f32.mrb[75].mxu0 }
 0x6c4   : > { %v10183_v40 = vpop.f32.mrb[76].mxu0 }
 0x6c5   : > { %v5104_v47 = vpop.f32.mrb[77].mxu0 }
 0x6c6   : > { %v10185_v56 = vpop.f32.mrb[78].mxu0  ;;  %v6857_v47 = vld [vmem:[%s10429_s5 + $0x78] sm:$0xff]  }
 0x6c7   : > { %v5107_v29 = vpop.f32.mrb[79].mxu0  ;;  %6363 = vmatprep.subr.bf16.mxu1 %v6857_v47 }
 0x6cc   : > { %v10187_v63 = vpop.f32.mrb[80].mxu0 }
 0x6cd   : > { %v5112_v35 = vpop.f32.mrb[81].mxu0 }
 0x6ce   : > { %v10189_v60 = vpop.f32.mrb[82].mxu0 }
 0x6cf   : > { %v5115_v53 = vpop.f32.mrb[83].mxu0 }
 0x6d4   : > { %v10191_v44 = vpop.f32.mrb[84].mxu0 }
 0x6d5   : > { %v5120_v58 = vpop.f32.mrb[85].mxu0 }
 0x6d6   : > { %v10193_v25 = vpop.f32.mrb[86].mxu0 }
 0x6d7   : > { %v5123_v48 = vpop.f32.mrb[87].mxu0 }
 0x6dc   : > { %v10195_v4 = vpop.f32.mrb[88].mxu0 }
 0x6dd   : > { %v5128_v42 = vpop.f32.mrb[89].mxu0 }
 0x6de   : > { %v10197_v41 = vpop.f32.mrb[90].mxu0 }
 0x6df   : > { %v5131_v6 = vpop.f32.mrb[91].mxu0 }
 0x6e4   : > { %v10199_v37 = vpop.f32.mrb[92].mxu0 }
 0x6e5   : > { %v5136_v45 = vpop.f32.mrb[93].mxu0 }
 0x6e6   : > { %v10201_v38 = vpop.f32.mrb[94].mxu0 }
 0x6e7   : > { %v5139_v55 = vpop.f32.mrb[95].mxu0 }
 0x6ec   : > { %v10209_v27 = vpop.f32.mrb[96].mxu0 }
 0x6ed   : > { %5285 = vrot.lane.b32.xlu0 %v10209_v27, %s6896_s16  ;;  %v5144_v28 = vpop.f32.mrb[97].mxu0 }
 0x6ee   : > { %v10213_v57 = vpop.f32.mrb[98].mxu0 }
 0x6ef   : > { %5287 = vrot.lane.b32.xlu1 %v10213_v57, %s6896_s16  ;;  %v5147_v51 = vpop.f32.mrb[99].mxu0 }
 0x6f4   : > { %v10217_v0 = vpop.f32.mrb[100].mxu0 }
 0x6f5   : > { %5289 = vrot.lane.b32.xlu0 %v10217_v0, %s6896_s16  ;;  %v5152_v19 = vpop.f32.mrb[101].mxu0 }
 0x6f6   : > { %v10221_v18 = vpop.f32.mrb[102].mxu0 }
 0x6f7   : > { %5291 = vrot.lane.b32.xlu1 %v10221_v18, %s6896_s16  ;;  %v5155_v2 = vpop.f32.mrb[103].mxu0 }
 0x6fc   : > { %v10225_v3 = vpop.f32.mrb[104].mxu0 }
 0x6fd   : > { %5293 = vrot.lane.b32.xlu0 %v10225_v3, %s6896_s16  ;;  %v5160_v20 = vpop.f32.mrb[105].mxu0 }
 0x6fe   : > { %v10229_v26 = vpop.f32.mrb[106].mxu0 }
 0x6ff   : > { %5295 = vrot.lane.b32.xlu1 %v10229_v26, %s6896_s16  ;;  %v5163_v46 = vpop.f32.mrb[107].mxu0 }
 0x701   : > { %5257 = vrot.lane.b32.xlu0 %v10165_v10, %s6896_s16 }
 0x703   : > { %5259 = vrot.lane.b32.xlu1 %v10167_v9, %s6896_s16 }
 0x704   : > { %v10237_v22 = vpop.f32.mrb[108].mxu0 }
 0x705   : > { %5297 = vrot.lane.b32.xlu0 %v10237_v22, %s6896_s16  ;;  %v5168_v12 = vpop.f32.mrb[109].mxu0 }
 0x706   : > { %v10241_v11 = vpop.f32.mrb[110].mxu0 }
 0x707   : > { %5299 = vrot.lane.b32.xlu1 %v10241_v11, %s6896_s16  ;;  %v5171_v21 = vpop.f32.mrb[111].mxu0 }
 0x709   : > { %5265 = vrot.lane.b32.xlu0 %v10183_v40, %s6896_s16 }
 0x70b   : > { %5267 = vrot.lane.b32.xlu1 %v10185_v56, %s6896_s16 }
 0x70d   : > { %5269 = vrot.lane.b32.xlu0 %v10187_v63, %s6896_s16 }
 0x70f   : > { %5271 = vrot.lane.b32.xlu1 %v10189_v60, %s6896_s16 }
 0x711   : > { %5277 = vrot.lane.b32.xlu0 %v10195_v4, %s6896_s16 }
 0x713   : > { %5279 = vrot.lane.b32.xlu1 %v10197_v41, %s6896_s16 }
 0x715   : > { %5237 = vrot.lane.b32.xlu0 %v10141_v7, %s6896_s16 }
 0x717   : > { %5239 = vrot.lane.b32.xlu1 %v10143_v23, %s6896_s16 }
 0x719   : > { %5245 = vrot.lane.b32.xlu0 %v10149_v49, %s6896_s16 }
 0x71b   : > { %5247 = vrot.lane.b32.xlu1 %v10151_v61, %s6896_s16 }
 0x71d   : > { %5273 = vrot.lane.b32.xlu0 %v10191_v44, %s6896_s16 }
 0x71f   : > { %5275 = vrot.lane.b32.xlu1 %v10193_v25, %s6896_s16  ;;  %v5254_v13 = vpop.permute.xlu0 %5253 }
 0x720   : > { %v5341_v62 = vmax.f32 %v10157_v24, %v5254_v13  ;;  %v6858_v24 = vld [vmem:[%s10429_s5 + $0x38] sm:$0xff]  }
 0x721   : > { %5281 = vrot.lane.b32.xlu0 %v10199_v37, %s6896_s16  ;;  %v5256_v16 = vpop.permute.xlu1 %5255  ;;  %6364 = vmatpush3.bf16.msra.mxu1 %v6858_v24 }
 0x722   : > { %v5342_v39 = vmax.f32 %v10161_v54, %v5256_v16 }
 0x723   : > { %5283 = vrot.lane.b32.xlu1 %v10201_v38, %s6896_s16 }
 0x725   : > { %5243 = vrot.lane.b32.xlu0 %v10147_v1, %s6896_s16 }
 0x727   : > { %5241 = vrot.lane.b32.xlu1 %v10145_v43, %s6896_s16 }
 0x72b   : > { %5249 = vrot.lane.b32.xlu1 %v10153_v32, %s6896_s16 }
 0x72f   : > { %v5262_v14 = vpop.permute.xlu0 %5261 }
 0x730   : > { %v5345_v34 = vmax.f32 %v10175_v36, %v5262_v14 }
 0x731   : > { %v5264_v30 = vpop.permute.xlu1 %5263 }
 0x732   : > { %v5369_v33 = vmax.f32 %v5341_v62, %v5345_v34  ;;  %v5346_v59 = vmax.f32 %v10179_v15, %v5264_v30 }
 0x734   : > { %v5392_v36 = vadd.f32 %v10290_v50, %v5369_v33  ;;  %v5370_v29 = vmax.f32 %v5342_v39, %v5346_v59 }
 0x736   : > { %v5393_v35 = vadd.f32 %v10290_v50, %v5370_v29  ;;  %v5408_v53 = vmax.f32 %v5392_v36, 0.0 }
 0x738   : > { %v5409_v54 = vmax.f32 %v5393_v35, 0.0 }
 0x73a   : > { %v6732_v58 = vpack.i.bf16 %v5409_v54, %v5408_v53 }
 0x73c   : > { %6733 = vrot.lane.b32.xlu1 %v6732_v58, %s6896_s16 }
 0x75f   : > { %v5286_v15 = vpop.permute.xlu0 %5285 }
 0x760   : > { %v5357_v55 = vmax.f32 %v10209_v27, %v5286_v15 }
 0x761   : > { %v5288_v48 = vpop.permute.xlu1 %5287 }
 0x762   : > { %v5358_v28 = vmax.f32 %v10213_v57, %v5288_v48 }
 0x767   : > { %v5290_v42 = vpop.permute.xlu0 %5289 }
 0x768   : > { %v5359_v5 = vmax.f32 %v10217_v0, %v5290_v42 }
 0x769   : > { %v5292_v6 = vpop.permute.xlu1 %5291 }
 0x76a   : > { %v5360_v57 = vmax.f32 %v10221_v18, %v5292_v6 }
 0x76f   : > { %v5294_v45 = vpop.permute.xlu0 %5293 }
 0x770   : > { %v5361_v8 = vmax.f32 %v10225_v3, %v5294_v45 }
 0x771   : > { %v5296_v17 = vpop.permute.xlu1 %5295 }
 0x772   : > { %v5377_v51 = vmax.f32 %v5357_v55, %v5361_v8  ;;  %v5362_v19 = vmax.f32 %v10229_v26, %v5296_v17 }
 0x773   : > { %v5258_v2 = vpop.permute.xlu0 %5257 }
 0x774   : > { %v5400_v20 = vadd.f32 %v10290_v50, %v5377_v51  ;;  %v5378_v46 = vmax.f32 %v5358_v28, %v5362_v19  ;;  %v5343_v30 = vmax.f32 %v10165_v10, %v5258_v2 }
 0x775   : > { %v5260_v12 = vpop.permute.xlu1 %5259 }
 0x776   : > { %v5401_v21 = vadd.f32 %v10290_v50, %v5378_v46  ;;  %v5416_v13 = vmax.f32 %v5400_v20, 0.0 }
 0x777   : > { %v5298_v31 = vpop.permute.xlu0 %5297 }
 0x778   : > { %v5417_v27 = vmax.f32 %v5401_v21, 0.0  ;;  %v5363_v3 = vmax.f32 %v10237_v22, %v5298_v31  ;;  %v5344_v22 = vmax.f32 %v10167_v9, %v5260_v12 }
 0x779   : > { %v5300_v16 = vpop.permute.xlu1 %5299 }
 0x77a   : > { %v6727_v14 = vpack.i.bf16 %v5417_v27, %v5416_v13  ;;  %v5379_v62 = vmax.f32 %v5359_v5, %v5363_v3  ;;  %v5364_v26 = vmax.f32 %v10241_v11, %v5300_v16 }
 0x77b   : > { %v5266_v34 = vpop.permute.xlu0 %5265 }
 0x77c   : > { %v5402_v39 = vadd.f32 %v10290_v50, %v5379_v62  ;;  %v5380_v33 = vmax.f32 %v5360_v57, %v5364_v26  ;;  %v5347_v59 = vmax.f32 %v10183_v40, %v5266_v34  ;;  %6728 = vrot.lane.b32.xlu0 %v6727_v14, %s6896_s16  ;;  %v10326_v40 = vld [vmem:[%s10431_s7] sm:$0xff]  }
 0x77d   : > { %v5268_v0 = vpop.permute.xlu1 %5267  ;;  %6393 = vmatprep.subr.bf16.mxu1 %v10326_v40 }
 0x77e   : > { %v5403_v47 = vadd.f32 %v10290_v50, %v5380_v33  ;;  %v5371_v18 = vmax.f32 %v5343_v30, %v5347_v59  ;;  %v5348_v24 = vmax.f32 %v10185_v56, %v5268_v0  ;;  %v5418_v11 = vmax.f32 %v5402_v39, 0.0 }
 0x77f   : > { %v5270_v36 = vpop.permute.xlu0 %5269 }
 0x780   : > { %v5419_v29 = vmax.f32 %v5403_v47, 0.0  ;;  %v5394_v10 = vadd.f32 %v10290_v50, %v5371_v18  ;;  %v5372_v35 = vmax.f32 %v5344_v22, %v5348_v24  ;;  %5251 = vrot.lane.b32.xlu0 %v10155_v52, %s6896_s16  ;;  %v5349_v48 = vmax.f32 %v10187_v63, %v5270_v36 }
 0x781   : > { %v5272_v9 = vpop.permute.xlu1 %5271 }
 0x782   : > { %v6737_v53 = vpack.i.bf16 %v5419_v29, %v5418_v11  ;;  %v5395_v54 = vadd.f32 %v10290_v50, %v5372_v35  ;;  %v5410_v58 = vmax.f32 %v5394_v10, 0.0  ;;  %v5350_v55 = vmax.f32 %v10189_v60, %v5272_v9 }
 0x783   : > { %v5278_v56 = vpop.permute.xlu0 %5277 }
 0x784   : > { %v5411_v15 = vmax.f32 %v5395_v54, 0.0  ;;  %v5353_v42 = vmax.f32 %v10195_v4, %v5278_v56  ;;  %6738 = vrot.lane.b32.xlu0 %v6737_v53, %s6896_s16 }
 0x785   : > { %v5280_v6 = vpop.permute.xlu1 %5279 }
 0x786   : > { %v6742_v45 = vpack.i.bf16 %v5411_v15, %v5410_v58  ;;  %v5373_v8 = vmax.f32 %v5349_v48, %v5353_v42  ;;  %v5354_v17 = vmax.f32 %v10197_v41, %v5280_v6  ;;  %v6860_v15 = vld [vmem:[%s10431_s7 + $0x8] sm:$0xff]  }
 0x787   : > { %v5238_v28 = vpop.permute.xlu0 %5237 }
 0x788   : > { %v5374_v51 = vmax.f32 %v5350_v55, %v5354_v17  ;;  %6743 = vrot.lane.b32.xlu1 %v6742_v45, %s6896_s16  ;;  %v5333_v20 = vmax.f32 %v10141_v7, %v5238_v28 }
 0x789   : > { %v5240_v19 = vpop.permute.xlu1 %5239 }
 0x78a   : > { %v5334_v46 = vmax.f32 %v10143_v23, %v5240_v19 }
 0x78b   : > { %v5246_v2 = vpop.permute.xlu0 %5245 }
 0x78c   : > { %v5337_v63 = vmax.f32 %v10149_v49, %v5246_v2 }
 0x78d   : > { %v5248_v4 = vpop.permute.xlu1 %5247 }
 0x78e   : > { %v5365_v12 = vmax.f32 %v5333_v20, %v5337_v63  ;;  %v5338_v21 = vmax.f32 %v10151_v61, %v5248_v4 }
 0x78f   : > { %v5274_v60 = vpop.permute.xlu0 %5273 }
 0x790   : > { %v5366_v31 = vmax.f32 %v5334_v46, %v5338_v21  ;;  %v5351_v13 = vmax.f32 %v10191_v44, %v5274_v60  ;;  %v5388_v34 = vadd.f32 %v10290_v50, %v5365_v12  ;;  %v6862_v21 = vld [vmem:[%s10431_s7 + $0x18] sm:$0xff]   ;;  %v6863_v60 = vld [vmem:[%s10431_s7 + $0x20] sm:$0xff]  }
 0x791   : > { %v5276_v5 = vpop.permute.xlu1 %5275 }
 0x792   : > { %v5352_v16 = vmax.f32 %v10193_v25, %v5276_v5  ;;  %v5389_v44 = vadd.f32 %v10290_v50, %v5366_v31  ;;  %v6864_v31 = vld [vmem:[%s10431_s7 + $0x28] sm:$0xff]   ;;  %v6865_v5 = vld [vmem:[%s10431_s7 + $0x30] sm:$0xff]  }
 0x793   : > { %v5282_v41 = vpop.permute.xlu0 %5281 }
 0x794   : > { %v5355_v27 = vmax.f32 %v10199_v37, %v5282_v41  ;;  %v5404_v37 = vmax.f32 %v5388_v34, 0.0  ;;  %v5405_v39 = vmax.f32 %v5389_v44, 0.0  ;;  %v6866_v41 = vld [vmem:[%s10431_s7 + $0x38] sm:$0xff]  }
 0x795   : > { %v5284_v3 = vpop.permute.xlu1 %5283 }
 0x796   : > { %v5375_v7 = vmax.f32 %v5351_v13, %v5355_v27  ;;  %v5356_v49 = vmax.f32 %v10201_v38, %v5284_v3  ;;  %v6867_v13 = vld [vmem:[%s10433_s9] sm:$0xff]  }
 0x797   : > { %v5244_v22 = vpop.permute.xlu0 %5243  ;;  %v6312_v3 = vld [vmem:[%s10430_s6] ss:$0 sm:$0xff] }
 0x798   : > { %v5376_v57 = vmax.f32 %v5352_v16, %v5356_v49  ;;  %v5398_v35 = vadd.f32 %v10290_v50, %v5375_v7  ;;  %v5336_v56 = vmax.f32 %v10147_v1, %v5244_v22 }
 0x799   : > { %v5242_v14 = vpop.permute.xlu1 %5241 }
 0x79a   : > { %v5335_v62 = vmax.f32 %v10145_v43, %v5242_v14  ;;  %v5396_v43 = vadd.f32 %v10290_v50, %v5373_v8  ;;  %v5399_v9 = vadd.f32 %v10290_v50, %v5376_v57  ;;  %v5414_v42 = vmax.f32 %v5398_v35, 0.0 }
 0x79c   : > { %v5412_v18 = vmax.f32 %v5396_v43, 0.0  ;;  %v5415_v6 = vmax.f32 %v5399_v9, 0.0 }
 0x79d   : > { %v5250_v23 = vpop.permute.xlu1 %5249 }
 0x79e   : > { %v5339_v61 = vmax.f32 %v10153_v32, %v5250_v23  ;;  %v5397_v32 = vadd.f32 %v10290_v50, %v5374_v51 }
 0x7a0   : > { %v5367_v26 = vmax.f32 %v5335_v62, %v5339_v61  ;;  %v5413_v24 = vmax.f32 %v5397_v32, 0.0  ;;  %v6868_v32 = vld [vmem:[%s10433_s9 + $0x8] sm:$0xff]  }
 0x7a2   : > { %v5390_v55 = vadd.f32 %v10290_v50, %v5367_v26 }
 0x7a4   : > { %v5406_v20 = vmax.f32 %v5390_v55, 0.0 }
 0x7ae   : > { %v6734_v30 = vpop.permute.xlu1 %6733 }
 0x7af   : > { %v6736_v33 = vunpack.i.h.bf16 %v6734_v30  ;;  %v6735_v25 = vunpack.i.l.bf16 %v6734_v30 }
 0x7b1   : > { %v5453_v59 = vsel %vm2919_vm2, %v5405_v39, %v6736_v33  ;;  %v5452_v38 = vsel %vm2919_vm2, %v5404_v37, %v6735_v25 }
 0x7b2   : > { %v5460_v0 = vpack.c.bf16 %v5453_v59, %v5452_v38 }
 0x7ee   : > { %v6729_v47 = vpop.permute.xlu0 %6728 }
 0x7ef   : > { %v6731_v36 = vunpack.i.h.bf16 %v6729_v47  ;;  %v6730_v11 = vunpack.i.l.bf16 %v6729_v47  ;;  %v6869_v47 = vld [vmem:[%s10433_s9 + $0x10] sm:$0xff]  }
 0x7f1   : > { %v5456_v29 = vsel %vm2919_vm2, %v5412_v18, %v6730_v11  ;;  %v5457_v10 = vsel %vm2919_vm2, %v5413_v24, %v6731_v36  ;;  %v6870_v18 = vld [vmem:[%s10433_s9 + $0x18] sm:$0xff]   ;;  %v6329_v24 = vld [vmem:[%s10432_s8] ss:$0 sm:$0xff] }
 0x7f2   : > { %v5252_v53 = vpop.permute.xlu0 %5251  ;;  %v5461_v54 = vpack.c.bf16 %v5457_v10, %v5456_v29 }
 0x7f3   : > { %v5340_v58 = vmax.f32 %v10155_v52, %v5252_v53  ;;  %v6861_v52 = vld [vmem:[%s10431_s7 + $0x10] sm:$0xff]  }
 0x7f4   : > { %5631 = vmatprep.mubr.bf16.mxu1 %v5461_v54 }
 0x7f5   : > { %v5368_v48 = vmax.f32 %v5336_v56, %v5340_v58  ;;  %5632 = vmatmul.mubr.bf16.vlgmr.msra.gmra.mrb[80].mxu1 %v5460_v0 }
 0x7f6   : > { %v6739_v45 = vpop.permute.xlu0 %6738  ;;  %6394 = vmatpush3.bf16.msra.mxu1 %v10326_v40 }
 0x7f7   : > { %v5391_v8 = vadd.f32 %v10290_v50, %v5368_v48  ;;  %v6741_v17 = vunpack.i.h.bf16 %v6739_v45  ;;  %v6740_v1 = vunpack.i.l.bf16 %v6739_v45  ;;  %6395 = vmatprep.subr.bf16.mxu1 %v6860_v15  ;;  %v6338_v45 = vld [vmem:[%s10434_s10] ss:$0 sm:$0xff] }
 0x7f9   : > { %v5458_v28 = vsel %vm2919_vm2, %v5414_v42, %v6740_v1  ;;  %v5459_v51 = vsel %vm2919_vm2, %v5415_v6, %v6741_v17  ;;  %v5407_v40 = vmax.f32 %v5391_v8, 0.0 }
 0x7fa   : > { %v6744_v19 = vpop.permute.xlu1 %6743  ;;  %v5463_v2 = vpack.c.bf16 %v5459_v51, %v5458_v28  ;;  %6396 = vmatpush3.bf16.msra.mxu1 %v6860_v15 }
 0x7fb   : > { %v6746_v63 = vunpack.i.h.bf16 %v6744_v19  ;;  %v6745_v4 = vunpack.i.l.bf16 %v6744_v19  ;;  %6397 = vmatprep.subr.bf16.mxu1 %v6861_v52 }
 0x7fc   : > { %5639 = vmatprep.mubr.bf16.mxu1 %v5463_v2 }
 0x7fd   : > { %v5455_v50 = vsel %vm2919_vm2, %v5407_v40, %v6746_v63  ;;  %v5454_v46 = vsel %vm2919_vm2, %v5406_v20, %v6745_v4 }
 0x7fe   : > { %v5462_v12 = vpack.c.bf16 %v5455_v50, %v5454_v46  ;;  %6398 = vmatpush3.bf16.msra.mxu1 %v6861_v52 }
 0x7ff   : > { %6399 = vmatprep.subr.bf16.mxu1 %v6862_v21 }
 0x800   : > { %5640 = vmatmul.mubr.bf16.gmra.mrb[84].mxu1 %v5462_v12 }
 0x802   : > { %6400 = vmatpush3.bf16.msra.mxu1 %v6862_v21 }
 0x803   : > { %6401 = vmatprep.subr.bf16.mxu1 %v6863_v60 }
 0x806   : > { %6402 = vmatpush3.bf16.msra.mxu1 %v6863_v60 }
 0x807   : > { %6403 = vmatprep.subr.bf16.mxu1 %v6864_v31 }
 0x80a   : > { %6404 = vmatpush3.bf16.msra.mxu1 %v6864_v31 }
 0x80b   : > { %6405 = vmatprep.subr.bf16.mxu1 %v6865_v5 }
 0x80e   : > { %6406 = vmatpush3.bf16.msra.mxu1 %v6865_v5 }
 0x80f   : > { %6407 = vmatprep.subr.bf16.mxu1 %v6866_v41 }
 0x812   : > { %6408 = vmatpush3.bf16.msra.mxu1 %v6866_v41 }
 0x813   : > { %6413 = vmatprep.subr.bf16.mxu1 %v6867_v13 }
 0x8c8   : > { %v6365_v27 = vpop.f32.mrb[80].mxu1 }
 0x8c9   : > { %v6366_v16 = vpop.f32.mrb[81].mxu1 }
 0x8ca   : > { %v6367_v7 = vadd.f32 %v6366_v16, %v6365_v27  ;;  %v6368_v49 = vpop.f32.mrb[82].mxu1 }
 0x8cb   : > { %v6369_v57 = vpop.f32.mrb[83].mxu1 }
 0x8cc   : > { %v5634_v14 = vadd.f32 %v6367_v7, %v6312_v3  ;;  %v6370_v23 = vadd.f32 %v6369_v57, %v6368_v49 }
 0x8ce   : > { %v5637_v62 = vadd.f32 %v6370_v23, %v6312_v3  ;;  %v5648_v61 = vmax.f32 %v5634_v14, 0.0 }
 0x8d0   : > { %v5649_v26 = vmax.f32 %v5637_v62, 0.0 }
 0x8d2   : > { %v5652_v34 = vpack.c.bf16 %v5649_v26, %v5648_v61 }
 0x8d3   : > { %v6371_v44 = vpop.f32.mrb[84].mxu1 }
 0x8d4   : > { %v6372_v30 = vpop.f32.mrb[85].mxu1  ;;  %6409 = vmatprep.mubr.bf16.mxu1 %v5652_v34 }
 0x8d5   : > { %v6373_v37 = vadd.f32 %v6372_v30, %v6371_v44  ;;  %v6374_v39 = vpop.f32.mrb[86].mxu1 }
 0x8d6   : > { %v6375_v33 = vpop.f32.mrb[87].mxu1 }
 0x8d7   : > { %v5642_v25 = vadd.f32 %v6373_v37, %v6312_v3  ;;  %v6376_v59 = vadd.f32 %v6375_v33, %v6374_v39 }
 0x8d9   : > { %v5645_v38 = vadd.f32 %v6376_v59, %v6312_v3  ;;  %v5650_v0 = vmax.f32 %v5642_v25, 0.0 }
 0x8db   : > { %v5651_v22 = vmax.f32 %v5645_v38, 0.0 }
 0x8dd   : > { %v5653_v43 = vpack.c.bf16 %v5651_v22, %v5650_v0 }
 0x8df   : > { %6410 = vmatmul.mubr.bf16.vlgmr.msra.gmra.mrb[88].mxu1 %v5653_v43 }
 0x8e0   : > { %6414 = vmatpush3.bf16.msra.mxu1 %v6867_v13 }
 0x8e1   : > { %6415 = vmatprep.subr.bf16.mxu1 %v6868_v32 }
 0x8e4   : > { %6416 = vmatpush3.bf16.msra.mxu1 %v6868_v32 }
 0x8e5   : > { %6417 = vmatprep.subr.bf16.mxu1 %v6869_v47 }
 0x8e8   : > { %6418 = vmatpush3.bf16.msra.mxu1 %v6869_v47 }
 0x8e9   : > { %6419 = vmatprep.subr.bf16.mxu1 %v6870_v18 }
 0x8ec   : > { %6420 = vmatpush3.bf16.msra.mxu1 %v6870_v18 }
 0x9b2   : > { %v6411_v36 = vpop.f32.mrb[88].mxu1 }
 0x9b3   : > { %v5768_v11 = vadd.f32 %v6411_v36, %v6329_v24  ;;  %v5759_v29 = vpop.f32.mrb[89].mxu1 }
 0x9b4   : > { %v5760_v10 = vadd.f32 %v6329_v24, %v5759_v29  ;;  %v6412_v35 = vpop.f32.mrb[90].mxu1 }
 0x9b5   : > { %v5771_v9 = vadd.f32 %v6412_v35, %v6329_v24  ;;  %v5762_v53 = vpop.f32.mrb[91].mxu1  ;;  %v5776_v56 = vmax.f32 %v5768_v11, 0.0 }
 0x9b6   : > { %v5763_v54 = vadd.f32 %v6329_v24, %v5762_v53  ;;  %v5774_v15 = vmax.f32 %v5760_v10, 0.0 }
 0x9b7   : > { %v5777_v58 = vmax.f32 %v5771_v9, 0.0 }
 0x9b8   : > { %v5775_v48 = vmax.f32 %v5763_v54, 0.0 }
 0x9b9   : > { %v5779_v42 = vpack.c.bf16 %v5777_v58, %v5776_v56 }
 0x9ba   : > { %v5778_v6 = vpack.c.bf16 %v5775_v48, %v5774_v15 }
 0x9bc   : > { %6421 = vmatprep.mubr.msk.bf16.mxu1 %vm2919_vm2, %v5778_v6 }
 0x9bd   : > { %6422 = vmatmul.mubr.msk.bf16.vlgmr.msra.gmra.mrb[92].mxu1 %vm2919_vm2, %v5779_v42 }
 0xa90   : > { %v6423_v55 = vpop.f32.mrb[92].mxu1 }
 0xa91   : > { %v5859_v8 = vpop.f32.mrb[93].mxu1  ;;  %v5868_v51 = vadd.f32 %v6423_v55, %v6338_v45 }
 0xa92   : > { %v5860_v17 = vadd.f32 %v6338_v45, %v5859_v8  ;;  %v6424_v1 = vpop.f32.mrb[94].mxu1 }
 0xa93   : > { %v5862_v52 = vpop.f32.mrb[95].mxu1  ;;  %v5871_v19 = vadd.f32 %v6424_v1, %v6338_v45  ;;  %5877 = vst.msk [vmem:[%s790_s28 + $0x10] sm:$0xff] %vm5874_vm3, %v5868_v51 }
 0xa94   : > { %5875 = vst.msk [vmem:[%s790_s28] sm:$0xff] %vm5874_vm3, %v5860_v17  ;;  %v5863_v28 = vadd.f32 %v6338_v45, %v5862_v52 }
 0xa95   : > { %5878 = vst.msk [vmem:[%s790_s28 + $0x18] sm:$0xff] %vm5874_vm3, %v5871_v19 }
 0xa96   : > { %5876 = vst.msk [vmem:[%s790_s28 + $0x8] sm:$0xff] %vm5874_vm3, %v5863_v28 }
 0xa97 PF: > { %p18_p9 = scmp.ge.s32.totalorder %s6974_s21, 4   ;;  %s11175_s17 = smov %s6889_s18 }
 0xa98   : > { %s11176_s18 = smov %s6983_s24  ;;  %s11177_s19 = smov %s6974_s21 }
 0xa99   :  { %20 = sbr.rel (!%p18_p9) target bundleno = 2 (0x2), region = 126 }

</bundles_post_ra>
